<compile_context>
chip_gen: v5e
topology: v5e:2x2
jax: 0.10.0
libtpu: 0.0.40
codegen_flags: <defaults>
</compile_context>

<pallas_src>
import functools

import jax
import jax.numpy as jnp
from jax.experimental import pallas as pl
from jax.experimental.pallas import tpu as pltpu


TILE = 128  # lane tile width (vreg lanes)


# ----------------------------------------------------------------------------
# Packed-gate GRU combine
# ----------------------------------------------------------------------------
def _gru_combine(gi, gh, h, *, hidden, tile):
    """gi/gh/h are (B, tile) f32.  Gates are packed in lanes [0:H)=r, [H:2H)=z,
    [2H:3H)=n; the hidden state lives in lanes [0:H).  Lanes >= H of the result carry
    bounded junk (never NaN/Inf) and are sliced off / zero-weighted downstream."""
    H = hidden
    s = jax.nn.sigmoid(gi + gh)                 # r @ [0:H), z @ [H:2H)
    r_at_n = pltpu.roll(s, 2 * H, 1)            # move r to the n-gate lanes [2H:3H)
    n = jnp.tanh(gi + r_at_n * gh)              # n valid @ [2H:3H)
    z0 = pltpu.roll(s, tile - H, 1)             # move z to [0:H)
    n0 = pltpu.roll(n, tile - 2 * H, 1)         # move n to [0:H)
    return (1.0 - z0) * n0 + z0 * h             # h' valid @ [0:H)


# ----------------------------------------------------------------------------
# Kernel
# ----------------------------------------------------------------------------
def decoder_rnn_kernel(
    x_ref, h1_ref, h2_ref, h3_ref,
    wih1_ref, whh1_ref, bih1_ref, bhh1_ref,
    wih2_ref, whh2_ref, bih2_ref, bhh2_ref,
    wih3_ref, whh3_ref, bih3_ref, bhh3_ref,
    wout_ref, bout_ref,
    out_ref, hn1_ref, hn2_ref, hn3_ref,
    *, seq_len, batch_pad, hidden, tile,
):
    B = batch_pad
    bf16, f32 = jnp.bfloat16, jnp.float32

    h1 = h1_ref[...]   # (B, tile) f32, real lanes [0:H)
    h2 = h2_ref[...]
    h3 = h3_ref[...]

    # Hoisted layer-1 input projection for ALL timesteps: one batched bf16 MXU matmul
    # instead of seq_len tiny per-step pushes.
    gi1_all = (
        jnp.dot(x_ref[...], wih1_ref[...], preferred_element_type=f32)
        + bih1_ref[...]
    )  # (seq_len * B, tile) f32

    whh1, bhh1 = whh1_ref[...], bhh1_ref[...]
    wih2, whh2, bih2, bhh2 = wih2_ref[...], whh2_ref[...], bih2_ref[...], bhh2_ref[...]
    wih3, whh3, bih3, bhh3 = wih3_ref[...], whh3_ref[...], bih3_ref[...], bhh3_ref[...]
    wout, bout = wout_ref[...], bout_ref[...]

    combine = functools.partial(_gru_combine, hidden=hidden, tile=tile)

    # seq_len is small & static -> fully unrolled (recurrence is inherently serial).
    for t in range(seq_len):
        # All three recurrent projections only depend on the previous step's hidden
        # states, so issue them up front; only gi2/gi3 stay on the serial layer chain.
        gh1 = jnp.dot(h1.astype(bf16), whh1, preferred_element_type=f32) + bhh1
        gh2 = jnp.dot(h2.astype(bf16), whh2, preferred_element_type=f32) + bhh2
        gh3 = jnp.dot(h3.astype(bf16), whh3, preferred_element_type=f32) + bhh3

        gi1 = gi1_all[t * B:(t + 1) * B, :]            # static, sublane-aligned slice
        h1 = combine(gi1, gh1, h1)                     # gru1
        y1 = jnp.maximum(h1, 0.0)                      # F.relu
        gi2 = jnp.dot(y1.astype(bf16), wih2, preferred_element_type=f32) + bih2
        h2 = combine(gi2, gh2, h2)                     # gru2
        y2 = jnp.maximum(h2, 0.0)                      # F.relu
        gi3 = jnp.dot(y2.astype(bf16), wih3, preferred_element_type=f32) + bih3
        h3 = combine(gi3, gh3, h3)                     # gru3

        if t == 0:
            # Output head only depends on output[0] of gru3 -> issue it early so its
            # matmul / exp / log reductions hide under the remaining timesteps.
            logits = jnp.dot(h3.astype(bf16), wout, preferred_element_type=f32) + bout
            m = jnp.max(logits, axis=1, keepdims=True)
            s = logits - m
            lse = jnp.log(jnp.sum(jnp.exp(s), axis=1, keepdims=True))
            out_ref[...] = s - lse

    hn1_ref[...] = h1
    hn2_ref[...] = h2
    hn3_ref[...] = h3


# ----------------------------------------------------------------------------
# Wrapper: padding to TPU-friendly tiles + pallas_call
# ----------------------------------------------------------------------------
def _round_up(n, m):
    return ((n + m - 1) // m) * m


def decoder_rnn_forward(x, hidden, params):
    """x: (S, B, C); hidden: list of 3 arrays (1, B, H); params: dict of weights.

    Returns (log_probs (B, O), [h1, h2, h3] each (1, B, H)) matching the PyTorch module.
    """
    S, B, C = x.shape
    H = params["whh1"].shape[0]
    O = params["wout"].shape[1]

    # Packed-gate path requires all 3 gates to fit one lane tile (true for HIDDEN<=42).
    assert 3 * H <= TILE, "packed-gate kernel requires 3*hidden_size <= 128"

    B_pad = max(8, _round_up(B, 8))          # full sublane tile -> unmasked loads/stores
    C_pad = max(TILE, _round_up(C, TILE))    # lane-friendly LHS for the hoisted matmul
    O_pad = max(TILE, _round_up(O, TILE))    # lane-dense output store

    f32, bf16 = jnp.float32, jnp.bfloat16

    # ---- activations -----------------------------------------------------------
    x_p = jnp.pad(x.astype(f32), ((0, 0), (0, B_pad - B), (0, C_pad - C)))
    x2d = x_p.reshape(S * B_pad, C_pad).astype(bf16)

    def pad_hidden(h):                        # (1, B, H) -> (B_pad, TILE) f32
        return jnp.pad(h[0].astype(f32), ((0, B_pad - B), (0, TILE - H)))

    h1p, h2p, h3p = (pad_hidden(h) for h in hidden)

    # ---- weights: gates stay contiguous [r|z|n] in lanes [0:3H); zero-pad columns to
    # 128 and rows to the padded input width; cast to bf16 (MXU-native).  Biases stay f32.
    def pad_w(w, rows_to):
        r, c = w.shape
        return jnp.pad(w.astype(f32), ((0, rows_to - r), (0, TILE - c))).astype(bf16)

    def pad_b(b):
        return jnp.pad(b.astype(f32), ((0, 0), (0, TILE - b.shape[1])))

    wih1p = pad_w(params["wih1"], C_pad)
    whh1p = pad_w(params["whh1"], TILE)
    wih2p = pad_w(params["wih2"], TILE)
    whh2p = pad_w(params["whh2"], TILE)
    wih3p = pad_w(params["wih3"], TILE)
    whh3p = pad_w(params["whh3"], TILE)
    bih1p, bhh1p = pad_b(params["bih1"]), pad_b(params["bhh1"])
    bih2p, bhh2p = pad_b(params["bih2"]), pad_b(params["bhh2"])
    bih3p, bhh3p = pad_b(params["bih3"]), pad_b(params["bhh3"])

    # Zero-padded rows of wout make the junk lanes (>= H) of h3 irrelevant; padded logit
    # lanes get a huge negative bias so they vanish in the stabilized log-softmax.
    wout_p = jnp.pad(params["wout"].astype(f32),
                     ((0, TILE - H), (0, O_pad - O))).astype(bf16)
    bout_p = jnp.full((1, O_pad), -1e30, f32).at[:, :O].set(params["bout"].astype(f32))

    kernel = functools.partial(
        decoder_rnn_kernel, seq_len=S, batch_pad=B_pad, hidden=H, tile=TILE)

    vmem = pl.BlockSpec(memory_space=pltpu.MemorySpace.VMEM)
    out_shapes = (
        jax.ShapeDtypeStruct((B_pad, O_pad), f32),
        jax.ShapeDtypeStruct((B_pad, TILE), f32),
        jax.ShapeDtypeStruct((B_pad, TILE), f32),
        jax.ShapeDtypeStruct((B_pad, TILE), f32),
    )

    out_p, hn1p, hn2p, hn3p = pl.pallas_call(
        kernel,
        out_shape=out_shapes,
        in_specs=[vmem] * 18,
        out_specs=(vmem, vmem, vmem, vmem),
    )(
        x2d, h1p, h2p, h3p,
        wih1p, whh1p, bih1p, bhh1p,
        wih2p, whh2p, bih2p, bhh2p,
        wih3p, whh3p, bih3p, bhh3p,
        wout_p, bout_p,
    )

    # Padded rows/lanes carry bounded junk -> slice back to the real problem size.
    out = out_p[:B, :O]
    new_hidden = [hn1p[:B, :H][None], hn2p[:B, :H][None], hn3p[:B, :H][None]]
    return out, new_hidden


# ----------------------------------------------------------------------------
# Pure-JAX reference mirroring the PyTorch forward (for verification)
# ----------------------------------------------------------------------------
def _reference_forward(x, hidden, params):
    H = params["whh1"].shape[0]

    def cell(x_t, h, wih, whh, bih, bhh):
        gi = x_t @ wih + bih
        gh = h @ whh + bhh
        r = jax.nn.sigmoid(gi[:, :H] + gh[:, :H])
        z = jax.nn.sigmoid(gi[:, H:2 * H] + gh[:, H:2 * H])
        n = jnp.tanh(gi[:, 2 * H:] + r * gh[:, 2 * H:])
        return (1.0 - z) * n + z * h

    h1, h2, h3 = (h[0] for h in hidden)
    y3_t0 = None
    for t in range(x.shape[0]):
        h1 = cell(x[t], h1, params["wih1"], params["whh1"], params["bih1"], params["bhh1"])
        y1 = jnp.maximum(h1, 0.0)
        h2 = cell(y1, h2, params["wih2"], params["whh2"], params["bih2"], params["bhh2"])
        y2 = jnp.maximum(h2, 0.0)
        h3 = cell(y2, h3, params["wih3"], params["whh3"], params["bih3"], params["bhh3"])
        if t == 0:
            y3_t0 = h3
    logits = y3_t0 @ params["wout"] + params["bout"]
    out = jax.nn.log_softmax(logits, axis=1)
    return out, [h1[None], h2[None], h3[None]]


def init_params(key, classes, hidden_size, output_size):
    """Deterministic init matching PyTorch shapes (stored pre-transposed as (in, out))."""
    ks = jax.random.split(key, 20)
    bound = 1.0 / jnp.sqrt(hidden_size)

    def u(k, shape):
        return jax.random.uniform(k, shape, jnp.float32, -bound, bound)

    p = {}
    p["wih1"] = u(ks[0], (classes, 3 * hidden_size))
    p["whh1"] = u(ks[1], (hidden_size, 3 * hidden_size))
    p["bih1"] = u(ks[2], (1, 3 * hidden_size))
    p["bhh1"] = u(ks[3], (1, 3 * hidden_size))
    p["wih2"] = u(ks[4], (hidden_size, 3 * hidden_size))
    p["whh2"] = u(ks[5], (hidden_size, 3 * hidden_size))
    p["bih2"] = u(ks[6], (1, 3 * hidden_size))
    p["bhh2"] = u(ks[7], (1, 3 * hidden_size))
    p["wih3"] = u(ks[8], (hidden_size, 3 * hidden_size))
    p["whh3"] = u(ks[9], (hidden_size, 3 * hidden_size))
    p["bih3"] = u(ks[10], (1, 3 * hidden_size))
    p["bhh3"] = u(ks[11], (1, 3 * hidden_size))
    p["wout"] = u(ks[12], (hidden_size, output_size))
    p["bout"] = u(ks[13], (1, output_size))
    return p


if __name__ == "__main__":
    # Small shapes consistent with the module's forward.
    SEQ, BATCH = 8, 2
    CLASSES = 4          # gru1 input size (the module's global `classes`)
    HIDDEN = 32
    OUTPUT = 16

    key = jax.random.PRNGKey(0)
    k_x, k_h1, k_h2, k_h3, k_p = jax.random.split(key, 5)

    x = jax.random.normal(k_x, (SEQ, BATCH, CLASSES), jnp.float32)
    hidden = [
        jax.random.normal(k_h1, (1, BATCH, HIDDEN), jnp.float32),
        jax.random.normal(k_h2, (1, BATCH, HIDDEN), jnp.float32),
        jax.random.normal(k_h3, (1, BATCH, HIDDEN), jnp.float32),
    ]
    params = init_params(k_p, CLASSES, HIDDEN, OUTPUT)

    out, new_hidden = decoder_rnn_forward(x, hidden, params)
    jax.block_until_ready(out)
    for h in new_hidden:
        jax.block_until_ready(h)

    # Verify against a pure-f32 JAX reference of the PyTorch forward.
    # Tolerance loosened vs. the all-f32 kernel because the MXU now consumes bf16 operands.
    ref_out, ref_hidden = _reference_forward(x, hidden, params)
    assert jnp.allclose(out, ref_out, atol=5e-2, rtol=5e-2)
    for a, b in zip(new_hidden, ref_hidden):
        assert jnp.allclose(a, b, atol=5e-2, rtol=5e-2)

    print("KERNEL_OK")
</pallas_src>

<mosaic_0001>
module attributes {stable_mosaic.version = 11 : i64} {
  func.func @decoder_rnn_kernel(%arg0: memref<64x128xbf16, #tpu.memory_space<vmem>>, %arg1: memref<8x128xf32, #tpu.memory_space<vmem>>, %arg2: memref<8x128xf32, #tpu.memory_space<vmem>>, %arg3: memref<8x128xf32, #tpu.memory_space<vmem>>, %arg4: memref<128x128xbf16, #tpu.memory_space<vmem>>, %arg5: memref<128x128xbf16, #tpu.memory_space<vmem>>, %arg6: memref<1x128xf32, #tpu.memory_space<vmem>>, %arg7: memref<1x128xf32, #tpu.memory_space<vmem>>, %arg8: memref<128x128xbf16, #tpu.memory_space<vmem>>, %arg9: memref<128x128xbf16, #tpu.memory_space<vmem>>, %arg10: memref<1x128xf32, #tpu.memory_space<vmem>>, %arg11: memref<1x128xf32, #tpu.memory_space<vmem>>, %arg12: memref<128x128xbf16, #tpu.memory_space<vmem>>, %arg13: memref<128x128xbf16, #tpu.memory_space<vmem>>, %arg14: memref<1x128xf32, #tpu.memory_space<vmem>>, %arg15: memref<1x128xf32, #tpu.memory_space<vmem>>, %arg16: memref<128x128xbf16, #tpu.memory_space<vmem>>, %arg17: memref<1x128xf32, #tpu.memory_space<vmem>>, %arg18: memref<8x128xf32, #tpu.memory_space<vmem>>, %arg19: memref<8x128xf32, #tpu.memory_space<vmem>>, %arg20: memref<8x128xf32, #tpu.memory_space<vmem>>, %arg21: memref<8x128xf32, #tpu.memory_space<vmem>>) attributes {dimension_semantics = [], scalar_prefetch = 0 : i64, scratch_operands = 0 : i64, tpu.core_type = #tpu.core_type<tc>} {
    %c0 = arith.constant 0 : index
    %c0_0 = arith.constant 0 : index
    %0 = vector.load %arg1[%c0, %c0_0] : memref<8x128xf32, #tpu.memory_space<vmem>>, vector<8x128xf32>
    %c0_1 = arith.constant 0 : index
    %c0_2 = arith.constant 0 : index
    %1 = vector.load %arg2[%c0_1, %c0_2] : memref<8x128xf32, #tpu.memory_space<vmem>>, vector<8x128xf32>
    %c0_3 = arith.constant 0 : index
    %c0_4 = arith.constant 0 : index
    %2 = vector.load %arg3[%c0_3, %c0_4] : memref<8x128xf32, #tpu.memory_space<vmem>>, vector<8x128xf32>
    %c0_5 = arith.constant 0 : index
    %c0_6 = arith.constant 0 : index
    %3 = vector.load %arg0[%c0_5, %c0_6] : memref<64x128xbf16, #tpu.memory_space<vmem>>, vector<64x128xbf16>
    %c0_7 = arith.constant 0 : index
    %c0_8 = arith.constant 0 : index
    %4 = vector.load %arg4[%c0_7, %c0_8] : memref<128x128xbf16, #tpu.memory_space<vmem>>, vector<128x128xbf16>
    %cst = arith.constant dense<0.000000e+00> : vector<64x128xf32>
    %5 = tpu.matmul %3, %4, %cst {dimension_numbers = #tpu.dot_dimension_numbers<[1], [0], [0], [1], [0, 0, 1, 1], [], []>} : vector<64x128xbf16>, vector<128x128xbf16>, vector<64x128xf32> -> vector<64x128xf32>
    %c0_9 = arith.constant 0 : index
    %c0_10 = arith.constant 0 : index
    %6 = vector.load %arg6[%c0_9, %c0_10] : memref<1x128xf32, #tpu.memory_space<vmem>>, vector<1x128xf32>
    %7 = vector.broadcast %6 : vector<1x128xf32> to vector<64x128xf32>
    %8 = arith.addf %5, %7 : vector<64x128xf32>
    %c0_11 = arith.constant 0 : index
    %c0_12 = arith.constant 0 : index
    %9 = vector.load %arg5[%c0_11, %c0_12] : memref<128x128xbf16, #tpu.memory_space<vmem>>, vector<128x128xbf16>
    %c0_13 = arith.constant 0 : index
    %c0_14 = arith.constant 0 : index
    %10 = vector.load %arg7[%c0_13, %c0_14] : memref<1x128xf32, #tpu.memory_space<vmem>>, vector<1x128xf32>
    %c0_15 = arith.constant 0 : index
    %c0_16 = arith.constant 0 : index
    %11 = vector.load %arg8[%c0_15, %c0_16] : memref<128x128xbf16, #tpu.memory_space<vmem>>, vector<128x128xbf16>
    %c0_17 = arith.constant 0 : index
    %c0_18 = arith.constant 0 : index
    %12 = vector.load %arg9[%c0_17, %c0_18] : memref<128x128xbf16, #tpu.memory_space<vmem>>, vector<128x128xbf16>
    %c0_19 = arith.constant 0 : index
    %c0_20 = arith.constant 0 : index
    %13 = vector.load %arg10[%c0_19, %c0_20] : memref<1x128xf32, #tpu.memory_space<vmem>>, vector<1x128xf32>
    %c0_21 = arith.constant 0 : index
    %c0_22 = arith.constant 0 : index
    %14 = vector.load %arg11[%c0_21, %c0_22] : memref<1x128xf32, #tpu.memory_space<vmem>>, vector<1x128xf32>
    %c0_23 = arith.constant 0 : index
    %c0_24 = arith.constant 0 : index
    %15 = vector.load %arg12[%c0_23, %c0_24] : memref<128x128xbf16, #tpu.memory_space<vmem>>, vector<128x128xbf16>
    %c0_25 = arith.constant 0 : index
    %c0_26 = arith.constant 0 : index
    %16 = vector.load %arg13[%c0_25, %c0_26] : memref<128x128xbf16, #tpu.memory_space<vmem>>, vector<128x128xbf16>
    %c0_27 = arith.constant 0 : index
    %c0_28 = arith.constant 0 : index
    %17 = vector.load %arg14[%c0_27, %c0_28] : memref<1x128xf32, #tpu.memory_space<vmem>>, vector<1x128xf32>
    %c0_29 = arith.constant 0 : index
    %c0_30 = arith.constant 0 : index
    %18 = vector.load %arg15[%c0_29, %c0_30] : memref<1x128xf32, #tpu.memory_space<vmem>>, vector<1x128xf32>
    %c0_31 = arith.constant 0 : index
    %c0_32 = arith.constant 0 : index
    %19 = vector.load %arg16[%c0_31, %c0_32] : memref<128x128xbf16, #tpu.memory_space<vmem>>, vector<128x128xbf16>
    %c0_33 = arith.constant 0 : index
    %c0_34 = arith.constant 0 : index
    %20 = vector.load %arg17[%c0_33, %c0_34] : memref<1x128xf32, #tpu.memory_space<vmem>>, vector<1x128xf32>
    %21 = arith.truncf %0 : vector<8x128xf32> to vector<8x128xbf16>
    %cst_35 = arith.constant dense<0.000000e+00> : vector<8x128xf32>
    %22 = tpu.matmul %21, %9, %cst_35 {dimension_numbers = #tpu.dot_dimension_numbers<[1], [0], [0], [1], [0, 0, 1, 1], [], []>} : vector<8x128xbf16>, vector<128x128xbf16>, vector<8x128xf32> -> vector<8x128xf32>
    %23 = vector.broadcast %10 : vector<1x128xf32> to vector<8x128xf32>
    %24 = arith.addf %22, %23 : vector<8x128xf32>
    %25 = arith.truncf %1 : vector<8x128xf32> to vector<8x128xbf16>
    %cst_36 = arith.constant dense<0.000000e+00> : vector<8x128xf32>
    %26 = tpu.matmul %25, %12, %cst_36 {dimension_numbers = #tpu.dot_dimension_numbers<[1], [0], [0], [1], [0, 0, 1, 1], [], []>} : vector<8x128xbf16>, vector<128x128xbf16>, vector<8x128xf32> -> vector<8x128xf32>
    %27 = vector.broadcast %14 : vector<1x128xf32> to vector<8x128xf32>
    %28 = arith.addf %26, %27 : vector<8x128xf32>
    %29 = arith.truncf %2 : vector<8x128xf32> to vector<8x128xbf16>
    %cst_37 = arith.constant dense<0.000000e+00> : vector<8x128xf32>
    %30 = tpu.matmul %29, %16, %cst_37 {dimension_numbers = #tpu.dot_dimension_numbers<[1], [0], [0], [1], [0, 0, 1, 1], [], []>} : vector<8x128xbf16>, vector<128x128xbf16>, vector<8x128xf32> -> vector<8x128xf32>
    %31 = vector.broadcast %18 : vector<1x128xf32> to vector<8x128xf32>
    %32 = arith.addf %30, %31 : vector<8x128xf32>
    %33 = vector.extract_strided_slice %8 {offsets = [0, 0], sizes = [8, 128], strides = [1, 1]} : vector<64x128xf32> to vector<8x128xf32>
    %34 = arith.addf %33, %24 : vector<8x128xf32>
    %35 = arith.negf %34 : vector<8x128xf32>
    %36 = math.exp %35 : vector<8x128xf32>
    %cst_38 = arith.constant 1.000000e+00 : f32
    %37 = vector.broadcast %cst_38 : f32 to vector<8x128xf32>
    %38 = arith.addf %37, %36 : vector<8x128xf32>
    %39 = arith.divf %37, %38 : vector<8x128xf32>
    %c64_i32 = arith.constant 64 : i32
    %40 = tpu.dynamic_rotate %39 by %c64_i32 dim 1 : vector<8x128xf32>, i32 -> vector<8x128xf32>
    %41 = arith.mulf %40, %24 : vector<8x128xf32>
    %42 = arith.addf %33, %41 : vector<8x128xf32>
    %43 = math.tanh %42 : vector<8x128xf32>
    %c96_i32 = arith.constant 96 : i32
    %44 = tpu.dynamic_rotate %39 by %c96_i32 dim 1 : vector<8x128xf32>, i32 -> vector<8x128xf32>
    %c64_i32_39 = arith.constant 64 : i32
    %45 = tpu.dynamic_rotate %43 by %c64_i32_39 dim 1 : vector<8x128xf32>, i32 -> vector<8x128xf32>
    %cst_40 = arith.constant 1.000000e+00 : f32
    %46 = vector.broadcast %cst_40 : f32 to vector<8x128xf32>
    %47 = arith.subf %46, %44 : vector<8x128xf32>
    %48 = arith.mulf %47, %45 : vector<8x128xf32>
    %49 = arith.mulf %44, %0 : vector<8x128xf32>
    %50 = arith.addf %48, %49 : vector<8x128xf32>
    %cst_41 = arith.constant 0.000000e+00 : f32
    %51 = vector.broadcast %cst_41 : f32 to vector<8x128xf32>
    %52 = arith.maximumf %50, %51 : vector<8x128xf32>
    %53 = arith.truncf %52 : vector<8x128xf32> to vector<8x128xbf16>
    %cst_42 = arith.constant dense<0.000000e+00> : vector<8x128xf32>
    %54 = tpu.matmul %53, %11, %cst_42 {dimension_numbers = #tpu.dot_dimension_numbers<[1], [0], [0], [1], [0, 0, 1, 1], [], []>} : vector<8x128xbf16>, vector<128x128xbf16>, vector<8x128xf32> -> vector<8x128xf32>
    %55 = vector.broadcast %13 : vector<1x128xf32> to vector<8x128xf32>
    %56 = arith.addf %54, %55 : vector<8x128xf32>
    %57 = arith.addf %56, %28 : vector<8x128xf32>
    %58 = arith.negf %57 : vector<8x128xf32>
    %59 = math.exp %58 : vector<8x128xf32>
    %cst_43 = arith.constant 1.000000e+00 : f32
    %60 = vector.broadcast %cst_43 : f32 to vector<8x128xf32>
    %61 = arith.addf %60, %59 : vector<8x128xf32>
    %62 = arith.divf %60, %61 : vector<8x128xf32>
    %c64_i32_44 = arith.constant 64 : i32
    %63 = tpu.dynamic_rotate %62 by %c64_i32_44 dim 1 : vector<8x128xf32>, i32 -> vector<8x128xf32>
    %64 = arith.mulf %63, %28 : vector<8x128xf32>
    %65 = arith.addf %56, %64 : vector<8x128xf32>
    %66 = math.tanh %65 : vector<8x128xf32>
    %c96_i32_45 = arith.constant 96 : i32
    %67 = tpu.dynamic_rotate %62 by %c96_i32_45 dim 1 : vector<8x128xf32>, i32 -> vector<8x128xf32>
    %c64_i32_46 = arith.constant 64 : i32
    %68 = tpu.dynamic_rotate %66 by %c64_i32_46 dim 1 : vector<8x128xf32>, i32 -> vector<8x128xf32>
    %cst_47 = arith.constant 1.000000e+00 : f32
    %69 = vector.broadcast %cst_47 : f32 to vector<8x128xf32>
    %70 = arith.subf %69, %67 : vector<8x128xf32>
    %71 = arith.mulf %70, %68 : vector<8x128xf32>
    %72 = arith.mulf %67, %1 : vector<8x128xf32>
    %73 = arith.addf %71, %72 : vector<8x128xf32>
    %cst_48 = arith.constant 0.000000e+00 : f32
    %74 = vector.broadcast %cst_48 : f32 to vector<8x128xf32>
    %75 = arith.maximumf %73, %74 : vector<8x128xf32>
    %76 = arith.truncf %75 : vector<8x128xf32> to vector<8x128xbf16>
    %cst_49 = arith.constant dense<0.000000e+00> : vector<8x128xf32>
    %77 = tpu.matmul %76, %15, %cst_49 {dimension_numbers = #tpu.dot_dimension_numbers<[1], [0], [0], [1], [0, 0, 1, 1], [], []>} : vector<8x128xbf16>, vector<128x128xbf16>, vector<8x128xf32> -> vector<8x128xf32>
    %78 = vector.broadcast %17 : vector<1x128xf32> to vector<8x128xf32>
    %79 = arith.addf %77, %78 : vector<8x128xf32>
    %80 = arith.addf %79, %32 : vector<8x128xf32>
    %81 = arith.negf %80 : vector<8x128xf32>
    %82 = math.exp %81 : vector<8x128xf32>
    %cst_50 = arith.constant 1.000000e+00 : f32
    %83 = vector.broadcast %cst_50 : f32 to vector<8x128xf32>
    %84 = arith.addf %83, %82 : vector<8x128xf32>
    %85 = arith.divf %83, %84 : vector<8x128xf32>
    %c64_i32_51 = arith.constant 64 : i32
    %86 = tpu.dynamic_rotate %85 by %c64_i32_51 dim 1 : vector<8x128xf32>, i32 -> vector<8x128xf32>
    %87 = arith.mulf %86, %32 : vector<8x128xf32>
    %88 = arith.addf %79, %87 : vector<8x128xf32>
    %89 = math.tanh %88 : vector<8x128xf32>
    %c96_i32_52 = arith.constant 96 : i32
    %90 = tpu.dynamic_rotate %85 by %c96_i32_52 dim 1 : vector<8x128xf32>, i32 -> vector<8x128xf32>
    %c64_i32_53 = arith.constant 64 : i32
    %91 = tpu.dynamic_rotate %89 by %c64_i32_53 dim 1 : vector<8x128xf32>, i32 -> vector<8x128xf32>
    %cst_54 = arith.constant 1.000000e+00 : f32
    %92 = vector.broadcast %cst_54 : f32 to vector<8x128xf32>
    %93 = arith.subf %92, %90 : vector<8x128xf32>
    %94 = arith.mulf %93, %91 : vector<8x128xf32>
    %95 = arith.mulf %90, %2 : vector<8x128xf32>
    %96 = arith.addf %94, %95 : vector<8x128xf32>
    %97 = arith.truncf %96 : vector<8x128xf32> to vector<8x128xbf16>
    %cst_55 = arith.constant dense<0.000000e+00> : vector<8x128xf32>
    %98 = tpu.matmul %97, %19, %cst_55 {dimension_numbers = #tpu.dot_dimension_numbers<[1], [0], [0], [1], [0, 0, 1, 1], [], []>} : vector<8x128xbf16>, vector<128x128xbf16>, vector<8x128xf32> -> vector<8x128xf32>
    %99 = vector.broadcast %20 : vector<1x128xf32> to vector<8x128xf32>
    %100 = arith.addf %98, %99 : vector<8x128xf32>
    %cst_56 = arith.constant dense<0xFF800000> : vector<8xf32>
    %101 = vector.multi_reduction <maximumf>, %100, %cst_56 [1] : vector<8x128xf32> to vector<8xf32>
    %102 = vector.shape_cast %101 : vector<8xf32> to vector<8x1xf32>
    %103 = vector.broadcast %102 : vector<8x1xf32> to vector<8x128xf32>
    %104 = arith.subf %100, %103 : vector<8x128xf32>
    %105 = math.exp %104 : vector<8x128xf32>
    %cst_57 = arith.constant dense<0.000000e+00> : vector<8xf32>
    %106 = vector.multi_reduction <add>, %105, %cst_57 [1] : vector<8x128xf32> to vector<8xf32>
    %107 = vector.shape_cast %106 : vector<8xf32> to vector<8x1xf32>
    %108 = math.log %107 : vector<8x1xf32>
    %109 = vector.broadcast %108 : vector<8x1xf32> to vector<8x128xf32>
    %110 = arith.subf %104, %109 : vector<8x128xf32>
    %c0_58 = arith.constant 0 : index
    %c0_59 = arith.constant 0 : index
    %111 = vector.load %arg18[%c0_58, %c0_59] : memref<8x128xf32, #tpu.memory_space<vmem>>, vector<8x128xf32>
    tpu.vector_store %arg18[%c0_58, %c0_59], %110 {strides = array<i32>} : memref<8x128xf32, #tpu.memory_space<vmem>>, vector<8x128xf32>,
    %112 = arith.truncf %50 : vector<8x128xf32> to vector<8x128xbf16>
    %cst_60 = arith.constant dense<0.000000e+00> : vector<8x128xf32>
    %113 = tpu.matmul %112, %9, %cst_60 {dimension_numbers = #tpu.dot_dimension_numbers<[1], [0], [0], [1], [0, 0, 1, 1], [], []>} : vector<8x128xbf16>, vector<128x128xbf16>, vector<8x128xf32> -> vector<8x128xf32>
    %114 = vector.broadcast %10 : vector<1x128xf32> to vector<8x128xf32>
    %115 = arith.addf %113, %114 : vector<8x128xf32>
    %116 = arith.truncf %73 : vector<8x128xf32> to vector<8x128xbf16>
    %cst_61 = arith.constant dense<0.000000e+00> : vector<8x128xf32>
    %117 = tpu.matmul %116, %12, %cst_61 {dimension_numbers = #tpu.dot_dimension_numbers<[1], [0], [0], [1], [0, 0, 1, 1], [], []>} : vector<8x128xbf16>, vector<128x128xbf16>, vector<8x128xf32> -> vector<8x128xf32>
    %118 = vector.broadcast %14 : vector<1x128xf32> to vector<8x128xf32>
    %119 = arith.addf %117, %118 : vector<8x128xf32>
    %120 = arith.truncf %96 : vector<8x128xf32> to vector<8x128xbf16>
    %cst_62 = arith.constant dense<0.000000e+00> : vector<8x128xf32>
    %121 = tpu.matmul %120, %16, %cst_62 {dimension_numbers = #tpu.dot_dimension_numbers<[1], [0], [0], [1], [0, 0, 1, 1], [], []>} : vector<8x128xbf16>, vector<128x128xbf16>, vector<8x128xf32> -> vector<8x128xf32>
    %122 = vector.broadcast %18 : vector<1x128xf32> to vector<8x128xf32>
    %123 = arith.addf %121, %122 : vector<8x128xf32>
    %124 = vector.extract_strided_slice %8 {offsets = [8, 0], sizes = [8, 128], strides = [1, 1]} : vector<64x128xf32> to vector<8x128xf32>
    %125 = arith.addf %124, %115 : vector<8x128xf32>
    %126 = arith.negf %125 : vector<8x128xf32>
    %127 = math.exp %126 : vector<8x128xf32>
    %cst_63 = arith.constant 1.000000e+00 : f32
    %128 = vector.broadcast %cst_63 : f32 to vector<8x128xf32>
    %129 = arith.addf %128, %127 : vector<8x128xf32>
    %130 = arith.divf %128, %129 : vector<8x128xf32>
    %c64_i32_64 = arith.constant 64 : i32
    %131 = tpu.dynamic_rotate %130 by %c64_i32_64 dim 1 : vector<8x128xf32>, i32 -> vector<8x128xf32>
    %132 = arith.mulf %131, %115 : vector<8x128xf32>
    %133 = arith.addf %124, %132 : vector<8x128xf32>
    %134 = math.tanh %133 : vector<8x128xf32>
    %c96_i32_65 = arith.constant 96 : i32
    %135 = tpu.dynamic_rotate %130 by %c96_i32_65 dim 1 : vector<8x128xf32>, i32 -> vector<8x128xf32>
    %c64_i32_66 = arith.constant 64 : i32
    %136 = tpu.dynamic_rotate %134 by %c64_i32_66 dim 1 : vector<8x128xf32>, i32 -> vector<8x128xf32>
    %cst_67 = arith.constant 1.000000e+00 : f32
    %137 = vector.broadcast %cst_67 : f32 to vector<8x128xf32>
    %138 = arith.subf %137, %135 : vector<8x128xf32>
    %139 = arith.mulf %138, %136 : vector<8x128xf32>
    %140 = arith.mulf %135, %50 : vector<8x128xf32>
    %141 = arith.addf %139, %140 : vector<8x128xf32>
    %cst_68 = arith.constant 0.000000e+00 : f32
    %142 = vector.broadcast %cst_68 : f32 to vector<8x128xf32>
    %143 = arith.maximumf %141, %142 : vector<8x128xf32>
    %144 = arith.truncf %143 : vector<8x128xf32> to vector<8x128xbf16>
    %cst_69 = arith.constant dense<0.000000e+00> : vector<8x128xf32>
    %145 = tpu.matmul %144, %11, %cst_69 {dimension_numbers = #tpu.dot_dimension_numbers<[1], [0], [0], [1], [0, 0, 1, 1], [], []>} : vector<8x128xbf16>, vector<128x128xbf16>, vector<8x128xf32> -> vector<8x128xf32>
    %146 = vector.broadcast %13 : vector<1x128xf32> to vector<8x128xf32>
    %147 = arith.addf %145, %146 : vector<8x128xf32>
    %148 = arith.addf %147, %119 : vector<8x128xf32>
    %149 = arith.negf %148 : vector<8x128xf32>
    %150 = math.exp %149 : vector<8x128xf32>
    %cst_70 = arith.constant 1.000000e+00 : f32
    %151 = vector.broadcast %cst_70 : f32 to vector<8x128xf32>
    %152 = arith.addf %151, %150 : vector<8x128xf32>
    %153 = arith.divf %151, %152 : vector<8x128xf32>
    %c64_i32_71 = arith.constant 64 : i32
    %154 = tpu.dynamic_rotate %153 by %c64_i32_71 dim 1 : vector<8x128xf32>, i32 -> vector<8x128xf32>
    %155 = arith.mulf %154, %119 : vector<8x128xf32>
    %156 = arith.addf %147, %155 : vector<8x128xf32>
    %157 = math.tanh %156 : vector<8x128xf32>
    %c96_i32_72 = arith.constant 96 : i32
    %158 = tpu.dynamic_rotate %153 by %c96_i32_72 dim 1 : vector<8x128xf32>, i32 -> vector<8x128xf32>
    %c64_i32_73 = arith.constant 64 : i32
    %159 = tpu.dynamic_rotate %157 by %c64_i32_73 dim 1 : vector<8x128xf32>, i32 -> vector<8x128xf32>
    %cst_74 = arith.constant 1.000000e+00 : f32
    %160 = vector.broadcast %cst_74 : f32 to vector<8x128xf32>
    %161 = arith.subf %160, %158 : vector<8x128xf32>
    %162 = arith.mulf %161, %159 : vector<8x128xf32>
    %163 = arith.mulf %158, %73 : vector<8x128xf32>
    %164 = arith.addf %162, %163 : vector<8x128xf32>
    %cst_75 = arith.constant 0.000000e+00 : f32
    %165 = vector.broadcast %cst_75 : f32 to vector<8x128xf32>
    %166 = arith.maximumf %164, %165 : vector<8x128xf32>
    %167 = arith.truncf %166 : vector<8x128xf32> to vector<8x128xbf16>
    %cst_76 = arith.constant dense<0.000000e+00> : vector<8x128xf32>
    %168 = tpu.matmul %167, %15, %cst_76 {dimension_numbers = #tpu.dot_dimension_numbers<[1], [0], [0], [1], [0, 0, 1, 1], [], []>} : vector<8x128xbf16>, vector<128x128xbf16>, vector<8x128xf32> -> vector<8x128xf32>
    %169 = vector.broadcast %17 : vector<1x128xf32> to vector<8x128xf32>
    %170 = arith.addf %168, %169 : vector<8x128xf32>
    %171 = arith.addf %170, %123 : vector<8x128xf32>
    %172 = arith.negf %171 : vector<8x128xf32>
    %173 = math.exp %172 : vector<8x128xf32>
    %cst_77 = arith.constant 1.000000e+00 : f32
    %174 = vector.broadcast %cst_77 : f32 to vector<8x128xf32>
    %175 = arith.addf %174, %173 : vector<8x128xf32>
    %176 = arith.divf %174, %175 : vector<8x128xf32>
    %c64_i32_78 = arith.constant 64 : i32
    %177 = tpu.dynamic_rotate %176 by %c64_i32_78 dim 1 : vector<8x128xf32>, i32 -> vector<8x128xf32>
    %178 = arith.mulf %177, %123 : vector<8x128xf32>
    %179 = arith.addf %170, %178 : vector<8x128xf32>
    %180 = math.tanh %179 : vector<8x128xf32>
    %c96_i32_79 = arith.constant 96 : i32
    %181 = tpu.dynamic_rotate %176 by %c96_i32_79 dim 1 : vector<8x128xf32>, i32 -> vector<8x128xf32>
    %c64_i32_80 = arith.constant 64 : i32
    %182 = tpu.dynamic_rotate %180 by %c64_i32_80 dim 1 : vector<8x128xf32>, i32 -> vector<8x128xf32>
    %cst_81 = arith.constant 1.000000e+00 : f32
    %183 = vector.broadcast %cst_81 : f32 to vector<8x128xf32>
    %184 = arith.subf %183, %181 : vector<8x128xf32>
    %185 = arith.mulf %184, %182 : vector<8x128xf32>
    %186 = arith.mulf %181, %96 : vector<8x128xf32>
    %187 = arith.addf %185, %186 : vector<8x128xf32>
    %188 = arith.truncf %141 : vector<8x128xf32> to vector<8x128xbf16>
    %cst_82 = arith.constant dense<0.000000e+00> : vector<8x128xf32>
    %189 = tpu.matmul %188, %9, %cst_82 {dimension_numbers = #tpu.dot_dimension_numbers<[1], [0], [0], [1], [0, 0, 1, 1], [], []>} : vector<8x128xbf16>, vector<128x128xbf16>, vector<8x128xf32> -> vector<8x128xf32>
    %190 = vector.broadcast %10 : vector<1x128xf32> to vector<8x128xf32>
    %191 = arith.addf %189, %190 : vector<8x128xf32>
    %192 = arith.truncf %164 : vector<8x128xf32> to vector<8x128xbf16>
    %cst_83 = arith.constant dense<0.000000e+00> : vector<8x128xf32>
    %193 = tpu.matmul %192, %12, %cst_83 {dimension_numbers = #tpu.dot_dimension_numbers<[1], [0], [0], [1], [0, 0, 1, 1], [], []>} : vector<8x128xbf16>, vector<128x128xbf16>, vector<8x128xf32> -> vector<8x128xf32>
    %194 = vector.broadcast %14 : vector<1x128xf32> to vector<8x128xf32>
    %195 = arith.addf %193, %194 : vector<8x128xf32>
    %196 = arith.truncf %187 : vector<8x128xf32> to vector<8x128xbf16>
    %cst_84 = arith.constant dense<0.000000e+00> : vector<8x128xf32>
    %197 = tpu.matmul %196, %16, %cst_84 {dimension_numbers = #tpu.dot_dimension_numbers<[1], [0], [0], [1], [0, 0, 1, 1], [], []>} : vector<8x128xbf16>, vector<128x128xbf16>, vector<8x128xf32> -> vector<8x128xf32>
    %198 = vector.broadcast %18 : vector<1x128xf32> to vector<8x128xf32>
    %199 = arith.addf %197, %198 : vector<8x128xf32>
    %200 = vector.extract_strided_slice %8 {offsets = [16, 0], sizes = [8, 128], strides = [1, 1]} : vector<64x128xf32> to vector<8x128xf32>
    %201 = arith.addf %200, %191 : vector<8x128xf32>
    %202 = arith.negf %201 : vector<8x128xf32>
    %203 = math.exp %202 : vector<8x128xf32>
    %cst_85 = arith.constant 1.000000e+00 : f32
    %204 = vector.broadcast %cst_85 : f32 to vector<8x128xf32>
    %205 = arith.addf %204, %203 : vector<8x128xf32>
    %206 = arith.divf %204, %205 : vector<8x128xf32>
    %c64_i32_86 = arith.constant 64 : i32
    %207 = tpu.dynamic_rotate %206 by %c64_i32_86 dim 1 : vector<8x128xf32>, i32 -> vector<8x128xf32>
    %208 = arith.mulf %207, %191 : vector<8x128xf32>
    %209 = arith.addf %200, %208 : vector<8x128xf32>
    %210 = math.tanh %209 : vector<8x128xf32>
    %c96_i32_87 = arith.constant 96 : i32
    %211 = tpu.dynamic_rotate %206 by %c96_i32_87 dim 1 : vector<8x128xf32>, i32 -> vector<8x128xf32>
    %c64_i32_88 = arith.constant 64 : i32
    %212 = tpu.dynamic_rotate %210 by %c64_i32_88 dim 1 : vector<8x128xf32>, i32 -> vector<8x128xf32>
    %cst_89 = arith.constant 1.000000e+00 : f32
    %213 = vector.broadcast %cst_89 : f32 to vector<8x128xf32>
    %214 = arith.subf %213, %211 : vector<8x128xf32>
    %215 = arith.mulf %214, %212 : vector<8x128xf32>
    %216 = arith.mulf %211, %141 : vector<8x128xf32>
    %217 = arith.addf %215, %216 : vector<8x128xf32>
    %cst_90 = arith.constant 0.000000e+00 : f32
    %218 = vector.broadcast %cst_90 : f32 to vector<8x128xf32>
    %219 = arith.maximumf %217, %218 : vector<8x128xf32>
    %220 = arith.truncf %219 : vector<8x128xf32> to vector<8x128xbf16>
    %cst_91 = arith.constant dense<0.000000e+00> : vector<8x128xf32>
    %221 = tpu.matmul %220, %11, %cst_91 {dimension_numbers = #tpu.dot_dimension_numbers<[1], [0], [0], [1], [0, 0, 1, 1], [], []>} : vector<8x128xbf16>, vector<128x128xbf16>, vector<8x128xf32> -> vector<8x128xf32>
    %222 = vector.broadcast %13 : vector<1x128xf32> to vector<8x128xf32>
    %223 = arith.addf %221, %222 : vector<8x128xf32>
    %224 = arith.addf %223, %195 : vector<8x128xf32>
    %225 = arith.negf %224 : vector<8x128xf32>
    %226 = math.exp %225 : vector<8x128xf32>
    %cst_92 = arith.constant 1.000000e+00 : f32
    %227 = vector.broadcast %cst_92 : f32 to vector<8x128xf32>
    %228 = arith.addf %227, %226 : vector<8x128xf32>
    %229 = arith.divf %227, %228 : vector<8x128xf32>
    %c64_i32_93 = arith.constant 64 : i32
    %230 = tpu.dynamic_rotate %229 by %c64_i32_93 dim 1 : vector<8x128xf32>, i32 -> vector<8x128xf32>
    %231 = arith.mulf %230, %195 : vector<8x128xf32>
    %232 = arith.addf %223, %231 : vector<8x128xf32>
    %233 = math.tanh %232 : vector<8x128xf32>
    %c96_i32_94 = arith.constant 96 : i32
    %234 = tpu.dynamic_rotate %229 by %c96_i32_94 dim 1 : vector<8x128xf32>, i32 -> vector<8x128xf32>
    %c64_i32_95 = arith.constant 64 : i32
    %235 = tpu.dynamic_rotate %233 by %c64_i32_95 dim 1 : vector<8x128xf32>, i32 -> vector<8x128xf32>
    %cst_96 = arith.constant 1.000000e+00 : f32
    %236 = vector.broadcast %cst_96 : f32 to vector<8x128xf32>
    %237 = arith.subf %236, %234 : vector<8x128xf32>
    %238 = arith.mulf %237, %235 : vector<8x128xf32>
    %239 = arith.mulf %234, %164 : vector<8x128xf32>
    %240 = arith.addf %238, %239 : vector<8x128xf32>
    %cst_97 = arith.constant 0.000000e+00 : f32
    %241 = vector.broadcast %cst_97 : f32 to vector<8x128xf32>
    %242 = arith.maximumf %240, %241 : vector<8x128xf32>
    %243 = arith.truncf %242 : vector<8x128xf32> to vector<8x128xbf16>
    %cst_98 = arith.constant dense<0.000000e+00> : vector<8x128xf32>
    %244 = tpu.matmul %243, %15, %cst_98 {dimension_numbers = #tpu.dot_dimension_numbers<[1], [0], [0], [1], [0, 0, 1, 1], [], []>} : vector<8x128xbf16>, vector<128x128xbf16>, vector<8x128xf32> -> vector<8x128xf32>
    %245 = vector.broadcast %17 : vector<1x128xf32> to vector<8x128xf32>
    %246 = arith.addf %244, %245 : vector<8x128xf32>
    %247 = arith.addf %246, %199 : vector<8x128xf32>
    %248 = arith.negf %247 : vector<8x128xf32>
    %249 = math.exp %248 : vector<8x128xf32>
    %cst_99 = arith.constant 1.000000e+00 : f32
    %250 = vector.broadcast %cst_99 : f32 to vector<8x128xf32>
    %251 = arith.addf %250, %249 : vector<8x128xf32>
    %252 = arith.divf %250, %251 : vector<8x128xf32>
    %c64_i32_100 = arith.constant 64 : i32
    %253 = tpu.dynamic_rotate %252 by %c64_i32_100 dim 1 : vector<8x128xf32>, i32 -> vector<8x128xf32>
    %254 = arith.mulf %253, %199 : vector<8x128xf32>
    %255 = arith.addf %246, %254 : vector<8x128xf32>
    %256 = math.tanh %255 : vector<8x128xf32>
    %c96_i32_101 = arith.constant 96 : i32
    %257 = tpu.dynamic_rotate %252 by %c96_i32_101 dim 1 : vector<8x128xf32>, i32 -> vector<8x128xf32>
    %c64_i32_102 = arith.constant 64 : i32
    %258 = tpu.dynamic_rotate %256 by %c64_i32_102 dim 1 : vector<8x128xf32>, i32 -> vector<8x128xf32>
    %cst_103 = arith.constant 1.000000e+00 : f32
    %259 = vector.broadcast %cst_103 : f32 to vector<8x128xf32>
    %260 = arith.subf %259, %257 : vector<8x128xf32>
    %261 = arith.mulf %260, %258 : vector<8x128xf32>
    %262 = arith.mulf %257, %187 : vector<8x128xf32>
    %263 = arith.addf %261, %262 : vector<8x128xf32>
    %264 = arith.truncf %217 : vector<8x128xf32> to vector<8x128xbf16>
    %cst_104 = arith.constant dense<0.000000e+00> : vector<8x128xf32>
    %265 = tpu.matmul %264, %9, %cst_104 {dimension_numbers = #tpu.dot_dimension_numbers<[1], [0], [0], [1], [0, 0, 1, 1], [], []>} : vector<8x128xbf16>, vector<128x128xbf16>, vector<8x128xf32> -> vector<8x128xf32>
    %266 = vector.broadcast %10 : vector<1x128xf32> to vector<8x128xf32>
    %267 = arith.addf %265, %266 : vector<8x128xf32>
    %268 = arith.truncf %240 : vector<8x128xf32> to vector<8x128xbf16>
    %cst_105 = arith.constant dense<0.000000e+00> : vector<8x128xf32>
    %269 = tpu.matmul %268, %12, %cst_105 {dimension_numbers = #tpu.dot_dimension_numbers<[1], [0], [0], [1], [0, 0, 1, 1], [], []>} : vector<8x128xbf16>, vector<128x128xbf16>, vector<8x128xf32> -> vector<8x128xf32>
    %270 = vector.broadcast %14 : vector<1x128xf32> to vector<8x128xf32>
    %271 = arith.addf %269, %270 : vector<8x128xf32>
    %272 = arith.truncf %263 : vector<8x128xf32> to vector<8x128xbf16>
    %cst_106 = arith.constant dense<0.000000e+00> : vector<8x128xf32>
    %273 = tpu.matmul %272, %16, %cst_106 {dimension_numbers = #tpu.dot_dimension_numbers<[1], [0], [0], [1], [0, 0, 1, 1], [], []>} : vector<8x128xbf16>, vector<128x128xbf16>, vector<8x128xf32> -> vector<8x128xf32>
    %274 = vector.broadcast %18 : vector<1x128xf32> to vector<8x128xf32>
    %275 = arith.addf %273, %274 : vector<8x128xf32>
    %276 = vector.extract_strided_slice %8 {offsets = [24, 0], sizes = [8, 128], strides = [1, 1]} : vector<64x128xf32> to vector<8x128xf32>
    %277 = arith.addf %276, %267 : vector<8x128xf32>
    %278 = arith.negf %277 : vector<8x128xf32>
    %279 = math.exp %278 : vector<8x128xf32>
    %cst_107 = arith.constant 1.000000e+00 : f32
    %280 = vector.broadcast %cst_107 : f32 to vector<8x128xf32>
    %281 = arith.addf %280, %279 : vector<8x128xf32>
    %282 = arith.divf %280, %281 : vector<8x128xf32>
    %c64_i32_108 = arith.constant 64 : i32
    %283 = tpu.dynamic_rotate %282 by %c64_i32_108 dim 1 : vector<8x128xf32>, i32 -> vector<8x128xf32>
    %284 = arith.mulf %283, %267 : vector<8x128xf32>
    %285 = arith.addf %276, %284 : vector<8x128xf32>
    %286 = math.tanh %285 : vector<8x128xf32>
    %c96_i32_109 = arith.constant 96 : i32
    %287 = tpu.dynamic_rotate %282 by %c96_i32_109 dim 1 : vector<8x128xf32>, i32 -> vector<8x128xf32>
    %c64_i32_110 = arith.constant 64 : i32
    %288 = tpu.dynamic_rotate %286 by %c64_i32_110 dim 1 : vector<8x128xf32>, i32 -> vector<8x128xf32>
    %cst_111 = arith.constant 1.000000e+00 : f32
    %289 = vector.broadcast %cst_111 : f32 to vector<8x128xf32>
    %290 = arith.subf %289, %287 : vector<8x128xf32>
    %291 = arith.mulf %290, %288 : vector<8x128xf32>
    %292 = arith.mulf %287, %217 : vector<8x128xf32>
    %293 = arith.addf %291, %292 : vector<8x128xf32>
    %cst_112 = arith.constant 0.000000e+00 : f32
    %294 = vector.broadcast %cst_112 : f32 to vector<8x128xf32>
    %295 = arith.maximumf %293, %294 : vector<8x128xf32>
    %296 = arith.truncf %295 : vector<8x128xf32> to vector<8x128xbf16>
    %cst_113 = arith.constant dense<0.000000e+00> : vector<8x128xf32>
    %297 = tpu.matmul %296, %11, %cst_113 {dimension_numbers = #tpu.dot_dimension_numbers<[1], [0], [0], [1], [0, 0, 1, 1], [], []>} : vector<8x128xbf16>, vector<128x128xbf16>, vector<8x128xf32> -> vector<8x128xf32>
    %298 = vector.broadcast %13 : vector<1x128xf32> to vector<8x128xf32>
    %299 = arith.addf %297, %298 : vector<8x128xf32>
    %300 = arith.addf %299, %271 : vector<8x128xf32>
    %301 = arith.negf %300 : vector<8x128xf32>
    %302 = math.exp %301 : vector<8x128xf32>
    %cst_114 = arith.constant 1.000000e+00 : f32
    %303 = vector.broadcast %cst_114 : f32 to vector<8x128xf32>
    %304 = arith.addf %303, %302 : vector<8x128xf32>
    %305 = arith.divf %303, %304 : vector<8x128xf32>
    %c64_i32_115 = arith.constant 64 : i32
    %306 = tpu.dynamic_rotate %305 by %c64_i32_115 dim 1 : vector<8x128xf32>, i32 -> vector<8x128xf32>
    %307 = arith.mulf %306, %271 : vector<8x128xf32>
    %308 = arith.addf %299, %307 : vector<8x128xf32>
    %309 = math.tanh %308 : vector<8x128xf32>
    %c96_i32_116 = arith.constant 96 : i32
    %310 = tpu.dynamic_rotate %305 by %c96_i32_116 dim 1 : vector<8x128xf32>, i32 -> vector<8x128xf32>
    %c64_i32_117 = arith.constant 64 : i32
    %311 = tpu.dynamic_rotate %309 by %c64_i32_117 dim 1 : vector<8x128xf32>, i32 -> vector<8x128xf32>
    %cst_118 = arith.constant 1.000000e+00 : f32
    %312 = vector.broadcast %cst_118 : f32 to vector<8x128xf32>
    %313 = arith.subf %312, %310 : vector<8x128xf32>
    %314 = arith.mulf %313, %311 : vector<8x128xf32>
    %315 = arith.mulf %310, %240 : vector<8x128xf32>
    %316 = arith.addf %314, %315 : vector<8x128xf32>
    %cst_119 = arith.constant 0.000000e+00 : f32
    %317 = vector.broadcast %cst_119 : f32 to vector<8x128xf32>
    %318 = arith.maximumf %316, %317 : vector<8x128xf32>
    %319 = arith.truncf %318 : vector<8x128xf32> to vector<8x128xbf16>
    %cst_120 = arith.constant dense<0.000000e+00> : vector<8x128xf32>
    %320 = tpu.matmul %319, %15, %cst_120 {dimension_numbers = #tpu.dot_dimension_numbers<[1], [0], [0], [1], [0, 0, 1, 1], [], []>} : vector<8x128xbf16>, vector<128x128xbf16>, vector<8x128xf32> -> vector<8x128xf32>
    %321 = vector.broadcast %17 : vector<1x128xf32> to vector<8x128xf32>
    %322 = arith.addf %320, %321 : vector<8x128xf32>
    %323 = arith.addf %322, %275 : vector<8x128xf32>
    %324 = arith.negf %323 : vector<8x128xf32>
    %325 = math.exp %324 : vector<8x128xf32>
    %cst_121 = arith.constant 1.000000e+00 : f32
    %326 = vector.broadcast %cst_121 : f32 to vector<8x128xf32>
    %327 = arith.addf %326, %325 : vector<8x128xf32>
    %328 = arith.divf %326, %327 : vector<8x128xf32>
    %c64_i32_122 = arith.constant 64 : i32
    %329 = tpu.dynamic_rotate %328 by %c64_i32_122 dim 1 : vector<8x128xf32>, i32 -> vector<8x128xf32>
    %330 = arith.mulf %329, %275 : vector<8x128xf32>
    %331 = arith.addf %322, %330 : vector<8x128xf32>
    %332 = math.tanh %331 : vector<8x128xf32>
    %c96_i32_123 = arith.constant 96 : i32
    %333 = tpu.dynamic_rotate %328 by %c96_i32_123 dim 1 : vector<8x128xf32>, i32 -> vector<8x128xf32>
    %c64_i32_124 = arith.constant 64 : i32
    %334 = tpu.dynamic_rotate %332 by %c64_i32_124 dim 1 : vector<8x128xf32>, i32 -> vector<8x128xf32>
    %cst_125 = arith.constant 1.000000e+00 : f32
    %335 = vector.broadcast %cst_125 : f32 to vector<8x128xf32>
    %336 = arith.subf %335, %333 : vector<8x128xf32>
    %337 = arith.mulf %336, %334 : vector<8x128xf32>
    %338 = arith.mulf %333, %263 : vector<8x128xf32>
    %339 = arith.addf %337, %338 : vector<8x128xf32>
    %340 = arith.truncf %293 : vector<8x128xf32> to vector<8x128xbf16>
    %cst_126 = arith.constant dense<0.000000e+00> : vector<8x128xf32>
    %341 = tpu.matmul %340, %9, %cst_126 {dimension_numbers = #tpu.dot_dimension_numbers<[1], [0], [0], [1], [0, 0, 1, 1], [], []>} : vector<8x128xbf16>, vector<128x128xbf16>, vector<8x128xf32> -> vector<8x128xf32>
    %342 = vector.broadcast %10 : vector<1x128xf32> to vector<8x128xf32>
    %343 = arith.addf %341, %342 : vector<8x128xf32>
    %344 = arith.truncf %316 : vector<8x128xf32> to vector<8x128xbf16>
    %cst_127 = arith.constant dense<0.000000e+00> : vector<8x128xf32>
    %345 = tpu.matmul %344, %12, %cst_127 {dimension_numbers = #tpu.dot_dimension_numbers<[1], [0], [0], [1], [0, 0, 1, 1], [], []>} : vector<8x128xbf16>, vector<128x128xbf16>, vector<8x128xf32> -> vector<8x128xf32>
    %346 = vector.broadcast %14 : vector<1x128xf32> to vector<8x128xf32>
    %347 = arith.addf %345, %346 : vector<8x128xf32>
    %348 = arith.truncf %339 : vector<8x128xf32> to vector<8x128xbf16>
    %cst_128 = arith.constant dense<0.000000e+00> : vector<8x128xf32>
    %349 = tpu.matmul %348, %16, %cst_128 {dimension_numbers = #tpu.dot_dimension_numbers<[1], [0], [0], [1], [0, 0, 1, 1], [], []>} : vector<8x128xbf16>, vector<128x128xbf16>, vector<8x128xf32> -> vector<8x128xf32>
    %350 = vector.broadcast %18 : vector<1x128xf32> to vector<8x128xf32>
    %351 = arith.addf %349, %350 : vector<8x128xf32>
    %352 = vector.extract_strided_slice %8 {offsets = [32, 0], sizes = [8, 128], strides = [1, 1]} : vector<64x128xf32> to vector<8x128xf32>
    %353 = arith.addf %352, %343 : vector<8x128xf32>
    %354 = arith.negf %353 : vector<8x128xf32>
    %355 = math.exp %354 : vector<8x128xf32>
    %cst_129 = arith.constant 1.000000e+00 : f32
    %356 = vector.broadcast %cst_129 : f32 to vector<8x128xf32>
    %357 = arith.addf %356, %355 : vector<8x128xf32>
    %358 = arith.divf %356, %357 : vector<8x128xf32>
    %c64_i32_130 = arith.constant 64 : i32
    %359 = tpu.dynamic_rotate %358 by %c64_i32_130 dim 1 : vector<8x128xf32>, i32 -> vector<8x128xf32>
    %360 = arith.mulf %359, %343 : vector<8x128xf32>
    %361 = arith.addf %352, %360 : vector<8x128xf32>
    %362 = math.tanh %361 : vector<8x128xf32>
    %c96_i32_131 = arith.constant 96 : i32
    %363 = tpu.dynamic_rotate %358 by %c96_i32_131 dim 1 : vector<8x128xf32>, i32 -> vector<8x128xf32>
    %c64_i32_132 = arith.constant 64 : i32
    %364 = tpu.dynamic_rotate %362 by %c64_i32_132 dim 1 : vector<8x128xf32>, i32 -> vector<8x128xf32>
    %cst_133 = arith.constant 1.000000e+00 : f32
    %365 = vector.broadcast %cst_133 : f32 to vector<8x128xf32>
    %366 = arith.subf %365, %363 : vector<8x128xf32>
    %367 = arith.mulf %366, %364 : vector<8x128xf32>
    %368 = arith.mulf %363, %293 : vector<8x128xf32>
    %369 = arith.addf %367, %368 : vector<8x128xf32>
    %cst_134 = arith.constant 0.000000e+00 : f32
    %370 = vector.broadcast %cst_134 : f32 to vector<8x128xf32>
    %371 = arith.maximumf %369, %370 : vector<8x128xf32>
    %372 = arith.truncf %371 : vector<8x128xf32> to vector<8x128xbf16>
    %cst_135 = arith.constant dense<0.000000e+00> : vector<8x128xf32>
    %373 = tpu.matmul %372, %11, %cst_135 {dimension_numbers = #tpu.dot_dimension_numbers<[1], [0], [0], [1], [0, 0, 1, 1], [], []>} : vector<8x128xbf16>, vector<128x128xbf16>, vector<8x128xf32> -> vector<8x128xf32>
    %374 = vector.broadcast %13 : vector<1x128xf32> to vector<8x128xf32>
    %375 = arith.addf %373, %374 : vector<8x128xf32>
    %376 = arith.addf %375, %347 : vector<8x128xf32>
    %377 = arith.negf %376 : vector<8x128xf32>
    %378 = math.exp %377 : vector<8x128xf32>
    %cst_136 = arith.constant 1.000000e+00 : f32
    %379 = vector.broadcast %cst_136 : f32 to vector<8x128xf32>
    %380 = arith.addf %379, %378 : vector<8x128xf32>
    %381 = arith.divf %379, %380 : vector<8x128xf32>
    %c64_i32_137 = arith.constant 64 : i32
    %382 = tpu.dynamic_rotate %381 by %c64_i32_137 dim 1 : vector<8x128xf32>, i32 -> vector<8x128xf32>
    %383 = arith.mulf %382, %347 : vector<8x128xf32>
    %384 = arith.addf %375, %383 : vector<8x128xf32>
    %385 = math.tanh %384 : vector<8x128xf32>
    %c96_i32_138 = arith.constant 96 : i32
    %386 = tpu.dynamic_rotate %381 by %c96_i32_138 dim 1 : vector<8x128xf32>, i32 -> vector<8x128xf32>
    %c64_i32_139 = arith.constant 64 : i32
    %387 = tpu.dynamic_rotate %385 by %c64_i32_139 dim 1 : vector<8x128xf32>, i32 -> vector<8x128xf32>
    %cst_140 = arith.constant 1.000000e+00 : f32
    %388 = vector.broadcast %cst_140 : f32 to vector<8x128xf32>
    %389 = arith.subf %388, %386 : vector<8x128xf32>
    %390 = arith.mulf %389, %387 : vector<8x128xf32>
    %391 = arith.mulf %386, %316 : vector<8x128xf32>
    %392 = arith.addf %390, %391 : vector<8x128xf32>
    %cst_141 = arith.constant 0.000000e+00 : f32
    %393 = vector.broadcast %cst_141 : f32 to vector<8x128xf32>
    %394 = arith.maximumf %392, %393 : vector<8x128xf32>
    %395 = arith.truncf %394 : vector<8x128xf32> to vector<8x128xbf16>
    %cst_142 = arith.constant dense<0.000000e+00> : vector<8x128xf32>
    %396 = tpu.matmul %395, %15, %cst_142 {dimension_numbers = #tpu.dot_dimension_numbers<[1], [0], [0], [1], [0, 0, 1, 1], [], []>} : vector<8x128xbf16>, vector<128x128xbf16>, vector<8x128xf32> -> vector<8x128xf32>
    %397 = vector.broadcast %17 : vector<1x128xf32> to vector<8x128xf32>
    %398 = arith.addf %396, %397 : vector<8x128xf32>
    %399 = arith.addf %398, %351 : vector<8x128xf32>
    %400 = arith.negf %399 : vector<8x128xf32>
    %401 = math.exp %400 : vector<8x128xf32>
    %cst_143 = arith.constant 1.000000e+00 : f32
    %402 = vector.broadcast %cst_143 : f32 to vector<8x128xf32>
    %403 = arith.addf %402, %401 : vector<8x128xf32>
    %404 = arith.divf %402, %403 : vector<8x128xf32>
    %c64_i32_144 = arith.constant 64 : i32
    %405 = tpu.dynamic_rotate %404 by %c64_i32_144 dim 1 : vector<8x128xf32>, i32 -> vector<8x128xf32>
    %406 = arith.mulf %405, %351 : vector<8x128xf32>
    %407 = arith.addf %398, %406 : vector<8x128xf32>
    %408 = math.tanh %407 : vector<8x128xf32>
    %c96_i32_145 = arith.constant 96 : i32
    %409 = tpu.dynamic_rotate %404 by %c96_i32_145 dim 1 : vector<8x128xf32>, i32 -> vector<8x128xf32>
    %c64_i32_146 = arith.constant 64 : i32
    %410 = tpu.dynamic_rotate %408 by %c64_i32_146 dim 1 : vector<8x128xf32>, i32 -> vector<8x128xf32>
    %cst_147 = arith.constant 1.000000e+00 : f32
    %411 = vector.broadcast %cst_147 : f32 to vector<8x128xf32>
    %412 = arith.subf %411, %409 : vector<8x128xf32>
    %413 = arith.mulf %412, %410 : vector<8x128xf32>
    %414 = arith.mulf %409, %339 : vector<8x128xf32>
    %415 = arith.addf %413, %414 : vector<8x128xf32>
    %416 = arith.truncf %369 : vector<8x128xf32> to vector<8x128xbf16>
    %cst_148 = arith.constant dense<0.000000e+00> : vector<8x128xf32>
    %417 = tpu.matmul %416, %9, %cst_148 {dimension_numbers = #tpu.dot_dimension_numbers<[1], [0], [0], [1], [0, 0, 1, 1], [], []>} : vector<8x128xbf16>, vector<128x128xbf16>, vector<8x128xf32> -> vector<8x128xf32>
    %418 = vector.broadcast %10 : vector<1x128xf32> to vector<8x128xf32>
    %419 = arith.addf %417, %418 : vector<8x128xf32>
    %420 = arith.truncf %392 : vector<8x128xf32> to vector<8x128xbf16>
    %cst_149 = arith.constant dense<0.000000e+00> : vector<8x128xf32>
    %421 = tpu.matmul %420, %12, %cst_149 {dimension_numbers = #tpu.dot_dimension_numbers<[1], [0], [0], [1], [0, 0, 1, 1], [], []>} : vector<8x128xbf16>, vector<128x128xbf16>, vector<8x128xf32> -> vector<8x128xf32>
    %422 = vector.broadcast %14 : vector<1x128xf32> to vector<8x128xf32>
    %423 = arith.addf %421, %422 : vector<8x128xf32>
    %424 = arith.truncf %415 : vector<8x128xf32> to vector<8x128xbf16>
    %cst_150 = arith.constant dense<0.000000e+00> : vector<8x128xf32>
    %425 = tpu.matmul %424, %16, %cst_150 {dimension_numbers = #tpu.dot_dimension_numbers<[1], [0], [0], [1], [0, 0, 1, 1], [], []>} : vector<8x128xbf16>, vector<128x128xbf16>, vector<8x128xf32> -> vector<8x128xf32>
    %426 = vector.broadcast %18 : vector<1x128xf32> to vector<8x128xf32>
    %427 = arith.addf %425, %426 : vector<8x128xf32>
    %428 = vector.extract_strided_slice %8 {offsets = [40, 0], sizes = [8, 128], strides = [1, 1]} : vector<64x128xf32> to vector<8x128xf32>
    %429 = arith.addf %428, %419 : vector<8x128xf32>
    %430 = arith.negf %429 : vector<8x128xf32>
    %431 = math.exp %430 : vector<8x128xf32>
    %cst_151 = arith.constant 1.000000e+00 : f32
    %432 = vector.broadcast %cst_151 : f32 to vector<8x128xf32>
    %433 = arith.addf %432, %431 : vector<8x128xf32>
    %434 = arith.divf %432, %433 : vector<8x128xf32>
    %c64_i32_152 = arith.constant 64 : i32
    %435 = tpu.dynamic_rotate %434 by %c64_i32_152 dim 1 : vector<8x128xf32>, i32 -> vector<8x128xf32>
    %436 = arith.mulf %435, %419 : vector<8x128xf32>
    %437 = arith.addf %428, %436 : vector<8x128xf32>
    %438 = math.tanh %437 : vector<8x128xf32>
    %c96_i32_153 = arith.constant 96 : i32
    %439 = tpu.dynamic_rotate %434 by %c96_i32_153 dim 1 : vector<8x128xf32>, i32 -> vector<8x128xf32>
    %c64_i32_154 = arith.constant 64 : i32
    %440 = tpu.dynamic_rotate %438 by %c64_i32_154 dim 1 : vector<8x128xf32>, i32 -> vector<8x128xf32>
    %cst_155 = arith.constant 1.000000e+00 : f32
    %441 = vector.broadcast %cst_155 : f32 to vector<8x128xf32>
    %442 = arith.subf %441, %439 : vector<8x128xf32>
    %443 = arith.mulf %442, %440 : vector<8x128xf32>
    %444 = arith.mulf %439, %369 : vector<8x128xf32>
    %445 = arith.addf %443, %444 : vector<8x128xf32>
    %cst_156 = arith.constant 0.000000e+00 : f32
    %446 = vector.broadcast %cst_156 : f32 to vector<8x128xf32>
    %447 = arith.maximumf %445, %446 : vector<8x128xf32>
    %448 = arith.truncf %447 : vector<8x128xf32> to vector<8x128xbf16>
    %cst_157 = arith.constant dense<0.000000e+00> : vector<8x128xf32>
    %449 = tpu.matmul %448, %11, %cst_157 {dimension_numbers = #tpu.dot_dimension_numbers<[1], [0], [0], [1], [0, 0, 1, 1], [], []>} : vector<8x128xbf16>, vector<128x128xbf16>, vector<8x128xf32> -> vector<8x128xf32>
    %450 = vector.broadcast %13 : vector<1x128xf32> to vector<8x128xf32>
    %451 = arith.addf %449, %450 : vector<8x128xf32>
    %452 = arith.addf %451, %423 : vector<8x128xf32>
    %453 = arith.negf %452 : vector<8x128xf32>
    %454 = math.exp %453 : vector<8x128xf32>
    %cst_158 = arith.constant 1.000000e+00 : f32
    %455 = vector.broadcast %cst_158 : f32 to vector<8x128xf32>
    %456 = arith.addf %455, %454 : vector<8x128xf32>
    %457 = arith.divf %455, %456 : vector<8x128xf32>
    %c64_i32_159 = arith.constant 64 : i32
    %458 = tpu.dynamic_rotate %457 by %c64_i32_159 dim 1 : vector<8x128xf32>, i32 -> vector<8x128xf32>
    %459 = arith.mulf %458, %423 : vector<8x128xf32>
    %460 = arith.addf %451, %459 : vector<8x128xf32>
    %461 = math.tanh %460 : vector<8x128xf32>
    %c96_i32_160 = arith.constant 96 : i32
    %462 = tpu.dynamic_rotate %457 by %c96_i32_160 dim 1 : vector<8x128xf32>, i32 -> vector<8x128xf32>
    %c64_i32_161 = arith.constant 64 : i32
    %463 = tpu.dynamic_rotate %461 by %c64_i32_161 dim 1 : vector<8x128xf32>, i32 -> vector<8x128xf32>
    %cst_162 = arith.constant 1.000000e+00 : f32
    %464 = vector.broadcast %cst_162 : f32 to vector<8x128xf32>
    %465 = arith.subf %464, %462 : vector<8x128xf32>
    %466 = arith.mulf %465, %463 : vector<8x128xf32>
    %467 = arith.mulf %462, %392 : vector<8x128xf32>
    %468 = arith.addf %466, %467 : vector<8x128xf32>
    %cst_163 = arith.constant 0.000000e+00 : f32
    %469 = vector.broadcast %cst_163 : f32 to vector<8x128xf32>
    %470 = arith.maximumf %468, %469 : vector<8x128xf32>
    %471 = arith.truncf %470 : vector<8x128xf32> to vector<8x128xbf16>
    %cst_164 = arith.constant dense<0.000000e+00> : vector<8x128xf32>
    %472 = tpu.matmul %471, %15, %cst_164 {dimension_numbers = #tpu.dot_dimension_numbers<[1], [0], [0], [1], [0, 0, 1, 1], [], []>} : vector<8x128xbf16>, vector<128x128xbf16>, vector<8x128xf32> -> vector<8x128xf32>
    %473 = vector.broadcast %17 : vector<1x128xf32> to vector<8x128xf32>
    %474 = arith.addf %472, %473 : vector<8x128xf32>
    %475 = arith.addf %474, %427 : vector<8x128xf32>
    %476 = arith.negf %475 : vector<8x128xf32>
    %477 = math.exp %476 : vector<8x128xf32>
    %cst_165 = arith.constant 1.000000e+00 : f32
    %478 = vector.broadcast %cst_165 : f32 to vector<8x128xf32>
    %479 = arith.addf %478, %477 : vector<8x128xf32>
    %480 = arith.divf %478, %479 : vector<8x128xf32>
    %c64_i32_166 = arith.constant 64 : i32
    %481 = tpu.dynamic_rotate %480 by %c64_i32_166 dim 1 : vector<8x128xf32>, i32 -> vector<8x128xf32>
    %482 = arith.mulf %481, %427 : vector<8x128xf32>
    %483 = arith.addf %474, %482 : vector<8x128xf32>
    %484 = math.tanh %483 : vector<8x128xf32>
    %c96_i32_167 = arith.constant 96 : i32
    %485 = tpu.dynamic_rotate %480 by %c96_i32_167 dim 1 : vector<8x128xf32>, i32 -> vector<8x128xf32>
    %c64_i32_168 = arith.constant 64 : i32
    %486 = tpu.dynamic_rotate %484 by %c64_i32_168 dim 1 : vector<8x128xf32>, i32 -> vector<8x128xf32>
    %cst_169 = arith.constant 1.000000e+00 : f32
    %487 = vector.broadcast %cst_169 : f32 to vector<8x128xf32>
    %488 = arith.subf %487, %485 : vector<8x128xf32>
    %489 = arith.mulf %488, %486 : vector<8x128xf32>
    %490 = arith.mulf %485, %415 : vector<8x128xf32>
    %491 = arith.addf %489, %490 : vector<8x128xf32>
    %492 = arith.truncf %445 : vector<8x128xf32> to vector<8x128xbf16>
    %cst_170 = arith.constant dense<0.000000e+00> : vector<8x128xf32>
    %493 = tpu.matmul %492, %9, %cst_170 {dimension_numbers = #tpu.dot_dimension_numbers<[1], [0], [0], [1], [0, 0, 1, 1], [], []>} : vector<8x128xbf16>, vector<128x128xbf16>, vector<8x128xf32> -> vector<8x128xf32>
    %494 = vector.broadcast %10 : vector<1x128xf32> to vector<8x128xf32>
    %495 = arith.addf %493, %494 : vector<8x128xf32>
    %496 = arith.truncf %468 : vector<8x128xf32> to vector<8x128xbf16>
    %cst_171 = arith.constant dense<0.000000e+00> : vector<8x128xf32>
    %497 = tpu.matmul %496, %12, %cst_171 {dimension_numbers = #tpu.dot_dimension_numbers<[1], [0], [0], [1], [0, 0, 1, 1], [], []>} : vector<8x128xbf16>, vector<128x128xbf16>, vector<8x128xf32> -> vector<8x128xf32>
    %498 = vector.broadcast %14 : vector<1x128xf32> to vector<8x128xf32>
    %499 = arith.addf %497, %498 : vector<8x128xf32>
    %500 = arith.truncf %491 : vector<8x128xf32> to vector<8x128xbf16>
    %cst_172 = arith.constant dense<0.000000e+00> : vector<8x128xf32>
    %501 = tpu.matmul %500, %16, %cst_172 {dimension_numbers = #tpu.dot_dimension_numbers<[1], [0], [0], [1], [0, 0, 1, 1], [], []>} : vector<8x128xbf16>, vector<128x128xbf16>, vector<8x128xf32> -> vector<8x128xf32>
    %502 = vector.broadcast %18 : vector<1x128xf32> to vector<8x128xf32>
    %503 = arith.addf %501, %502 : vector<8x128xf32>
    %504 = vector.extract_strided_slice %8 {offsets = [48, 0], sizes = [8, 128], strides = [1, 1]} : vector<64x128xf32> to vector<8x128xf32>
    %505 = arith.addf %504, %495 : vector<8x128xf32>
    %506 = arith.negf %505 : vector<8x128xf32>
    %507 = math.exp %506 : vector<8x128xf32>
    %cst_173 = arith.constant 1.000000e+00 : f32
    %508 = vector.broadcast %cst_173 : f32 to vector<8x128xf32>
    %509 = arith.addf %508, %507 : vector<8x128xf32>
    %510 = arith.divf %508, %509 : vector<8x128xf32>
    %c64_i32_174 = arith.constant 64 : i32
    %511 = tpu.dynamic_rotate %510 by %c64_i32_174 dim 1 : vector<8x128xf32>, i32 -> vector<8x128xf32>
    %512 = arith.mulf %511, %495 : vector<8x128xf32>
    %513 = arith.addf %504, %512 : vector<8x128xf32>
    %514 = math.tanh %513 : vector<8x128xf32>
    %c96_i32_175 = arith.constant 96 : i32
    %515 = tpu.dynamic_rotate %510 by %c96_i32_175 dim 1 : vector<8x128xf32>, i32 -> vector<8x128xf32>
    %c64_i32_176 = arith.constant 64 : i32
    %516 = tpu.dynamic_rotate %514 by %c64_i32_176 dim 1 : vector<8x128xf32>, i32 -> vector<8x128xf32>
    %cst_177 = arith.constant 1.000000e+00 : f32
    %517 = vector.broadcast %cst_177 : f32 to vector<8x128xf32>
    %518 = arith.subf %517, %515 : vector<8x128xf32>
    %519 = arith.mulf %518, %516 : vector<8x128xf32>
    %520 = arith.mulf %515, %445 : vector<8x128xf32>
    %521 = arith.addf %519, %520 : vector<8x128xf32>
    %cst_178 = arith.constant 0.000000e+00 : f32
    %522 = vector.broadcast %cst_178 : f32 to vector<8x128xf32>
    %523 = arith.maximumf %521, %522 : vector<8x128xf32>
    %524 = arith.truncf %523 : vector<8x128xf32> to vector<8x128xbf16>
    %cst_179 = arith.constant dense<0.000000e+00> : vector<8x128xf32>
    %525 = tpu.matmul %524, %11, %cst_179 {dimension_numbers = #tpu.dot_dimension_numbers<[1], [0], [0], [1], [0, 0, 1, 1], [], []>} : vector<8x128xbf16>, vector<128x128xbf16>, vector<8x128xf32> -> vector<8x128xf32>
    %526 = vector.broadcast %13 : vector<1x128xf32> to vector<8x128xf32>
    %527 = arith.addf %525, %526 : vector<8x128xf32>
    %528 = arith.addf %527, %499 : vector<8x128xf32>
    %529 = arith.negf %528 : vector<8x128xf32>
    %530 = math.exp %529 : vector<8x128xf32>
    %cst_180 = arith.constant 1.000000e+00 : f32
    %531 = vector.broadcast %cst_180 : f32 to vector<8x128xf32>
    %532 = arith.addf %531, %530 : vector<8x128xf32>
    %533 = arith.divf %531, %532 : vector<8x128xf32>
    %c64_i32_181 = arith.constant 64 : i32
    %534 = tpu.dynamic_rotate %533 by %c64_i32_181 dim 1 : vector<8x128xf32>, i32 -> vector<8x128xf32>
    %535 = arith.mulf %534, %499 : vector<8x128xf32>
    %536 = arith.addf %527, %535 : vector<8x128xf32>
    %537 = math.tanh %536 : vector<8x128xf32>
    %c96_i32_182 = arith.constant 96 : i32
    %538 = tpu.dynamic_rotate %533 by %c96_i32_182 dim 1 : vector<8x128xf32>, i32 -> vector<8x128xf32>
    %c64_i32_183 = arith.constant 64 : i32
    %539 = tpu.dynamic_rotate %537 by %c64_i32_183 dim 1 : vector<8x128xf32>, i32 -> vector<8x128xf32>
    %cst_184 = arith.constant 1.000000e+00 : f32
    %540 = vector.broadcast %cst_184 : f32 to vector<8x128xf32>
    %541 = arith.subf %540, %538 : vector<8x128xf32>
    %542 = arith.mulf %541, %539 : vector<8x128xf32>
    %543 = arith.mulf %538, %468 : vector<8x128xf32>
    %544 = arith.addf %542, %543 : vector<8x128xf32>
    %cst_185 = arith.constant 0.000000e+00 : f32
    %545 = vector.broadcast %cst_185 : f32 to vector<8x128xf32>
    %546 = arith.maximumf %544, %545 : vector<8x128xf32>
    %547 = arith.truncf %546 : vector<8x128xf32> to vector<8x128xbf16>
    %cst_186 = arith.constant dense<0.000000e+00> : vector<8x128xf32>
    %548 = tpu.matmul %547, %15, %cst_186 {dimension_numbers = #tpu.dot_dimension_numbers<[1], [0], [0], [1], [0, 0, 1, 1], [], []>} : vector<8x128xbf16>, vector<128x128xbf16>, vector<8x128xf32> -> vector<8x128xf32>
    %549 = vector.broadcast %17 : vector<1x128xf32> to vector<8x128xf32>
    %550 = arith.addf %548, %549 : vector<8x128xf32>
    %551 = arith.addf %550, %503 : vector<8x128xf32>
    %552 = arith.negf %551 : vector<8x128xf32>
    %553 = math.exp %552 : vector<8x128xf32>
    %cst_187 = arith.constant 1.000000e+00 : f32
    %554 = vector.broadcast %cst_187 : f32 to vector<8x128xf32>
    %555 = arith.addf %554, %553 : vector<8x128xf32>
    %556 = arith.divf %554, %555 : vector<8x128xf32>
    %c64_i32_188 = arith.constant 64 : i32
    %557 = tpu.dynamic_rotate %556 by %c64_i32_188 dim 1 : vector<8x128xf32>, i32 -> vector<8x128xf32>
    %558 = arith.mulf %557, %503 : vector<8x128xf32>
    %559 = arith.addf %550, %558 : vector<8x128xf32>
    %560 = math.tanh %559 : vector<8x128xf32>
    %c96_i32_189 = arith.constant 96 : i32
    %561 = tpu.dynamic_rotate %556 by %c96_i32_189 dim 1 : vector<8x128xf32>, i32 -> vector<8x128xf32>
    %c64_i32_190 = arith.constant 64 : i32
    %562 = tpu.dynamic_rotate %560 by %c64_i32_190 dim 1 : vector<8x128xf32>, i32 -> vector<8x128xf32>
    %cst_191 = arith.constant 1.000000e+00 : f32
    %563 = vector.broadcast %cst_191 : f32 to vector<8x128xf32>
    %564 = arith.subf %563, %561 : vector<8x128xf32>
    %565 = arith.mulf %564, %562 : vector<8x128xf32>
    %566 = arith.mulf %561, %491 : vector<8x128xf32>
    %567 = arith.addf %565, %566 : vector<8x128xf32>
    %568 = arith.truncf %521 : vector<8x128xf32> to vector<8x128xbf16>
    %cst_192 = arith.constant dense<0.000000e+00> : vector<8x128xf32>
    %569 = tpu.matmul %568, %9, %cst_192 {dimension_numbers = #tpu.dot_dimension_numbers<[1], [0], [0], [1], [0, 0, 1, 1], [], []>} : vector<8x128xbf16>, vector<128x128xbf16>, vector<8x128xf32> -> vector<8x128xf32>
    %570 = vector.broadcast %10 : vector<1x128xf32> to vector<8x128xf32>
    %571 = arith.addf %569, %570 : vector<8x128xf32>
    %572 = arith.truncf %544 : vector<8x128xf32> to vector<8x128xbf16>
    %cst_193 = arith.constant dense<0.000000e+00> : vector<8x128xf32>
    %573 = tpu.matmul %572, %12, %cst_193 {dimension_numbers = #tpu.dot_dimension_numbers<[1], [0], [0], [1], [0, 0, 1, 1], [], []>} : vector<8x128xbf16>, vector<128x128xbf16>, vector<8x128xf32> -> vector<8x128xf32>
    %574 = vector.broadcast %14 : vector<1x128xf32> to vector<8x128xf32>
    %575 = arith.addf %573, %574 : vector<8x128xf32>
    %576 = arith.truncf %567 : vector<8x128xf32> to vector<8x128xbf16>
    %cst_194 = arith.constant dense<0.000000e+00> : vector<8x128xf32>
    %577 = tpu.matmul %576, %16, %cst_194 {dimension_numbers = #tpu.dot_dimension_numbers<[1], [0], [0], [1], [0, 0, 1, 1], [], []>} : vector<8x128xbf16>, vector<128x128xbf16>, vector<8x128xf32> -> vector<8x128xf32>
    %578 = vector.broadcast %18 : vector<1x128xf32> to vector<8x128xf32>
    %579 = arith.addf %577, %578 : vector<8x128xf32>
    %580 = vector.extract_strided_slice %8 {offsets = [56, 0], sizes = [8, 128], strides = [1, 1]} : vector<64x128xf32> to vector<8x128xf32>
    %581 = arith.addf %580, %571 : vector<8x128xf32>
    %582 = arith.negf %581 : vector<8x128xf32>
    %583 = math.exp %582 : vector<8x128xf32>
    %cst_195 = arith.constant 1.000000e+00 : f32
    %584 = vector.broadcast %cst_195 : f32 to vector<8x128xf32>
    %585 = arith.addf %584, %583 : vector<8x128xf32>
    %586 = arith.divf %584, %585 : vector<8x128xf32>
    %c64_i32_196 = arith.constant 64 : i32
    %587 = tpu.dynamic_rotate %586 by %c64_i32_196 dim 1 : vector<8x128xf32>, i32 -> vector<8x128xf32>
    %588 = arith.mulf %587, %571 : vector<8x128xf32>
    %589 = arith.addf %580, %588 : vector<8x128xf32>
    %590 = math.tanh %589 : vector<8x128xf32>
    %c96_i32_197 = arith.constant 96 : i32
    %591 = tpu.dynamic_rotate %586 by %c96_i32_197 dim 1 : vector<8x128xf32>, i32 -> vector<8x128xf32>
    %c64_i32_198 = arith.constant 64 : i32
    %592 = tpu.dynamic_rotate %590 by %c64_i32_198 dim 1 : vector<8x128xf32>, i32 -> vector<8x128xf32>
    %cst_199 = arith.constant 1.000000e+00 : f32
    %593 = vector.broadcast %cst_199 : f32 to vector<8x128xf32>
    %594 = arith.subf %593, %591 : vector<8x128xf32>
    %595 = arith.mulf %594, %592 : vector<8x128xf32>
    %596 = arith.mulf %591, %521 : vector<8x128xf32>
    %597 = arith.addf %595, %596 : vector<8x128xf32>
    %cst_200 = arith.constant 0.000000e+00 : f32
    %598 = vector.broadcast %cst_200 : f32 to vector<8x128xf32>
    %599 = arith.maximumf %597, %598 : vector<8x128xf32>
    %600 = arith.truncf %599 : vector<8x128xf32> to vector<8x128xbf16>
    %cst_201 = arith.constant dense<0.000000e+00> : vector<8x128xf32>
    %601 = tpu.matmul %600, %11, %cst_201 {dimension_numbers = #tpu.dot_dimension_numbers<[1], [0], [0], [1], [0, 0, 1, 1], [], []>} : vector<8x128xbf16>, vector<128x128xbf16>, vector<8x128xf32> -> vector<8x128xf32>
    %602 = vector.broadcast %13 : vector<1x128xf32> to vector<8x128xf32>
    %603 = arith.addf %601, %602 : vector<8x128xf32>
    %604 = arith.addf %603, %575 : vector<8x128xf32>
    %605 = arith.negf %604 : vector<8x128xf32>
    %606 = math.exp %605 : vector<8x128xf32>
    %cst_202 = arith.constant 1.000000e+00 : f32
    %607 = vector.broadcast %cst_202 : f32 to vector<8x128xf32>
    %608 = arith.addf %607, %606 : vector<8x128xf32>
    %609 = arith.divf %607, %608 : vector<8x128xf32>
    %c64_i32_203 = arith.constant 64 : i32
    %610 = tpu.dynamic_rotate %609 by %c64_i32_203 dim 1 : vector<8x128xf32>, i32 -> vector<8x128xf32>
    %611 = arith.mulf %610, %575 : vector<8x128xf32>
    %612 = arith.addf %603, %611 : vector<8x128xf32>
    %613 = math.tanh %612 : vector<8x128xf32>
    %c96_i32_204 = arith.constant 96 : i32
    %614 = tpu.dynamic_rotate %609 by %c96_i32_204 dim 1 : vector<8x128xf32>, i32 -> vector<8x128xf32>
    %c64_i32_205 = arith.constant 64 : i32
    %615 = tpu.dynamic_rotate %613 by %c64_i32_205 dim 1 : vector<8x128xf32>, i32 -> vector<8x128xf32>
    %cst_206 = arith.constant 1.000000e+00 : f32
    %616 = vector.broadcast %cst_206 : f32 to vector<8x128xf32>
    %617 = arith.subf %616, %614 : vector<8x128xf32>
    %618 = arith.mulf %617, %615 : vector<8x128xf32>
    %619 = arith.mulf %614, %544 : vector<8x128xf32>
    %620 = arith.addf %618, %619 : vector<8x128xf32>
    %cst_207 = arith.constant 0.000000e+00 : f32
    %621 = vector.broadcast %cst_207 : f32 to vector<8x128xf32>
    %622 = arith.maximumf %620, %621 : vector<8x128xf32>
    %623 = arith.truncf %622 : vector<8x128xf32> to vector<8x128xbf16>
    %cst_208 = arith.constant dense<0.000000e+00> : vector<8x128xf32>
    %624 = tpu.matmul %623, %15, %cst_208 {dimension_numbers = #tpu.dot_dimension_numbers<[1], [0], [0], [1], [0, 0, 1, 1], [], []>} : vector<8x128xbf16>, vector<128x128xbf16>, vector<8x128xf32> -> vector<8x128xf32>
    %625 = vector.broadcast %17 : vector<1x128xf32> to vector<8x128xf32>
    %626 = arith.addf %624, %625 : vector<8x128xf32>
    %627 = arith.addf %626, %579 : vector<8x128xf32>
    %628 = arith.negf %627 : vector<8x128xf32>
    %629 = math.exp %628 : vector<8x128xf32>
    %cst_209 = arith.constant 1.000000e+00 : f32
    %630 = vector.broadcast %cst_209 : f32 to vector<8x128xf32>
    %631 = arith.addf %630, %629 : vector<8x128xf32>
    %632 = arith.divf %630, %631 : vector<8x128xf32>
    %c64_i32_210 = arith.constant 64 : i32
    %633 = tpu.dynamic_rotate %632 by %c64_i32_210 dim 1 : vector<8x128xf32>, i32 -> vector<8x128xf32>
    %634 = arith.mulf %633, %579 : vector<8x128xf32>
    %635 = arith.addf %626, %634 : vector<8x128xf32>
    %636 = math.tanh %635 : vector<8x128xf32>
    %c96_i32_211 = arith.constant 96 : i32
    %637 = tpu.dynamic_rotate %632 by %c96_i32_211 dim 1 : vector<8x128xf32>, i32 -> vector<8x128xf32>
    %c64_i32_212 = arith.constant 64 : i32
    %638 = tpu.dynamic_rotate %636 by %c64_i32_212 dim 1 : vector<8x128xf32>, i32 -> vector<8x128xf32>
    %cst_213 = arith.constant 1.000000e+00 : f32
    %639 = vector.broadcast %cst_213 : f32 to vector<8x128xf32>
    %640 = arith.subf %639, %637 : vector<8x128xf32>
    %641 = arith.mulf %640, %638 : vector<8x128xf32>
    %642 = arith.mulf %637, %567 : vector<8x128xf32>
    %643 = arith.addf %641, %642 : vector<8x128xf32>
    %c0_214 = arith.constant 0 : index
    %c0_215 = arith.constant 0 : index
    %644 = vector.load %arg19[%c0_214, %c0_215] : memref<8x128xf32, #tpu.memory_space<vmem>>, vector<8x128xf32>
    tpu.vector_store %arg19[%c0_214, %c0_215], %597 {strides = array<i32>} : memref<8x128xf32, #tpu.memory_space<vmem>>, vector<8x128xf32>,
    %c0_216 = arith.constant 0 : index
    %c0_217 = arith.constant 0 : index
    %645 = vector.load %arg20[%c0_216, %c0_217] : memref<8x128xf32, #tpu.memory_space<vmem>>, vector<8x128xf32>
    tpu.vector_store %arg20[%c0_216, %c0_217], %620 {strides = array<i32>} : memref<8x128xf32, #tpu.memory_space<vmem>>, vector<8x128xf32>,
    %c0_218 = arith.constant 0 : index
    %c0_219 = arith.constant 0 : index
    %646 = vector.load %arg21[%c0_218, %c0_219] : memref<8x128xf32, #tpu.memory_space<vmem>>, vector<8x128xf32>
    tpu.vector_store %arg21[%c0_218, %c0_219], %643 {strides = array<i32>} : memref<8x128xf32, #tpu.memory_space<vmem>>, vector<8x128xf32>,
    return
  }
}

</mosaic_0001>

<bundles_post_ra>
// kernel: tpu_custom_call.1
= control target key start
LH: loop header
LB: loop body
LE: loop exit
PB: predicated region body
PF: predicated region fallthrough
CT: control target
= control target key end

     0   :  { %s4327_s0 = inlined_call_operand.hbm [shape: bf16[64,128], index: 0, kind: input, shape index: {}]   ;;  %s4328_s1 = inlined_call_operand.hbm [shape: f32[8,128], index: 1, kind: input, shape index: {}]   ;;  %s4329_s2 = inlined_call_operand.hbm [shape: f32[8,128], index: 2, kind: input, shape index: {}]   ;;  %s4330_s3 = inlined_call_operand.hbm [shape: f32[8,128], index: 3, kind: input, shape index: {}]   ;;  %s4331_s4 = inlined_call_operand.hbm [shape: bf16[128,128], index: 4, kind: input, shape index: {}]   ;;  %s4332_s5 = inlined_call_operand.hbm [shape: bf16[128,128], index: 5, kind: input, shape index: {}]   ;;  %s4333_s6 = inlined_call_operand.vmem [shape: f32[1,128], index: 6, kind: input, shape index: {}]   ;;  %s4334_s7 = inlined_call_operand.vmem [shape: f32[1,128], index: 7, kind: input, shape index: {}]   ;;  %s4335_s8 = inlined_call_operand.hbm [shape: bf16[128,128], index: 8, kind: input, shape index: {}]   ;;  %s4336_s9 = inlined_call_operand.hbm [shape: bf16[128,128], index: 9, kind: input, shape index: {}]   ;;  %s4337_s10 = inlined_call_operand.vmem [shape: f32[1,128], index: 10, kind: input, shape index: {}]   ;;  %s4338_s11 = inlined_call_operand.vmem [shape: f32[1,128], index: 11, kind: input, shape index: {}]   ;;  %s4339_s12 = inlined_call_operand.hbm [shape: bf16[128,128], index: 12, kind: input, shape index: {}]   ;;  %s4340_s13 = inlined_call_operand.hbm [shape: bf16[128,128], index: 13, kind: input, shape index: {}]   ;;  %s4341_s14 = inlined_call_operand.vmem [shape: f32[1,128], index: 14, kind: input, shape index: {}]   ;;  %s4342_s15 = inlined_call_operand.vmem [shape: f32[1,128], index: 15, kind: input, shape index: {}]   ;;  %s4343_s16 = inlined_call_operand.hbm [shape: bf16[128,128], index: 16, kind: input, shape index: {}]   ;;  %s4344_s17 = inlined_call_operand.vmem [shape: f32[1,128], index: 17, kind: input, shape index: {}]   ;;  %s4345_s18 = inlined_call_operand.hbm [shape: f32[8,128], index: 18, kind: output, shape index: {0}]   ;;  %s4346_s19 = inlined_call_operand.hbm [shape: f32[8,128], index: 19, kind: output, shape index: {1}]   ;;  %s4347_s20 = inlined_call_operand.hbm [shape: f32[8,128], index: 20, kind: output, shape index: {2}]   ;;  %s4348_s21 = inlined_call_operand.hbm [shape: f32[8,128], index: 21, kind: output, shape index: {3}]  }
   0x1   :  { %4375 = sst [smem:[#allocation49_spill]] %s4327_s0 }
   0x2   :  { %4376 = sst [smem:[#allocation50_spill]] %s4328_s1 }
   0x3   :  { %4377 = sst [smem:[#allocation51_spill]] %s4329_s2 }
   0x4   :  { %4378 = sst [smem:[#allocation52_spill]] %s4330_s3 }
   0x5   :  { %4379 = sst [smem:[#allocation53_spill]] %s4331_s4 }
   0x6   :  { %4380 = sst [smem:[#allocation54_spill]] %s4332_s5 }
   0x7   :  { %4381 = sst [smem:[#allocation55_spill]] %s4347_s20 }
   0x8   :  { %4382 = sst [smem:[#allocation56_spill]] %s4348_s21 }
   0x9   :  { %27 = vsyncpa [#allocation3], 0 }
   0xa   :  { %28 = vsyncpa [#allocation6], 0 }
   0xb   :  { %29 = vsyncpa [#allocation9], 0 }
   0xc   :  { %30 = vsyncpa [#allocation12], 0 }
   0xd   :  { %31 = vsyncpa [#allocation15], 0 }
   0xe   :  { %32 = vsyncpa [#allocation18], 0 }
   0xf   :  { %33 = vsyncpa [#allocation4], 0 }
  0x10   :  { %34 = vsyncpa [#allocation22], 0  ;;  %s4383_s26 = sld [smem:[#allocation50_spill]] }
  0x16   :  { %s54_s27 = sshll.u32 %s4383_s26, 4  ;;  %s55_s27 = int_to_ptr.hbm [resolvable:$true] %s54_s27 }
  0x17   :  { %35 = vsyncpa [#allocation25], 0  ;;  %s3162_s3 = smov [#allocation5]   ;;  %s4384_s4 = sld [smem:[#allocation52_spill]] }
  0x18   :  { %s56_s28 = sshll.u32 %s3162_s3, 4  ;;  %s3163_s5 = smov [#allocation8]   ;;  %s57_s28 = int_to_ptr.vmem [resolvable:$true] %s56_s28 }
  0x19   :  { %59 = dma.hbm_to_vmem [thread:$0]  %s55_s27, 128, %s57_s28, [#allocation6]  }
  0x1a   :  { %s78_s22 = sshll.u32 %s3163_s5, 4  ;;  %s4385_s24 = sld [smem:[#allocation54_spill]]  ;;  %s79_s22 = int_to_ptr.vmem [resolvable:$true] %s78_s22 }
  0x1b   :  { %s3164_s25 = smov [#allocation11]   ;;  %s129_s20 = sshll.u32 %s4336_s9, 4  ;;  %s130_s20 = int_to_ptr.hbm [resolvable:$true] %s129_s20 }
  0x1c   :  { %s101_s26 = sshll.u32 %s3164_s25, 4  ;;  %s3165_s29 = smov 64   ;;  %s102_s26 = int_to_ptr.vmem [resolvable:$true] %s101_s26 }
  0x1d   :  { %s76_s30 = sshll.u32 %s4384_s4, 4  ;;  %s3166_s0 = smov 4   ;;  %s77_s30 = int_to_ptr.hbm [resolvable:$true] %s76_s30 }
  0x1e   :  { %81 = dma.hbm_to_vmem [thread:$0]  %s77_s30, 128, %s79_s22, [#allocation9]  }
  0x1f   :  { %s3167_s27 = smov [#allocation14]   ;;  %s159_s5 = sshll.u32 %s4340_s13, 4  ;;  %s160_s5 = int_to_ptr.hbm [resolvable:$true] %s159_s5 }
  0x20   :  { %s99_s2 = sshll.u32 %s4385_s24, 4  ;;  %s131_s28 = sshll.u32 %s3167_s27, 4  ;;  %s100_s2 = int_to_ptr.hbm [resolvable:$true] %s99_s2  ;;  %s132_s28 = int_to_ptr.vmem [resolvable:$true] %s131_s28 }
  0x21   :  { %107 = dma.hbm_to_vmem [thread:$0]  %s100_s2, 1024, %s102_s26, [#allocation12], %s3165_s29, %s3165_s29, %s3166_s0  }
  0x22   :  { %137 = dma.hbm_to_vmem [thread:$0]  %s130_s20, 1024, %s132_s28, [#allocation15], %s3165_s29, %s3165_s29, %s3166_s0  }
  0x23   :  { %s4386_s22 = sld [smem:[#allocation49_spill]]  ;;  %s3168_s1 = smov [#allocation17]  }
  0x24   :  { %s161_s24 = sshll.u32 %s3168_s1, 4  ;;  %s3169_s2 = smov [#allocation2]   ;;  %s162_s24 = int_to_ptr.vmem [resolvable:$true] %s161_s24 }
  0x25   :  { %167 = dma.hbm_to_vmem [thread:$0]  %s160_s5, 1024, %s162_s24, [#allocation18], %s3165_s29, %s3165_s29, %s3166_s0  }
  0x26   :  { %s42_s13 = sshll.u32 %s3169_s2, 4  ;;  %s4387_s3 = sld [smem:[#allocation51_spill]]  ;;  %s43_s13 = int_to_ptr.vmem [resolvable:$true] %s42_s13 }
  0x27   :  { %s4388_s4 = sld [smem:[#allocation53_spill]]  ;;  %s3170_s9 = smov [#allocation7]  }
  0x28   :  { %s67_s21 = sshll.u32 %s3170_s9, 4  ;;  %s3171_s5 = smov [#allocation10]   ;;  %s68_s21 = int_to_ptr.vmem [resolvable:$true] %s67_s21 }
  0x29   :  { %s40_s23 = sshll.u32 %s4386_s22, 4  ;;  %s88_s22 = sshll.u32 %s3171_s5, 4  ;;  %s41_s23 = int_to_ptr.hbm [resolvable:$true] %s40_s23  ;;  %s89_s22 = int_to_ptr.vmem [resolvable:$true] %s88_s22 }
  0x2a   :  { %48 = dma.hbm_to_vmem [thread:$0]  %s41_s23, 512, %s43_s13, [#allocation3], %s3165_s29, %s3165_s29, %s3166_s0  }
  0x2b   :  { %s116_s2 = sshll.u32 %s4335_s8, 4  ;;  %s146_s25 = sshll.u32 %s4339_s12, 4  ;;  %s117_s2 = int_to_ptr.hbm [resolvable:$true] %s116_s2  ;;  %s147_s25 = int_to_ptr.hbm [resolvable:$true] %s146_s25 }
  0x2c   :  { %s65_s27 = sshll.u32 %s4387_s3, 4  ;;  %s3172_s26 = smov [#allocation13]   ;;  %s66_s27 = int_to_ptr.hbm [resolvable:$true] %s65_s27 }
  0x2d   :  { %s86_s30 = sshll.u32 %s4388_s4, 4  ;;  %s118_s3 = sshll.u32 %s3172_s26, 4  ;;  %s87_s30 = int_to_ptr.hbm [resolvable:$true] %s86_s30  ;;  %s119_s3 = int_to_ptr.vmem [resolvable:$true] %s118_s3 }
  0x2e   :  { %70 = dma.hbm_to_vmem [thread:$0]  %s66_s27, 128, %s68_s21, [#allocation6]  }
  0x2f   :  { %94 = dma.hbm_to_vmem [thread:$0]  %s87_s30, 1024, %s89_s22, [#allocation9], %s3165_s29, %s3165_s29, %s3166_s0  }
  0x30   :  { %124 = dma.hbm_to_vmem [thread:$0]  %s117_s2, 1024, %s119_s3, [#allocation12], %s3165_s29, %s3165_s29, %s3166_s0  }
  0x31   :  { %s3173_s27 = smov [#allocation16]   ;;  %s176_s4 = sshll.u32 %s4343_s16, 4  ;;  %s177_s4 = int_to_ptr.hbm [resolvable:$true] %s176_s4 }
  0x32   :  { %s148_s8 = sshll.u32 %s3173_s27, 4  ;;  %s3174_s12 = smov [#allocation19]   ;;  %s149_s8 = int_to_ptr.vmem [resolvable:$true] %s148_s8 }
  0x33   :  { %154 = dma.hbm_to_vmem [thread:$0]  %s147_s25, 1024, %s149_s8, [#allocation15], %s3165_s29, %s3165_s29, %s3166_s0  }
  0x34   :  { %s178_s30 = sshll.u32 %s3174_s12, 4  ;;  %s179_s30 = int_to_ptr.vmem [resolvable:$true] %s178_s30 }
  0x35   :  { %184 = dma.hbm_to_vmem [thread:$0]  %s177_s4, 1024, %s179_s30, [#allocation18], %s3165_s29, %s3165_s29, %s3166_s0  }
  0x36   :  { %3144 = dma.done.wait [#allocation3], 512  }
  0x37   :  { %3145 = vsyncadd [#allocation3], 4294966784 }
  0x38   :  { %3146 = dma.done.wait [#allocation6], 256  }
  0x39   :  { %3147 = vsyncadd [#allocation6], 4294967040 }
  0x3a   :  { %3148 = dma.done.wait [#allocation9], 1152  }
  0x3b   :  { %3149 = vsyncadd [#allocation9], 4294966144 }
  0x3c   :  { %3150 = dma.done.wait [#allocation12], 2048  }
  0x3d   :  { %3151 = vsyncadd [#allocation12], 4294965248 }
  0x3e   :  { %3152 = dma.done.wait [#allocation15], 2048  }
  0x3f   :  { %3153 = vsyncadd [#allocation15], 4294965248 }
  0x40   :  { %3154 = dma.done.wait [#allocation18], 2048  }
  0x41   :  { %3155 = vsyncadd [#allocation18], 4294965248  ;;  %v2510_v0 = vld [vmem:[#allocation10 + $0x38] sm:$0xff]  ;;  %v2509_v2 = vld [vmem:[#allocation10 + $0x30] sm:$0xff]  ;;  %s3175_s5 = smov 96   ;;  %s2184_s20 = sshll.u32 %s4346_s19, 4  ;;  %s2185_s20 = int_to_ptr.hbm [resolvable:$true] %s2184_s20 }
  0x42   :  { %v3347_v1 = vld [vmem:[#allocation11 + $0x38] sm:$0xff]  ;;  %334 = vmatpush.bf16.msra.mxu0 %v2510_v0  ;;  %v3350_v3 = vld [vmem:[#allocation11 + $0x30] sm:$0xff]  ;;  %v2508_v4 = vld [vmem:[#allocation10 + $0x28] sm:$0xff]  ;;  %s2173_s12 = sshll.u32 %s4345_s18, 4  ;;  %s3177_s30 = smov [#allocation20]   ;;  %s2174_s12 = int_to_ptr.hbm [resolvable:$true] %s2173_s12 }
  0x43   :  { %517 = vmatpush.bf16.msra.mxu1 %v3347_v1  ;;  %v3353_v5 = vld [vmem:[#allocation11 + $0x28] sm:$0xff]  ;;  %v2507_v6 = vld [vmem:[#allocation10 + $0x20] sm:$0xff]  ;;  %v2506_v8 = vld [vmem:[#allocation10 + $0x18] sm:$0xff]  ;;  %s3178_s16 = smov [#allocation23]   ;;  %s4433_s22 = sld [smem:[#allocation55_spill]] }
  0x44   :  { %v3356_v7 = vld [vmem:[#allocation11 + $0x20] sm:$0xff]  ;;  %v3359_v9 = vld [vmem:[#allocation11 + $0x18] sm:$0xff]  ;;  %v2505_v10 = vld [vmem:[#allocation10 + $0x10] sm:$0xff]  ;;  %s2193_s0 = sshll.u32 %s3178_s16, 4  ;;  %s3179_s18 = smov [#allocation24]   ;;  %s2194_s0 = int_to_ptr.vmem [resolvable:$true] %s2193_s0 }
  0x45   :  { %v3362_v11 = vld [vmem:[#allocation11 + $0x10] sm:$0xff]  ;;  %v2504_v12 = vld [vmem:[#allocation10 + $0x8] sm:$0xff]  ;;  %v2503_v14 = vld [vmem:[#allocation10] sm:$0xff]  ;;  %s2204_s1 = sshll.u32 %s3179_s18, 4  ;;  %s2205_s1 = int_to_ptr.vmem [resolvable:$true] %s2204_s1 }
  0x46   :  { %335 = vmatpush.bf16.msra.mxu0 %v2509_v2  ;;  %v3365_v13 = vld [vmem:[#allocation11 + $0x8] sm:$0xff]  ;;  %v3368_v15 = vld [vmem:[#allocation11] sm:$0xff]  ;;  %v2500_v40 = vld [vmem:[#allocation2 + $0x8] sm:$0xff] }
  0x47   :  { %518 = vmatpush.bf16.msra.mxu1 %v3350_v3  ;;  %v3370_v16 = vld [vmem:[#allocation5] sm:$0xff]  ;;  %v3397_v41 = vld [vmem:[#allocation14 + $0x38] sm:$0xff]  ;;  %v3400_v42 = vld [vmem:[#allocation14 + $0x30] sm:$0xff] }
  0x48   :  { %v2499_v17 = vld [vmem:[#allocation2] sm:$0xff]  ;;  %v465_v18 = vpack.c.bf16 %v3370_v16, %v3370_v16  ;;  %582 = vmatpush.bf16.msra.mxu2 %v3397_v41  ;;  %v3402_v43 = vld [vmem:[#allocation13 + $0x38] sm:$0xff]  ;;  %v3405_v44 = vld [vmem:[#allocation13 + $0x30] sm:$0xff] }
  0x49   :  { %v3386_v19 = vld [vmem:[%s4333_s6] ss:$0 sm:$0xff]  ;;  %v3414_v47 = vld [vmem:[#allocation14 + $0x20] sm:$0xff]  ;;  %v2501_v49 = vld [vmem:[#allocation2 + $0x10] sm:$0xff]  ;;  %s2195_s19 = sshll.u32 %s4433_s22, 4  ;;  %s2196_s19 = int_to_ptr.hbm [resolvable:$true] %s2195_s19 }
  0x4a   :  { %336 = vmatpush.bf16.msra.mxu0 %v2508_v4  ;;  %v3391_v20 = vld [vmem:[%s4334_s7] ss:$0 sm:$0xff]  ;;  %v3417_v48 = vld [vmem:[#allocation13 + $0x20] sm:$0xff]  ;;  %v3420_v50 = vld [vmem:[#allocation14 + $0x18] sm:$0xff] }
  0x4b   :  { %519 = vmatpush.bf16.msra.mxu1 %v3353_v5  ;;  %v3408_v45 = vld [vmem:[#allocation14 + $0x28] sm:$0xff]  ;;  %v3423_v51 = vld [vmem:[#allocation13 + $0x18] sm:$0xff]  ;;  %v3426_v52 = vld [vmem:[#allocation14 + $0x10] sm:$0xff] }
  0x4c   :  { %583 = vmatpush.bf16.msra.mxu2 %v3400_v42  ;;  %v3411_v46 = vld [vmem:[#allocation13 + $0x28] sm:$0xff]  ;;  %v3429_v54 = vld [vmem:[#allocation13 + $0x10] sm:$0xff]  ;;  %v3436_v58 = vld [vmem:[#allocation14] sm:$0xff] }
  0x4d   :  { %v3432_v56 = vld [vmem:[#allocation14 + $0x8] sm:$0xff]  ;;  %v3438_v59 = vld [vmem:[#allocation7] sm:$0xff]  ;;  %v2502_v61 = vld [vmem:[#allocation2 + $0x18] sm:$0xff] }
  0x4e   :  { %337 = vmatpush.bf16.msra.mxu0 %v2507_v6  ;;  %v530_v60 = vpack.c.bf16 %v3438_v59, %v3438_v59  ;;  %v3444_v63 = vld [vmem:[#allocation13 + $0x8] sm:$0xff]  ;;  %v3447_v0 = vld [vmem:[#allocation13] sm:$0xff] }
  0x4f   :  { %520 = vmatpush.bf16.msra.mxu1 %v3356_v7 }
  0x50   :  { %584 = vmatpush.bf16.msra.mxu2 %v3408_v45 }
  0x52   :  { %338 = vmatpush.bf16.msra.mxu0 %v2506_v8 }
  0x53   :  { %521 = vmatpush.bf16.msra.mxu1 %v3359_v9 }
  0x54   :  { %585 = vmatpush.bf16.msra.mxu2 %v3414_v47 }
  0x56   :  { %339 = vmatpush.bf16.msra.mxu0 %v2505_v10 }
  0x57   :  { %522 = vmatpush.bf16.msra.mxu1 %v3362_v11 }
  0x58   :  { %586 = vmatpush.bf16.msra.mxu2 %v3420_v50 }
  0x5a   :  { %340 = vmatpush.bf16.msra.mxu0 %v2504_v12 }
  0x5b   :  { %523 = vmatpush.bf16.msra.mxu1 %v3365_v13 }
  0x5c   :  { %587 = vmatpush.bf16.msra.mxu2 %v3426_v52 }
  0x5e   :  { %341 = vmatpush.bf16.msra.mxu0 %v2503_v14 }
  0x5f   :  { %524 = vmatpush.bf16.msra.mxu1 %v3368_v15 }
  0x60   :  { %588 = vmatpush.bf16.msra.mxu2 %v3432_v56 }
  0x61   :  { %342 = vmatmul.bf16.vlgmr.msra.gmra.mxu0 %v2499_v17 }
  0x62   :  { %968 = vmatpush.bf16.msrb.mxu0 %v3347_v1  ;;  %525 = vmatmul.bf16.vlgmr.msra.gmra.mxu1 %v465_v18 }
  0x63   :  { %746 = vmatpush.bf16.msrb.mxu1 %v3402_v43 }
  0x64   :  { %589 = vmatpush.bf16.msra.mxu2 %v3436_v58 }
  0x66   :  { %969 = vmatpush.bf16.msrb.mxu0 %v3350_v3 }
  0x67   :  { %747 = vmatpush.bf16.msrb.mxu1 %v3405_v44  ;;  %590 = vmatmul.bf16.vlgmr.msra.gmra.mxu2 %v530_v60 }
  0x6a   :  { %970 = vmatpush.bf16.msrb.mxu0 %v3353_v5 }
  0x6b   :  { %748 = vmatpush.bf16.msrb.mxu1 %v3411_v46 }
  0x6e   :  { %971 = vmatpush.bf16.msrb.mxu0 %v3356_v7 }
  0x6f   :  { %749 = vmatpush.bf16.msrb.mxu1 %v3417_v48 }
  0x71   :  { %347 = vmatmul.bf16.gmra.mxu0 %v2500_v40 }
  0x72   :  { %972 = vmatpush.bf16.msrb.mxu0 %v3359_v9 }
  0x73   :  { %750 = vmatpush.bf16.msrb.mxu1 %v3423_v51 }
  0x76   :  { %973 = vmatpush.bf16.msrb.mxu0 %v3362_v11 }
  0x77   :  { %751 = vmatpush.bf16.msrb.mxu1 %v3429_v54 }
  0x7a   :  { %974 = vmatpush.bf16.msrb.mxu0 %v3365_v13 }
  0x7b   :  { %752 = vmatpush.bf16.msrb.mxu1 %v3444_v63 }
  0x7e   :  { %975 = vmatpush.bf16.msrb.mxu0 %v3368_v15 }
  0x7f   :  { %753 = vmatpush.bf16.msrb.mxu1 %v3447_v0 }
  0x81   :  { %352 = vmatmul.bf16.gmra.mxu0 %v2501_v49 }
  0x83   :  { %982 = vmatpush.bf16.msra.mxu1 %v3397_v41 }
  0x87   :  { %983 = vmatpush.bf16.msra.mxu1 %v3400_v42 }
  0x8b   :  { %984 = vmatpush.bf16.msra.mxu1 %v3408_v45 }
  0x8f   :  { %985 = vmatpush.bf16.msra.mxu1 %v3414_v47 }
  0x91   :  { %357 = vmatmul.bf16.gmra.mxu0 %v2502_v61 }
  0x93   :  { %986 = vmatpush.bf16.msra.mxu1 %v3420_v50 }
  0x97   :  { %987 = vmatpush.bf16.msra.mxu1 %v3426_v52 }
  0x9b   :  { %988 = vmatpush.bf16.msra.mxu1 %v3432_v56 }
  0x9f   :  { %989 = vmatpush.bf16.msra.mxu1 %v3436_v58 }
  0xde   :  { %v343_v21 = vpop.f32.mrf.mxu0 }
  0xdf   :  { %v526_v22 = vpop.f32.mrf.mxu1  ;;  %v344_v23 = vadd.f32 %v3386_v19, %v343_v21 }
  0xe0   :  { %v527_v24 = vadd.f32 %v3391_v20, %v526_v22 }
  0xe2   :  { %v660_v25 = vadd.f32 %v527_v24, %v344_v23 }
  0xe4   :  { %v2379_v26 = vmul.f32 -1.442695, %v660_v25 }
  0xe6   :  { %2584 = vpow2.f32 %v2379_v26  ;;  %v345_v22 = vpop.f32.mrf.mxu0 }
  0xe7   :  { %v528_v27 = vpop.f32.mrf.mxu1 }
  0xea   :  { %v591_v21 = vpop.f32.mrf.mxu2 }
  0xec   :  { %v2585_v28 = vpop.eup %2584 }
  0xed   :  { %v664_v29 = vadd.f32 1.0, %v2585_v28 }
  0xef   :  { %2586 = vrcp.f32 %v664_v29  ;;  %v676_v33 = vand.u32 2147483648, %v664_v29  ;;  %v674_v35 = vand.u32 2147483647, %v664_v29  ;;  %vm670_vm1 = vweird.f32 %v664_v29 }
  0xf1   :  { %v677_v37 = vor.u32 1.1754944e-38, %v676_v33  ;;  %vm675_vm3 = vcmp.eq.f32.partialorder %v674_v35, 8.507059e+37 }
  0xf5   :  { %v2587_v30 = vpop.eup %2586 }
  0xf6   :  { %v666_v31 = vmul.f32 %v2587_v30, %v664_v29  ;;  %vm671_vm0 = vweird.f32 %v2587_v30  ;;  %v3487_v29 = vld [vmem:[%s4338_s11] ss:$0 sm:$0xff] }
  0xf7   :  { %vm672_vm2 = vmor %vm670_vm1, %vm671_vm0  ;;  %v3498_v33 = vadd.f32 %v3487_v29, %v591_v21 }
  0xf8   :  { %v667_v32 = vsub.f32 1.0, %v666_v31 }
  0xfa   :  { %v668_v34 = vmul.f32 %v2587_v30, %v667_v32  ;;  %v3495_v32 = vadd.f32 %v3386_v19, %v345_v22 }
  0xfc   :  { %v669_v36 = vadd.f32 %v2587_v30, %v668_v34 }
  0xfe   :  { %v673_v38 = vsel %vm672_vm2, %v2587_v30, %v669_v36  ;;  %v3492_v30 = vld [vmem:[%s4337_s10] ss:$0 sm:$0xff] }
  0xff   :  { %v678_v39 = vsel %vm675_vm3, %v677_v37, %v673_v38 }
 0x100   :  { %680 = vrot.lane.b32.xlu0 %v678_v39, %s3165_s29 }
 0x108   :  { %685 = vrot.lane.b32.xlu0 %v678_v39, %s3175_s5 }
 0x172   :  { %v681_v53 = vpop.permute.xlu0 %680 }
 0x173   :  { %v682_v55 = vmul.f32 %v681_v53, %v527_v24 }
 0x175   :  { %v683_v57 = vadd.f32 %v682_v55, %v344_v23  ;;  %v3472_v23 = vpop.f32.mrf.mxu0 }
 0x177   :  { %2588 = vtanh.f32 %v683_v57 }
 0x17a   :  { %v686_v2 = vpop.permute.xlu0 %685 }
 0x17b   :  { %v689_v4 = vsub.f32 1.0, %v686_v2  ;;  %v691_v8 = vmul.f32 %v686_v2, %v3370_v16  ;;  %v593_v16 = vpop.f32.mrf.mxu2 }
 0x17d   :  { %v2589_v62 = vpop.eup %2588  ;;  %v3474_v24 = vpop.f32.mrf.mxu0 }
 0x17e   :  { %687 = vrot.lane.b32.xlu1 %v2589_v62, %s3165_s29  ;;  %4389 = vst [vmem:[#allocation35_spill] sm:$0xff] %v3474_v24 }
 0x185   :  { %v3476_v25 = vpop.f32.mrf.mxu0 }
 0x186   :  { %4390 = vst [vmem:[#allocation36_spill] sm:$0xff] %v3476_v25 }
 0x18d   :  { %v3478_v26 = vpop.f32.mrf.mxu0 }
 0x18e   :  { %4391 = vst [vmem:[#allocation37_spill] sm:$0xff] %v3478_v26 }
 0x195   :  { %v3480_v27 = vpop.f32.mrf.mxu0 }
 0x196   :  { %4392 = vst [vmem:[#allocation38_spill] sm:$0xff] %v3480_v27 }
 0x19d   :  { %v3482_v28 = vpop.f32.mrf.mxu0 }
 0x19e   :  { %4393 = vst [vmem:[#allocation39_spill] sm:$0xff] %v3482_v28 }
 0x1f0   :  { %v688_v6 = vpop.permute.xlu1 %687 }
 0x1f1   :  { %v690_v10 = vmul.f32 %v689_v4, %v688_v6 }
 0x1f3   :  { %v3458_v12 = vadd.f32 %v691_v8, %v690_v10 }
 0x1f5   :  { %v967_v14 = vpack.c.bf16 %v3458_v12, %v3458_v12  ;;  %v693_v17 = vmax.f32 %v3458_v12, 0.0 }
 0x1f7   :  { %976 = vmatmul.bf16.vlgmr.msrb.gmra.mxu0 %v967_v14  ;;  %v694_v18 = vpack.c.bf16 %v693_v17, %v693_v17 }
 0x1f9   :  { %754 = vmatmul.bf16.vlgmr.msrb.gmra.mxu1 %v694_v18 }
 0x1fa   :  { %1138 = vmatpush.bf16.msrb.mxu1 %v3347_v1 }
 0x1fe   :  { %1139 = vmatpush.bf16.msrb.mxu1 %v3350_v3 }
 0x202   :  { %1140 = vmatpush.bf16.msrb.mxu1 %v3353_v5 }
 0x206   :  { %1141 = vmatpush.bf16.msrb.mxu1 %v3356_v7 }
 0x20a   :  { %1142 = vmatpush.bf16.msrb.mxu1 %v3359_v9 }
 0x20e   :  { %1143 = vmatpush.bf16.msrb.mxu1 %v3362_v11 }
 0x212   :  { %1144 = vmatpush.bf16.msrb.mxu1 %v3365_v13 }
 0x216   :  { %1145 = vmatpush.bf16.msrb.mxu1 %v3368_v15 }
 0x274   :  { %v977_v31 = vpop.f32.mrf.mxu0 }
 0x275   :  { %v3501_v34 = vadd.f32 %v3391_v20, %v977_v31 }
 0x276   :  { %v755_v35 = vpop.f32.mrf.mxu1 }
 0x277   :  { %v1008_v36 = vadd.f32 %v3501_v34, %v3495_v32  ;;  %v3506_v37 = vadd.f32 %v3492_v30, %v755_v35 }
 0x279   :  { %v2478_v38 = vmul.f32 -1.442695, %v1008_v36  ;;  %v759_v39 = vadd.f32 %v3506_v37, %v3498_v33 }
 0x27b   :  { %2590 = vpow2.f32 %v2478_v38  ;;  %v2412_v40 = vmul.f32 -1.442695, %v759_v39 }
 0x27c   :  { %v979_v49 = vpop.f32.mrf.mxu0 }
 0x27d   :  { %2592 = vpow2.f32 %v2412_v40 }
 0x27e   :  { %v757_v53 = vpop.f32.mrf.mxu1 }
 0x281   :  { %v2591_v55 = vpop.eup %2590 }
 0x282   :  { %v1012_v57 = vadd.f32 1.0, %v2591_v55  ;;  %v3514_v55 = vld [vmem:[#allocation17 + $0x38] sm:$0xff] }
 0x283   :  { %v2593_v60 = vpop.eup %2592  ;;  %647 = vmatpush.bf16.msra.mxu3 %v3514_v55 }
 0x284   :  { %2594 = vrcp.f32 %v1012_v57  ;;  %v763_v61 = vadd.f32 1.0, %v2593_v60  ;;  %v1024_v38 = vand.u32 2147483648, %v1012_v57  ;;  %vm1018_vm9 = vweird.f32 %v1012_v57  ;;  %v3516_v60 = vld [vmem:[#allocation16 + $0x38] sm:$0xff] }
 0x285   :  { %v1022_v39 = vand.u32 2147483647, %v1012_v57  ;;  %845 = vmatpush.bf16.msrb.mxu2 %v3516_v60  ;;  %1091 = vmatpush.bf16.msra.mxu0 %v3516_v60 }
 0x286   :  { %2596 = vrcp.f32 %v763_v61  ;;  %v775_v14 = vand.u32 2147483648, %v763_v61  ;;  %v773_v18 = vand.u32 2147483647, %v763_v61  ;;  %vm769_vm5 = vweird.f32 %v763_v61 }
 0x287   :  { %v1025_v49 = vor.u32 1.1754944e-38, %v1024_v38  ;;  %vm1023_vm11 = vcmp.eq.f32.partialorder %v1022_v39, 8.507059e+37  ;;  %v3573_v38 = vld [vmem:[#allocation16] sm:$0xff] }
 0x288   :  { %v776_v22 = vor.u32 1.1754944e-38, %v775_v14  ;;  %vm774_vm7 = vcmp.eq.f32.partialorder %v773_v18, 8.507059e+37  ;;  %v3543_v14 = vld [vmem:[#allocation16 + $0x18] sm:$0xff]  ;;  %4399 = vst [vmem:[#allocation45_spill] sm:$0xff] %v3573_v38 }
 0x289   :  { %4396 = vst [vmem:[#allocation42_spill] sm:$0xff] %v3543_v14 }
 0x28a   :  { %v2595_v62 = vpop.eup %2594 }
 0x28b   :  { %v1014_v2 = vmul.f32 %v2595_v62, %v1012_v57  ;;  %vm1019_vm8 = vweird.f32 %v2595_v62  ;;  %v3522_v57 = vld [vmem:[#allocation16 + $0x30] sm:$0xff] }
 0x28c   :  { %v2597_v4 = vpop.eup %2596  ;;  %vm1020_vm10 = vmor %vm1018_vm9, %vm1019_vm8  ;;  %846 = vmatpush.bf16.msrb.mxu2 %v3522_v57  ;;  %1092 = vmatpush.bf16.msra.mxu0 %v3522_v57 }
 0x28d   :  { %v765_v6 = vmul.f32 %v2597_v4, %v763_v61  ;;  %v1015_v10 = vsub.f32 1.0, %v1014_v2  ;;  %vm770_vm4 = vweird.f32 %v2597_v4  ;;  %v3519_v61 = vld [vmem:[#allocation17 + $0x30] sm:$0xff]  ;;  %v3529_v2 = vld [vmem:[#allocation16 + $0x28] sm:$0xff] }
 0x28e   :  { %vm771_vm6 = vmor %vm769_vm5, %vm770_vm4  ;;  %648 = vmatpush.bf16.msra.mxu3 %v3519_v61  ;;  %4394 = vst [vmem:[#allocation40_spill] sm:$0xff] %v3529_v2 }
 0x28f   :  { %v766_v8 = vsub.f32 1.0, %v765_v6  ;;  %v1016_v16 = vmul.f32 %v2595_v62, %v1015_v10  ;;  %v3536_v6 = vld [vmem:[#allocation16 + $0x20] sm:$0xff] }
 0x290   :  { %847 = vmatpush.bf16.msrb.mxu2 %v3529_v2  ;;  %4395 = vst [vmem:[#allocation41_spill] sm:$0xff] %v3536_v6  ;;  %1093 = vmatpush.bf16.msra.mxu0 %v3529_v2 }
 0x291   :  { %v767_v17 = vmul.f32 %v2597_v4, %v766_v8  ;;  %v1017_v36 = vadd.f32 %v2595_v62, %v1016_v16  ;;  %v3540_v8 = vld [vmem:[#allocation17 + $0x18] sm:$0xff]  ;;  %v3552_v16 = vld [vmem:[#allocation16 + $0x10] sm:$0xff] }
 0x292   :  { %4397 = vst [vmem:[#allocation43_spill] sm:$0xff] %v3552_v16 }
 0x293   :  { %v768_v21 = vadd.f32 %v2597_v4, %v767_v17  ;;  %v1021_v40 = vsel %vm1020_vm10, %v2595_v62, %v1017_v36  ;;  %v3526_v62 = vld [vmem:[#allocation17 + $0x28] sm:$0xff] }
 0x294   :  { %v1026_v53 = vsel %vm1023_vm11, %v1025_v49, %v1021_v40  ;;  %649 = vmatpush.bf16.msra.mxu3 %v3526_v62  ;;  %848 = vmatpush.bf16.msrb.mxu2 %v3536_v6  ;;  %v3569_v36 = vld [vmem:[#allocation16 + $0x8] sm:$0xff] }
 0x295   :  { %v772_v31 = vsel %vm771_vm6, %v2597_v4, %v768_v21  ;;  %v3533_v4 = vld [vmem:[#allocation17 + $0x20] sm:$0xff]  ;;  %1094 = vmatpush.bf16.msra.mxu0 %v3536_v6  ;;  %v3549_v21 = vld [vmem:[#allocation17 + $0x10] sm:$0xff]  ;;  %4398 = vst [vmem:[#allocation44_spill] sm:$0xff] %v3569_v36 }
 0x296   :  { %v777_v35 = vsel %vm774_vm7, %v776_v22, %v772_v31  ;;  %v3556_v22 = vld [vmem:[#allocation17 + $0x8] sm:$0xff]  ;;  %v3565_v31 = vld [vmem:[#allocation8] sm:$0xff] }
 0x297   :  { %784 = vrot.lane.b32.xlu2 %v777_v35, %s3175_s5  ;;  %779 = vrot.lane.b32.xlu1 %v777_v35, %s3165_s29  ;;  %v595_v35 = vpack.c.bf16 %v3565_v31, %v3565_v31 }
 0x298   :  { %650 = vmatpush.bf16.msra.mxu3 %v3533_v4  ;;  %849 = vmatpush.bf16.msrb.mxu2 %v3543_v14 }
 0x299   :  { %1095 = vmatpush.bf16.msra.mxu0 %v3543_v14 }
 0x29c   :  { %651 = vmatpush.bf16.msra.mxu3 %v3540_v8  ;;  %850 = vmatpush.bf16.msrb.mxu2 %v3552_v16 }
 0x29d   :  { %1096 = vmatpush.bf16.msra.mxu0 %v3552_v16 }
 0x29f   :  { %1028 = vrot.lane.b32.xlu1 %v1026_v53, %s3165_s29 }
 0x2a0   :  { %652 = vmatpush.bf16.msra.mxu3 %v3549_v21  ;;  %851 = vmatpush.bf16.msrb.mxu2 %v3569_v36 }
 0x2a1   :  { %1097 = vmatpush.bf16.msra.mxu0 %v3569_v36 }
 0x2a4   :  { %653 = vmatpush.bf16.msra.mxu3 %v3556_v22  ;;  %852 = vmatpush.bf16.msrb.mxu2 %v3573_v38 }
 0x2a5   :  { %1098 = vmatpush.bf16.msra.mxu0 %v3573_v38 }
 0x2a7   :  { %1033 = vrot.lane.b32.xlu1 %v1026_v53, %s3175_s5 }
 0x2a8   :  { %995 = vmatpush.bf16.msra.mxu2 %v3514_v55 }
 0x2a9   :  { %1214 = vmatpush.bf16.msrb.mxu0 %v3402_v43 }
 0x2ac   :  { %996 = vmatpush.bf16.msra.mxu2 %v3519_v61 }
 0x2ad   :  { %1215 = vmatpush.bf16.msrb.mxu0 %v3405_v44 }
 0x2b0   :  { %997 = vmatpush.bf16.msra.mxu2 %v3526_v62 }
 0x2b1   :  { %1216 = vmatpush.bf16.msrb.mxu0 %v3411_v46 }
 0x2b4   :  { %998 = vmatpush.bf16.msra.mxu2 %v3533_v4 }
 0x2b5   :  { %1217 = vmatpush.bf16.msrb.mxu0 %v3417_v48 }
 0x2b8   :  { %999 = vmatpush.bf16.msra.mxu2 %v3540_v8 }
 0x2b9   :  { %1218 = vmatpush.bf16.msrb.mxu0 %v3423_v51 }
 0x2bc   :  { %1000 = vmatpush.bf16.msra.mxu2 %v3549_v21 }
 0x2bd   :  { %1219 = vmatpush.bf16.msrb.mxu0 %v3429_v54 }
 0x2c0   :  { %1001 = vmatpush.bf16.msra.mxu2 %v3556_v22 }
 0x2c1   :  { %1220 = vmatpush.bf16.msrb.mxu0 %v3444_v63 }
 0x2c5   :  { %1221 = vmatpush.bf16.msrb.mxu0 %v3447_v0 }
 0x2f1   :  { %v785_v39 = vpop.permute.xlu2 %784 }
 0x2f2   :  { %v788_v40 = vsub.f32 1.0, %v785_v39  ;;  %v790_v53 = vmul.f32 %v785_v39, %v3438_v59 }
 0x309   :  { %v780_v10 = vpop.permute.xlu1 %779 }
 0x30a   :  { %v781_v17 = vmul.f32 %v780_v10, %v3498_v33 }
 0x30c   :  { %v782_v18 = vadd.f32 %v781_v17, %v3506_v37  ;;  %v3561_v37 = vld [vmem:[#allocation17] sm:$0xff] }
 0x30d   :  { %654 = vmatpush.bf16.msra.mxu3 %v3561_v37  ;;  %1002 = vmatpush.bf16.msra.mxu2 %v3561_v37 }
 0x30e   :  { %2598 = vtanh.f32 %v782_v18 }
 0x310   :  { %655 = vmatmul.bf16.vlgmr.msra.gmra.mxu3 %v595_v35 }
 0x314   :  { %v2599_v33 = vpop.eup %2598 }
 0x315   :  { %786 = vrot.lane.b32.xlu2 %v2599_v33, %s3165_s29 }
 0x36f   :  { %v787_v49 = vpop.permute.xlu2 %786 }
 0x370   :  { %v789_v10 = vmul.f32 %v788_v40, %v787_v49  ;;  %v3620_v49 = vld [vmem:[%s4342_s15] ss:$0 sm:$0xff] }
 0x372   :  { %v3592_v17 = vadd.f32 %v790_v53, %v789_v10  ;;  %v3625_v53 = vld [vmem:[%s4341_s14] ss:$0 sm:$0xff] }
 0x374   :  { %v981_v18 = vpack.c.bf16 %v3592_v17, %v3592_v17  ;;  %v792_v33 = vmax.f32 %v3592_v17, 0.0 }
 0x376   :  { %990 = vmatmul.bf16.vlgmr.msra.gmra.mxu1 %v981_v18  ;;  %v793_v35 = vpack.c.bf16 %v792_v33, %v792_v33 }
 0x377   :  { %1262 = vmatpush.bf16.msra.mxu1 %v3516_v60 }
 0x378   :  { %853 = vmatmul.bf16.vlgmr.msrb.gmra.mxu2 %v793_v35 }
 0x379   :  { %1152 = vmatpush.bf16.msrb.mxu2 %v3397_v41 }
 0x37b   :  { %1263 = vmatpush.bf16.msra.mxu1 %v3522_v57 }
 0x37d   :  { %1153 = vmatpush.bf16.msrb.mxu2 %v3400_v42 }
 0x37f   :  { %1264 = vmatpush.bf16.msra.mxu1 %v3529_v2 }
 0x381   :  { %1154 = vmatpush.bf16.msrb.mxu2 %v3408_v45 }
 0x383   :  { %1265 = vmatpush.bf16.msra.mxu1 %v3536_v6 }
 0x385   :  { %1155 = vmatpush.bf16.msrb.mxu2 %v3414_v47 }
 0x387   :  { %1266 = vmatpush.bf16.msra.mxu1 %v3543_v14 }
 0x389   :  { %1156 = vmatpush.bf16.msrb.mxu2 %v3420_v50 }
 0x38b   :  { %1267 = vmatpush.bf16.msra.mxu1 %v3552_v16 }
 0x38d   :  { %1157 = vmatpush.bf16.msrb.mxu2 %v3426_v52 }
 0x38f   :  { %1268 = vmatpush.bf16.msra.mxu1 %v3569_v36 }
 0x391   :  { %1158 = vmatpush.bf16.msrb.mxu2 %v3432_v56 }
 0x393   :  { %1269 = vmatpush.bf16.msra.mxu1 %v3573_v38  ;;  %v656_v59 = vpop.f32.mrf.mxu3  ;;  %v1029_v38 = vpop.permute.xlu1 %1028 }
 0x394   :  { %v657_v10 = vadd.f32 %v3620_v49, %v656_v59  ;;  %v1030_v14 = vmul.f32 %v1029_v38, %v3501_v34  ;;  %v2558_v38 = vld [vmem:[#allocation19 + $0x38] sm:$0xff] }
 0x395   :  { %1159 = vmatpush.bf16.msrb.mxu2 %v3436_v58  ;;  %943 = vmatpush.bf16.msrb.mxu3 %v2558_v38  ;;  %v2551_v38 = vld [vmem:[#allocation19] sm:$0xff] }
 0x39b   :  { %v658_v39 = vpop.f32.mrf.mxu3 }
 0x3f3   :  { %v3615_v40 = vpop.f32.mrf.mxu1 }
 0x3fb   :  { %v854_v18 = vpop.f32.mrf.mxu2  ;;  %v993_v33 = vpop.f32.mrf.mxu1 }
 0x3fc   :  { %v855_v35 = vadd.f32 %v3625_v53, %v854_v18  ;;  %v1031_v18 = vadd.f32 %v1030_v14, %v3495_v32  ;;  %v2556_v14 = vld [vmem:[#allocation19 + $0x28] sm:$0xff] }
 0x3fe   :  { %v858_v28 = vadd.f32 %v855_v35, %v657_v10 }
 0x400   :  { %v2445_v39 = vmul.f32 -1.442695, %v858_v28 }
 0x402   :  { %2600 = vpow2.f32 %v2445_v39 }
 0x403   :  { %v856_v27 = vpop.f32.mrf.mxu2 }
 0x408   :  { %v2601_v26 = vpop.eup %2600 }
 0x409   :  { %v862_v25 = vadd.f32 1.0, %v2601_v26 }
 0x40b   :  { %2602 = vrcp.f32 %v862_v25  ;;  %v874_v6 = vand.u32 2147483648, %v862_v25  ;;  %v872_v59 = vand.u32 2147483647, %v862_v25  ;;  %vm868_vm13 = vweird.f32 %v862_v25 }
 0x40c   :  { %2604 = vtanh.f32 %v1031_v18  ;;  %v2554_v18 = vld [vmem:[#allocation19 + $0x18] sm:$0xff] }
 0x40d   :  { %v875_v28 = vor.u32 1.1754944e-38, %v874_v6  ;;  %vm873_vm15 = vcmp.eq.f32.partialorder %v872_v59, 8.507059e+37 }
 0x411   :  { %v2603_v24 = vpop.eup %2602 }
 0x412   :  { %v864_v36 = vmul.f32 %v2603_v24, %v862_v25  ;;  %vm869_vm12 = vweird.f32 %v2603_v24  ;;  %v2557_v25 = vld [vmem:[#allocation19 + $0x30] sm:$0xff] }
 0x413   :  { %vm870_vm14 = vmor %vm868_vm13, %vm869_vm12  ;;  %944 = vmatpush.bf16.msrb.mxu3 %v2557_v25 }
 0x414   :  { %v865_v16 = vsub.f32 1.0, %v864_v36  ;;  %v2605_v36 = vpop.eup %2604 }
 0x416   :  { %v866_v2 = vmul.f32 %v2603_v24, %v865_v16  ;;  %v1034_v16 = vpop.permute.xlu1 %1033 }
 0x417   :  { %v1039_v6 = vmul.f32 %v1034_v16, %v3458_v12  ;;  %945 = vmatpush.bf16.msrb.mxu3 %v2556_v14 }
 0x418   :  { %v867_v33 = vadd.f32 %v2603_v24, %v866_v2  ;;  %v1037_v2 = vsub.f32 1.0, %v1034_v16 }
 0x41a   :  { %v871_v27 = vsel %vm870_vm14, %v2603_v24, %v867_v33  ;;  %v2555_v33 = vld [vmem:[#allocation19 + $0x20] sm:$0xff] }
 0x41b   :  { %v876_v26 = vsel %vm873_vm15, %v875_v28, %v871_v27  ;;  %946 = vmatpush.bf16.msrb.mxu3 %v2555_v33  ;;  %v2553_v28 = vld [vmem:[#allocation19 + $0x10] sm:$0xff] }
 0x41c   :  { %883 = vrot.lane.b32.xlu2 %v876_v26, %s3175_s5  ;;  %878 = vrot.lane.b32.xlu0 %v876_v26, %s3165_s29  ;;  %v2552_v26 = vld [vmem:[#allocation19 + $0x8] sm:$0xff] }
 0x41f   :  { %947 = vmatpush.bf16.msrb.mxu3 %v2554_v18 }
 0x423   :  { %948 = vmatpush.bf16.msrb.mxu3 %v2553_v28 }
 0x424   :  { %1035 = vrot.lane.b32.xlu2 %v2605_v36, %s3165_s29 }
 0x427   :  { %949 = vmatpush.bf16.msrb.mxu3 %v2552_v26 }
 0x42b   :  { %950 = vmatpush.bf16.msrb.mxu3 %v2551_v38 }
 0x42f   :  { %1043 = vmatpush.bf16.msra.mxu3 %v3402_v43 }
 0x433   :  { %1044 = vmatpush.bf16.msra.mxu3 %v3405_v44 }
 0x437   :  { %1045 = vmatpush.bf16.msra.mxu3 %v3411_v46 }
 0x43b   :  { %1046 = vmatpush.bf16.msra.mxu3 %v3417_v48 }
 0x43f   :  { %1047 = vmatpush.bf16.msra.mxu3 %v3423_v51 }
 0x443   :  { %1048 = vmatpush.bf16.msra.mxu3 %v3429_v54 }
 0x447   :  { %1049 = vmatpush.bf16.msra.mxu3 %v3444_v63 }
 0x44b   :  { %1050 = vmatpush.bf16.msra.mxu3 %v3447_v0 }
 0x476   :  { %v884_v34 = vpop.permute.xlu2 %883 }
 0x47e   :  { %v1036_v32 = vpop.permute.xlu2 %1035 }
 0x47f   :  { %v1038_v24 = vmul.f32 %v1037_v2, %v1036_v32 }
 0x481   :  { %v3635_v39 = vadd.f32 %v1039_v6, %v1038_v24  ;;  %v887_v24 = vsub.f32 1.0, %v884_v34 }
 0x483   :  { %v1137_v59 = vpack.c.bf16 %v3635_v39, %v3635_v39 }
 0x485   :  { %1146 = vmatmul.bf16.vlgmr.msrb.gmra.mxu1 %v1137_v59  ;;  %v889_v59 = vmul.f32 %v884_v34, %v3565_v31 }
 0x486   :  { %1385 = vmatpush.bf16.msrb.mxu1 %v3402_v43 }
 0x48a   :  { %1386 = vmatpush.bf16.msrb.mxu1 %v3405_v44 }
 0x48e   :  { %v879_v12 = vpop.permute.xlu0 %878  ;;  %1387 = vmatpush.bf16.msrb.mxu1 %v3411_v46 }
 0x48f   :  { %v880_v27 = vmul.f32 %v879_v12, %v657_v10 }
 0x491   :  { %v881_v36 = vadd.f32 %v880_v27, %v855_v35  ;;  %v3658_v35 = vadd.f32 %v3386_v19, %v3472_v23  ;;  %v1041_v27 = vmax.f32 %v3635_v39, 0.0 }
 0x492   :  { %1388 = vmatpush.bf16.msrb.mxu1 %v3417_v48 }
 0x493   :  { %2606 = vtanh.f32 %v881_v36  ;;  %v1042_v38 = vpack.c.bf16 %v1041_v27, %v1041_v27 }
 0x496   :  { %1389 = vmatpush.bf16.msrb.mxu1 %v3423_v51 }
 0x499   :  { %v2607_v16 = vpop.eup %2606 }
 0x49a   :  { %885 = vrot.lane.b32.xlu0 %v2607_v16, %s3165_s29  ;;  %1390 = vmatpush.bf16.msrb.mxu1 %v3429_v54 }
 0x49e   :  { %1391 = vmatpush.bf16.msrb.mxu1 %v3444_v63 }
 0x4a2   :  { %1392 = vmatpush.bf16.msrb.mxu1 %v3447_v0 }
 0x502   :  { %v1147_v10 = vpop.f32.mrf.mxu1 }
 0x503   :  { %v3661_v25 = vadd.f32 %v3391_v20, %v1147_v10 }
 0x505   :  { %v1179_v2 = vadd.f32 %v3661_v25, %v3658_v35 }
 0x507   :  { %v2481_v32 = vmul.f32 -1.442695, %v1179_v2 }
 0x509   :  { %2608 = vpow2.f32 %v2481_v32 }
 0x50a   :  { %v1149_v6 = vpop.f32.mrf.mxu1 }
 0x50c   :  { %v886_v14 = vpop.permute.xlu0 %885 }
 0x50d   :  { %v888_v33 = vmul.f32 %v887_v24, %v886_v14 }
 0x50f   :  { %v2609_v18 = vpop.eup %2608  ;;  %v3666_v28 = vadd.f32 %v889_v59, %v888_v33 }
 0x510   :  { %v1183_v12 = vadd.f32 1.0, %v2609_v18 }
 0x511   :  { %v891_v19 = vpack.c.bf16 %v3666_v28, %v3666_v28 }
 0x512   :  { %2610 = vrcp.f32 %v1183_v12  ;;  %v1195_v34 = vand.u32 2147483648, %v1183_v12  ;;  %v1193_v36 = vand.u32 2147483647, %v1183_v12  ;;  %vm1189_vm1 = vweird.f32 %v1183_v12 }
 0x513   :  { %951 = vmatmul.bf16.vlgmr.msrb.gmra.mxu3 %v891_v19  ;;  %1003 = vmatmul.bf16.vlgmr.msra.gmra.mxu2 %v891_v19 }
 0x514   :  { %1309 = vmatpush.bf16.msra.mxu2 %v3347_v1  ;;  %1166 = vmatpush.bf16.msrb.mxu3 %v3514_v55  ;;  %v1196_v16 = vor.u32 1.1754944e-38, %v1195_v34  ;;  %vm1194_vm3 = vcmp.eq.f32.partialorder %v1193_v36, 8.507059e+37 }
 0x518   :  { %v2611_v20 = vpop.eup %2610  ;;  %1310 = vmatpush.bf16.msra.mxu2 %v3350_v3  ;;  %1167 = vmatpush.bf16.msrb.mxu3 %v3519_v61 }
 0x519   :  { %v1185_v23 = vmul.f32 %v2611_v20, %v1183_v12  ;;  %vm1190_vm0 = vweird.f32 %v2611_v20 }
 0x51a   :  { %vm1191_vm2 = vmor %vm1189_vm1, %vm1190_vm0 }
 0x51b   :  { %v1186_v31 = vsub.f32 1.0, %v1185_v23 }
 0x51c   :  { %1311 = vmatpush.bf16.msra.mxu2 %v3353_v5  ;;  %1168 = vmatpush.bf16.msrb.mxu3 %v3526_v62 }
 0x51d   :  { %v1187_v26 = vmul.f32 %v2611_v20, %v1186_v31 }
 0x51f   :  { %v1188_v1 = vadd.f32 %v2611_v20, %v1187_v26 }
 0x520   :  { %1312 = vmatpush.bf16.msra.mxu2 %v3356_v7  ;;  %1169 = vmatpush.bf16.msrb.mxu3 %v3533_v4 }
 0x521   :  { %v1192_v3 = vsel %vm1191_vm2, %v2611_v20, %v1188_v1 }
 0x522   :  { %v1197_v10 = vsel %vm1194_vm3, %v1196_v16, %v1192_v3 }
 0x523   :  { %1199 = vrot.lane.b32.xlu1 %v1197_v10, %s3165_s29  ;;  %1051 = vmatmul.bf16.vlgmr.msra.gmra.mxu3 %v1042_v38 }
 0x524   :  { %1313 = vmatpush.bf16.msra.mxu2 %v3359_v9  ;;  %1170 = vmatpush.bf16.msrb.mxu3 %v3540_v8 }
 0x528   :  { %1314 = vmatpush.bf16.msra.mxu2 %v3362_v11  ;;  %1171 = vmatpush.bf16.msrb.mxu3 %v3549_v21 }
 0x52b   :  { %1204 = vrot.lane.b32.xlu1 %v1197_v10, %s3175_s5 }
 0x52c   :  { %1315 = vmatpush.bf16.msra.mxu2 %v3365_v13  ;;  %1172 = vmatpush.bf16.msrb.mxu3 %v3556_v22 }
 0x530   :  { %1316 = vmatpush.bf16.msra.mxu2 %v3368_v15  ;;  %1173 = vmatpush.bf16.msrb.mxu3 %v3561_v37  ;;  %v992_v15 = vadd.f32 %v3487_v29, %v3615_v40 }
 0x534   :  { %1323 = vmatpush.bf16.msra.mxu3 %v3397_v41 }
 0x538   :  { %1324 = vmatpush.bf16.msra.mxu3 %v3400_v42 }
 0x53c   :  { %1325 = vmatpush.bf16.msra.mxu3 %v3408_v45 }
 0x540   :  { %1326 = vmatpush.bf16.msra.mxu3 %v3414_v47 }
 0x544   :  { %1327 = vmatpush.bf16.msra.mxu3 %v3420_v50 }
 0x548   :  { %1328 = vmatpush.bf16.msra.mxu3 %v3426_v52 }
 0x54c   :  { %1329 = vmatpush.bf16.msra.mxu3 %v3432_v56 }
 0x550   :  { %1330 = vmatpush.bf16.msra.mxu3 %v3436_v58 }
 0x595   :  { %v1200_v18 = vpop.permute.xlu1 %1199 }
 0x596   :  { %v3697_v5 = vpop.f32.mrf.mxu3  ;;  %v3699_v7 = vpop.f32.mrf.mxu2  ;;  %v1201_v20 = vmul.f32 %v1200_v18, %v3661_v25 }
 0x597   :  { %4400 = vst [vmem:[#allocation46_spill] sm:$0xff] %v3697_v5 }
 0x598   :  { %v1202_v27 = vadd.f32 %v1201_v20, %v3658_v35 }
 0x59e   :  { %v954_v9 = vpop.f32.mrf.mxu3  ;;  %v1006_v11 = vpop.f32.mrf.mxu2 }
 0x5a6   :  { %v1052_v13 = vpop.f32.mrf.mxu3 }
 0x5a7   :  { %v1053_v2 = vadd.f32 %v3492_v30, %v1052_v13 }
 0x5a9   :  { %v1056_v32 = vadd.f32 %v1053_v2, %v992_v15 }
 0x5ab   :  { %v2479_v6 = vmul.f32 -1.442695, %v1056_v32 }
 0x5ad   :  { %2612 = vpow2.f32 %v2479_v6 }
 0x5ae   :  { %v1054_v24 = vpop.f32.mrf.mxu3 }
 0x5b3   :  { %v2613_v14 = vpop.eup %2612 }
 0x5b4   :  { %v1060_v59 = vadd.f32 1.0, %v2613_v14 }
 0x5b6   :  { %2614 = vrcp.f32 %v1060_v59  ;;  %v1072_v23 = vand.u32 2147483648, %v1060_v59  ;;  %v1070_v34 = vand.u32 2147483647, %v1060_v59  ;;  %vm1066_vm5 = vweird.f32 %v1060_v59 }
 0x5b7   :  { %2616 = vtanh.f32 %v1202_v27  ;;  %v4405_v27 = vld [vmem:[#allocation44_spill] sm:$0xff] }
 0x5b8   :  { %v1073_v26 = vor.u32 1.1754944e-38, %v1072_v23  ;;  %vm1071_vm7 = vcmp.eq.f32.partialorder %v1070_v34, 8.507059e+37  ;;  %v4402_v23 = vld [vmem:[#allocation41_spill] sm:$0xff] }
 0x5bc   :  { %v2615_v33 = vpop.eup %2614 }
 0x5bd   :  { %v1062_v12 = vmul.f32 %v2615_v33, %v1060_v59  ;;  %vm1067_vm4 = vweird.f32 %v2615_v33  ;;  %v2617_v16 = vpop.eup %2616  ;;  %v1205_v59 = vpop.permute.xlu1 %1204 }
 0x5be   :  { %vm1068_vm6 = vmor %vm1066_vm5, %vm1067_vm4 }
 0x5bf   :  { %v1063_v19 = vsub.f32 1.0, %v1062_v12 }
 0x5c1   :  { %v1064_v31 = vmul.f32 %v2615_v33, %v1063_v19  ;;  %v4401_v19 = vld [vmem:[#allocation40_spill] sm:$0xff] }
 0x5c3   :  { %v1065_v40 = vadd.f32 %v2615_v33, %v1064_v31 }
 0x5c5   :  { %v1069_v36 = vsel %vm1068_vm6, %v2615_v33, %v1065_v40  ;;  %v1208_v33 = vsub.f32 1.0, %v1205_v59  ;;  %v4404_v40 = vld [vmem:[#allocation43_spill] sm:$0xff] }
 0x5c6   :  { %v1074_v1 = vsel %vm1071_vm7, %v1073_v26, %v1069_v36  ;;  %v4406_v26 = vld [vmem:[#allocation45_spill] sm:$0xff] }
 0x5c7   :  { %1081 = vrot.lane.b32.xlu2 %v1074_v1, %s3175_s5  ;;  %1076 = vrot.lane.b32.xlu0 %v1074_v1, %s3165_s29 }
 0x5cf   :  { %1206 = vrot.lane.b32.xlu2 %v2617_v16, %s3165_s29 }
 0x621   :  { %v1082_v35 = vpop.permute.xlu2 %1081 }
 0x622   :  { %v1085_v9 = vsub.f32 1.0, %v1082_v35  ;;  %v1087_v13 = vmul.f32 %v1082_v35, %v3592_v17  ;;  %v1210_v17 = vmul.f32 %v1205_v59, %v3635_v39  ;;  %v4403_v39 = vld [vmem:[#allocation42_spill] sm:$0xff] }
 0x639   :  { %v1077_v25 = vpop.permute.xlu0 %1076 }
 0x63a   :  { %v1078_v3 = vmul.f32 %v1077_v25, %v992_v15 }
 0x63c   :  { %v1079_v38 = vadd.f32 %v1078_v3, %v1053_v2  ;;  %v1207_v2 = vpop.permute.xlu2 %1206 }
 0x63d   :  { %v1209_v18 = vmul.f32 %v1208_v33, %v1207_v2 }
 0x63e   :  { %2618 = vtanh.f32 %v1079_v38 }
 0x63f   :  { %v3721_v12 = vadd.f32 %v1210_v17, %v1209_v18 }
 0x641   :  { %v1212_v20 = vmax.f32 %v3721_v12, 0.0  ;;  %v1308_v31 = vpack.c.bf16 %v3721_v12, %v3721_v12 }
 0x643   :  { %v1213_v34 = vpack.c.bf16 %v1212_v20, %v1212_v20 }
 0x644   :  { %v2619_v10 = vpop.eup %2618 }
 0x645   :  { %1083 = vrot.lane.b32.xlu0 %v2619_v10, %s3165_s29 }
 0x6b7   :  { %v1084_v11 = vpop.permute.xlu0 %1083 }
 0x6b8   :  { %v1086_v32 = vmul.f32 %v1085_v9, %v1084_v11 }
 0x6ba   :  { %v3711_v6 = vadd.f32 %v1087_v13, %v1086_v32 }
 0x6bc   :  { %v1089_v24 = vmax.f32 %v3711_v6, 0.0  ;;  %v1151_v14 = vpack.c.bf16 %v3711_v6, %v3711_v6 }
 0x6be   :  { %1160 = vmatmul.bf16.vlgmr.msrb.gmra.mxu2 %v1151_v14  ;;  %v1090_v15 = vpack.c.bf16 %v1089_v24, %v1089_v24 }
 0x6bf   :  { %1433 = vmatpush.bf16.msrb.mxu2 %v3516_v60 }
 0x6c0   :  { %1099 = vmatmul.bf16.vlgmr.msra.gmra.mxu0 %v1090_v15 }
 0x6c1   :  { %1337 = vmatpush.bf16.msra.mxu0 %v3514_v55 }
 0x6c3   :  { %1434 = vmatpush.bf16.msrb.mxu2 %v3522_v57 }
 0x6c5   :  { %1338 = vmatpush.bf16.msra.mxu0 %v3519_v61 }
 0x6c7   :  { %1435 = vmatpush.bf16.msrb.mxu2 %v4401_v19 }
 0x6c9   :  { %1339 = vmatpush.bf16.msra.mxu0 %v3526_v62 }
 0x6cb   :  { %1436 = vmatpush.bf16.msrb.mxu2 %v4402_v23 }
 0x6cd   :  { %1340 = vmatpush.bf16.msra.mxu0 %v3533_v4 }
 0x6ce   :  { %1317 = vmatmul.bf16.vlgmr.msra.gmra.mxu2 %v1308_v31 }
 0x6cf   :  { %1437 = vmatpush.bf16.msrb.mxu2 %v4403_v39 }
 0x6d0   :  { %1222 = vmatmul.bf16.vlgmr.msrb.gmra.mxu0 %v1213_v34 }
 0x6d1   :  { %1341 = vmatpush.bf16.msra.mxu0 %v3540_v8 }
 0x6d3   :  { %1438 = vmatpush.bf16.msrb.mxu2 %v4404_v40 }
 0x6d5   :  { %1342 = vmatpush.bf16.msra.mxu0 %v3549_v21 }
 0x6d7   :  { %1439 = vmatpush.bf16.msrb.mxu2 %v4405_v27 }
 0x6d9   :  { %1343 = vmatpush.bf16.msra.mxu0 %v3556_v22 }
 0x6db   :  { %1440 = vmatpush.bf16.msrb.mxu2 %v4406_v26 }
 0x6dd   :  { %1344 = vmatpush.bf16.msra.mxu0 %v3561_v37 }
 0x6df   :  { %1556 = vmatpush.bf16.msra.mxu2 %v3402_v43 }
 0x6e1   :  { %1494 = vmatpush.bf16.msrb.mxu0 %v3397_v41 }
 0x6e3   :  { %1557 = vmatpush.bf16.msra.mxu2 %v3405_v44 }
 0x6e5   :  { %1495 = vmatpush.bf16.msrb.mxu0 %v3400_v42  ;;  %v3756_v42 = vadd.f32 %v3620_v49, %v3699_v7  ;;  %v4408_v7 = vld [vmem:[#allocation35_spill] sm:$0xff] }
 0x6e7   :  { %1558 = vmatpush.bf16.msra.mxu2 %v3411_v46 }
 0x6e9   :  { %1496 = vmatpush.bf16.msrb.mxu0 %v3408_v45 }
 0x6eb   :  { %1559 = vmatpush.bf16.msra.mxu2 %v3417_v48 }
 0x6ed   :  { %1497 = vmatpush.bf16.msrb.mxu0 %v3414_v47 }
 0x6ef   :  { %1560 = vmatpush.bf16.msra.mxu2 %v3423_v51 }
 0x6f1   :  { %1498 = vmatpush.bf16.msrb.mxu0 %v3420_v50 }
 0x6f3   :  { %1561 = vmatpush.bf16.msra.mxu2 %v3429_v54 }
 0x6f5   :  { %1499 = vmatpush.bf16.msrb.mxu0 %v3426_v52 }
 0x6f7   :  { %1562 = vmatpush.bf16.msra.mxu2 %v3444_v63 }
 0x6f9   :  { %1500 = vmatpush.bf16.msrb.mxu0 %v3432_v56 }
 0x6fb   :  { %1563 = vmatpush.bf16.msra.mxu2 %v3447_v0  ;;  %v3774_v0 = vld [vmem:[%s4333_s6] ss:$0 sm:$0xff] }
 0x6fc   :  { %4407 = vst [vmem:[#allocation40_spill] sm:$0xff] %v3774_v0  ;;  %v3778_v36 = vadd.f32 %v3774_v0, %v4408_v7 }
 0x6fd   :  { %1501 = vmatpush.bf16.msrb.mxu0 %v3436_v58 }
 0x73d   :  { %v1100_v41 = vpop.f32.mrf.mxu0 }
 0x73e   :  { %v3759_v43 = vadd.f32 %v3625_v53, %v1100_v41 }
 0x740   :  { %v1104_v44 = vadd.f32 %v3759_v43, %v3756_v42 }
 0x741   :  { %v1161_v45 = vpop.f32.mrf.mxu2 }
 0x742   :  { %v2480_v46 = vmul.f32 -1.442695, %v1104_v44  ;;  %v3764_v54 = vadd.f32 %v3487_v29, %v1161_v45  ;;  %v3783_v29 = vld [vmem:[%s4334_s7] ss:$0 sm:$0xff] }
 0x743   :  { %4409 = vst [vmem:[#allocation41_spill] sm:$0xff] %v3783_v29 }
 0x744   :  { %2620 = vpow2.f32 %v2480_v46 }
 0x745   :  { %v1102_v47 = vpop.f32.mrf.mxu0 }
 0x749   :  { %v1163_v48 = vpop.f32.mrf.mxu2 }
 0x74a   :  { %v2621_v50 = vpop.eup %2620 }
 0x74b   :  { %v1108_v51 = vadd.f32 1.0, %v2621_v50 }
 0x74d   :  { %2622 = vrcp.f32 %v1108_v51  ;;  %v1223_v52 = vpop.f32.mrf.mxu0  ;;  %v1120_v9 = vand.u32 2147483648, %v1108_v51  ;;  %v1118_v13 = vand.u32 2147483647, %v1108_v51  ;;  %vm1114_vm9 = vweird.f32 %v1108_v51 }
 0x74e   :  { %v3767_v56 = vadd.f32 %v3492_v30, %v1223_v52 }
 0x74f   :  { %v1121_v15 = vor.u32 1.1754944e-38, %v1120_v9  ;;  %vm1119_vm11 = vcmp.eq.f32.partialorder %v1118_v13, 8.507059e+37 }
 0x750   :  { %v1227_v58 = vadd.f32 %v3767_v56, %v3764_v54 }
 0x751   :  { %v1318_v63 = vpop.f32.mrf.mxu2 }
 0x752   :  { %v2482_v1 = vmul.f32 -1.442695, %v1227_v58  ;;  %v1319_v30 = vadd.f32 %v3783_v29, %v1318_v63 }
 0x753   :  { %v2623_v16 = vpop.eup %2622 }
 0x754   :  { %2624 = vpow2.f32 %v2482_v1  ;;  %v1350_v25 = vadd.f32 %v1319_v30, %v3778_v36  ;;  %v1110_v3 = vmul.f32 %v2623_v16, %v1108_v51  ;;  %vm1115_vm8 = vweird.f32 %v2623_v16 }
 0x755   :  { %v1225_v38 = vpop.f32.mrf.mxu0  ;;  %vm1116_vm10 = vmor %vm1114_vm9, %vm1115_vm8 }
 0x756   :  { %v2484_v10 = vmul.f32 -1.442695, %v1350_v25  ;;  %v1111_v35 = vsub.f32 1.0, %v1110_v3 }
 0x758   :  { %2626 = vpow2.f32 %v2484_v10  ;;  %v1112_v11 = vmul.f32 %v2623_v16, %v1111_v35 }
 0x759   :  { %v1320_v32 = vpop.f32.mrf.mxu2 }
 0x75a   :  { %v2625_v24 = vpop.eup %2624  ;;  %v1113_v14 = vadd.f32 %v2623_v16, %v1112_v11 }
 0x75b   :  { %v1231_v59 = vadd.f32 1.0, %v2625_v24 }
 0x75c   :  { %v1117_v2 = vsel %vm1116_vm10, %v2623_v16, %v1113_v14 }
 0x75d   :  { %2628 = vrcp.f32 %v1231_v59  ;;  %v1122_v33 = vsel %vm1119_vm11, %v1121_v15, %v1117_v2  ;;  %v1241_v44 = vand.u32 2147483647, %v1231_v59  ;;  %v1243_v45 = vand.u32 2147483648, %v1231_v59 }
 0x75e   :  { %v2627_v18 = vpop.eup %2626  ;;  %1124 = vrot.lane.b32.xlu0 %v1122_v33, %s3165_s29  ;;  %vm1237_vm13 = vweird.f32 %v1231_v59 }
 0x75f   :  { %v1354_v17 = vadd.f32 1.0, %v2627_v18  ;;  %vm1242_vm15 = vcmp.eq.f32.partialorder %v1241_v44, 8.507059e+37  ;;  %v1244_v51 = vor.u32 1.1754944e-38, %v1243_v45 }
 0x761   :  { %2630 = vrcp.f32 %v1354_v17  ;;  %v1366_v52 = vand.u32 2147483648, %v1354_v17  ;;  %v1364_v7 = vand.u32 2147483647, %v1354_v17  ;;  %vm1360_vm1 = vweird.f32 %v1354_v17 }
 0x763   :  { %v2629_v20 = vpop.eup %2628  ;;  %v1367_v25 = vor.u32 1.1754944e-38, %v1366_v52  ;;  %vm1365_vm3 = vcmp.eq.f32.partialorder %v1364_v7, 8.507059e+37 }
 0x764   :  { %v1233_v31 = vmul.f32 %v2629_v20, %v1231_v59  ;;  %vm1238_vm12 = vweird.f32 %v2629_v20 }
 0x765   :  { %vm1239_vm14 = vmor %vm1237_vm13, %vm1238_vm12 }
 0x766   :  { %1129 = vrot.lane.b32.xlu0 %v1122_v33, %s3175_s5  ;;  %v1234_v34 = vsub.f32 1.0, %v1233_v31  ;;  %v3809_v31 = vld [vmem:[#allocation11 + $0x30] sm:$0xff] }
 0x767   :  { %v2631_v41 = vpop.eup %2630 }
 0x768   :  { %v1235_v46 = vmul.f32 %v2629_v20, %v1234_v34  ;;  %v1356_v47 = vmul.f32 %v2631_v41, %v1354_v17  ;;  %vm1361_vm0 = vweird.f32 %v2631_v41 }
 0x769   :  { %vm1362_vm2 = vmor %vm1360_vm1, %vm1361_vm0 }
 0x76a   :  { %v1236_v48 = vadd.f32 %v2629_v20, %v1235_v46  ;;  %v1357_v50 = vsub.f32 1.0, %v1356_v47 }
 0x76c   :  { %v1240_v58 = vsel %vm1239_vm14, %v2629_v20, %v1236_v48  ;;  %v1358_v63 = vmul.f32 %v2631_v41, %v1357_v50  ;;  %v3818_v48 = vld [vmem:[#allocation11 + $0x20] sm:$0xff] }
 0x76d   :  { %v1245_v1 = vsel %vm1242_vm15, %v1244_v51, %v1240_v58 }
 0x76e   :  { %1247 = vrot.lane.b32.xlu1 %v1245_v1, %s3165_s29  ;;  %v1359_v16 = vadd.f32 %v2631_v41, %v1358_v63  ;;  %v3824_v63 = vld [vmem:[#allocation11 + $0x18] sm:$0xff] }
 0x770   :  { %v1363_v3 = vsel %vm1362_vm2, %v2631_v41, %v1359_v16  ;;  %v3812_v41 = vld [vmem:[#allocation11 + $0x28] sm:$0xff] }
 0x771   :  { %v1368_v38 = vsel %vm1365_vm3, %v1367_v25, %v1363_v3  ;;  %v3835_v3 = vld [vmem:[#allocation11 + $0x8] sm:$0xff] }
 0x772   :  { %1370 = vrot.lane.b32.xlu2 %v1368_v38, %s3165_s29 }
 0x77a   :  { %1252 = vrot.lane.b32.xlu2 %v1245_v1, %s3175_s5  ;;  %v3828_v1 = vld [vmem:[#allocation11 + $0x10] sm:$0xff] }
 0x7cc   :  { %v1371_v10 = vpop.permute.xlu2 %1370 }
 0x7cd   :  { %v1372_v35 = vmul.f32 %v1371_v10, %v1319_v30 }
 0x7cf   :  { %v1373_v9 = vadd.f32 %v1372_v35, %v3778_v36  ;;  %v3903_v35 = vld [vmem:[#allocation13] sm:$0xff] }
 0x7d0   :  { %v1125_v11 = vpop.permute.xlu0 %1124  ;;  %4413 = vst [vmem:[#allocation45_spill] sm:$0xff] %v3903_v35 }
 0x7d1   :  { %2632 = vtanh.f32 %v1373_v9  ;;  %v1126_v13 = vmul.f32 %v1125_v11, %v3756_v42 }
 0x7d3   :  { %v1127_v32 = vadd.f32 %v1126_v13, %v3759_v43 }
 0x7d5   :  { %2634 = vtanh.f32 %v1127_v32 }
 0x7d7   :  { %v2633_v24 = vpop.eup %2632 }
 0x7d8   :  { %1377 = vrot.lane.b32.xlu2 %v2633_v24, %s3165_s29  ;;  %v1130_v42 = vpop.permute.xlu0 %1129 }
 0x7d9   :  { %v1133_v43 = vsub.f32 1.0, %v1130_v42  ;;  %v1135_v33 = vmul.f32 %v1130_v42, %v3666_v28 }
 0x7db   :  { %v2635_v14 = vpop.eup %2634 }
 0x7dc   :  { %1131 = vrot.lane.b32.xlu1 %v2635_v14, %s3165_s29 }
 0x7e0   :  { %v1248_v59 = vpop.permute.xlu1 %1247 }
 0x7e1   :  { %v1249_v15 = vmul.f32 %v1248_v59, %v3764_v54  ;;  %v3806_v54 = vld [vmem:[#allocation11 + $0x38] sm:$0xff] }
 0x7e3   :  { %v1250_v30 = vadd.f32 %v1249_v15, %v3767_v56  ;;  %v1253_v56 = vpop.permute.xlu2 %1252 }
 0x7e4   :  { %1375 = vrot.lane.b32.xlu1 %v1368_v38, %s3175_s5  ;;  %v1256_v34 = vsub.f32 1.0, %v1253_v56  ;;  %v1258_v44 = vmul.f32 %v1253_v56, %v3711_v6 }
 0x7e5   :  { %2636 = vtanh.f32 %v1250_v30 }
 0x7eb   :  { %v2637_v36 = vpop.eup %2636 }
 0x7ec   :  { %1254 = vrot.lane.b32.xlu0 %v2637_v36, %s3165_s29 }
 0x832   :  { %v1378_v6 = vpop.permute.xlu2 %1377 }
 0x84e   :  { %v1132_v2 = vpop.permute.xlu1 %1131 }
 0x84f   :  { %v1134_v18 = vmul.f32 %v1133_v43, %v1132_v2 }
 0x851   :  { %v3802_v17 = vadd.f32 %v1135_v33, %v1134_v18  ;;  %v3925_v33 = vld [vmem:[%s4337_s10] ss:$0 sm:$0xff] }
 0x852   :  { %4415 = vst [vmem:[#allocation47_spill] sm:$0xff] %v3925_v33 }
 0x853   :  { %v1165_v20 = vpack.c.bf16 %v3802_v17, %v3802_v17 }
 0x855   :  { %1174 = vmatmul.bf16.vlgmr.msrb.gmra.mxu3 %v1165_v20 }
 0x856   :  { %1480 = vmatpush.bf16.msrb.mxu3 %v3806_v54  ;;  %v1376_v47 = vpop.permute.xlu1 %1375 }
 0x857   :  { %v1379_v52 = vsub.f32 1.0, %v1376_v47  ;;  %v1381_v16 = vmul.f32 %v1376_v47, %v3721_v12  ;;  %v3882_v12 = vld [vmem:[#allocation14 + $0x10] sm:$0xff] }
 0x859   :  { %v1380_v7 = vmul.f32 %v1379_v52, %v1378_v6 }
 0x85a   :  { %1481 = vmatpush.bf16.msrb.mxu3 %v3809_v31 }
 0x85b   :  { %v3833_v25 = vadd.f32 %v1381_v16, %v1380_v7 }
 0x85d   :  { %v1383_v38 = vmax.f32 %v3833_v25, 0.0  ;;  %v1479_v10 = vpack.c.bf16 %v3833_v25, %v3833_v25 }
 0x85e   :  { %1482 = vmatpush.bf16.msrb.mxu3 %v3812_v41  ;;  %v1255_v28 = vpop.permute.xlu0 %1254 }
 0x85f   :  { %v1257_v45 = vmul.f32 %v1256_v34, %v1255_v28  ;;  %v4416_v34 = vld [vmem:[#allocation36_spill] sm:$0xff] }
 0x860   :  { %v3934_v28 = vadd.f32 %v3774_v0, %v4416_v34 }
 0x861   :  { %v3816_v46 = vadd.f32 %v1258_v44, %v1257_v45 }
 0x862   :  { %1483 = vmatpush.bf16.msrb.mxu3 %v3818_v48 }
 0x863   :  { %v1260_v50 = vmax.f32 %v3816_v46, 0.0  ;;  %v1322_v51 = vpack.c.bf16 %v3816_v46, %v3816_v46 }
 0x865   :  { %1331 = vmatmul.bf16.vlgmr.msra.gmra.mxu3 %v1322_v51  ;;  %v1261_v58 = vpack.c.bf16 %v1260_v50, %v1260_v50 }
 0x866   :  { %1484 = vmatpush.bf16.msrb.mxu3 %v3824_v63 }
 0x867   :  { %1270 = vmatmul.bf16.vlgmr.msra.gmra.mxu1 %v1261_v58 }
 0x868   :  { %1508 = vmatpush.bf16.msra.mxu1 %v3514_v55  ;;  %v3840_v55 = vld [vmem:[#allocation11] sm:$0xff] }
 0x86a   :  { %1485 = vmatpush.bf16.msrb.mxu3 %v3828_v1 }
 0x86c   :  { %1509 = vmatpush.bf16.msra.mxu1 %v3519_v61  ;;  %v1384_v61 = vpack.c.bf16 %v1383_v38, %v1383_v38 }
 0x86e   :  { %1486 = vmatpush.bf16.msrb.mxu3 %v3835_v3 }
 0x870   :  { %1510 = vmatpush.bf16.msra.mxu1 %v3526_v62  ;;  %v3863_v62 = vld [vmem:[#allocation14 + $0x28] sm:$0xff] }
 0x872   :  { %1487 = vmatpush.bf16.msrb.mxu3 %v3840_v55 }
 0x874   :  { %1511 = vmatpush.bf16.msra.mxu1 %v3533_v4  ;;  %v3867_v4 = vld [vmem:[#allocation13 + $0x38] sm:$0xff] }
 0x875   :  { %1488 = vmatmul.bf16.vlgmr.msrb.gmra.mxu3 %v1479_v10 }
 0x876   :  { %1604 = vmatpush.bf16.msra.mxu3 %v3516_v60  ;;  %v3855_v60 = vld [vmem:[#allocation14 + $0x38] sm:$0xff] }
 0x877   :  { %1393 = vmatmul.bf16.vlgmr.msrb.gmra.mxu1 %v1384_v61 }
 0x878   :  { %1512 = vmatpush.bf16.msra.mxu1 %v3540_v8  ;;  %v3870_v8 = vld [vmem:[#allocation14 + $0x20] sm:$0xff] }
 0x87a   :  { %1605 = vmatpush.bf16.msra.mxu3 %v3522_v57  ;;  %v3859_v57 = vld [vmem:[#allocation14 + $0x30] sm:$0xff] }
 0x87c   :  { %1513 = vmatpush.bf16.msra.mxu1 %v3549_v21  ;;  %v3873_v21 = vld [vmem:[#allocation13 + $0x30] sm:$0xff] }
 0x87e   :  { %1606 = vmatpush.bf16.msra.mxu3 %v4401_v19  ;;  %v3885_v19 = vld [vmem:[#allocation13 + $0x20] sm:$0xff] }
 0x880   :  { %1514 = vmatpush.bf16.msra.mxu1 %v3556_v22  ;;  %v3876_v22 = vld [vmem:[#allocation14 + $0x18] sm:$0xff] }
 0x882   :  { %1607 = vmatpush.bf16.msra.mxu3 %v4402_v23  ;;  %v3888_v23 = vld [vmem:[#allocation14 + $0x8] sm:$0xff] }
 0x884   :  { %1515 = vmatpush.bf16.msra.mxu1 %v3561_v37  ;;  %v3879_v37 = vld [vmem:[#allocation13 + $0x28] sm:$0xff] }
 0x886   :  { %1608 = vmatpush.bf16.msra.mxu3 %v4403_v39  ;;  %v3891_v39 = vld [vmem:[#allocation13 + $0x18] sm:$0xff] }
 0x888   :  { %1665 = vmatpush.bf16.msrb.mxu1 %v3855_v60 }
 0x88a   :  { %1609 = vmatpush.bf16.msra.mxu3 %v4404_v40  ;;  %v3894_v40 = vld [vmem:[#allocation14] sm:$0xff] }
 0x88b   :  { %4410 = vst [vmem:[#allocation42_spill] sm:$0xff] %v3894_v40 }
 0x88c   :  { %1666 = vmatpush.bf16.msrb.mxu1 %v3859_v57 }
 0x88e   :  { %1610 = vmatpush.bf16.msra.mxu3 %v4405_v27  ;;  %v3897_v27 = vld [vmem:[#allocation13 + $0x10] sm:$0xff] }
 0x88f   :  { %4411 = vst [vmem:[#allocation43_spill] sm:$0xff] %v3897_v27 }
 0x890   :  { %1667 = vmatpush.bf16.msrb.mxu1 %v3863_v62 }
 0x892   :  { %1611 = vmatpush.bf16.msra.mxu3 %v4406_v26  ;;  %v3900_v26 = vld [vmem:[#allocation13 + $0x8] sm:$0xff] }
 0x893   :  { %4412 = vst [vmem:[#allocation44_spill] sm:$0xff] %v3900_v26 }
 0x894   :  { %1668 = vmatpush.bf16.msrb.mxu1 %v3870_v8 }
 0x896   :  { %1727 = vmatpush.bf16.msrb.mxu3 %v3867_v4 }
 0x898   :  { %1669 = vmatpush.bf16.msrb.mxu1 %v3876_v22 }
 0x89a   :  { %1728 = vmatpush.bf16.msrb.mxu3 %v3873_v21 }
 0x89c   :  { %1670 = vmatpush.bf16.msrb.mxu1 %v3882_v12 }
 0x89e   :  { %1729 = vmatpush.bf16.msrb.mxu3 %v3879_v37 }
 0x8a0   :  { %1671 = vmatpush.bf16.msrb.mxu1 %v3888_v23 }
 0x8a2   :  { %1730 = vmatpush.bf16.msrb.mxu3 %v3885_v19 }
 0x8a4   :  { %1672 = vmatpush.bf16.msrb.mxu1 %v3894_v40 }
 0x8a6   :  { %1731 = vmatpush.bf16.msrb.mxu3 %v3891_v39 }
 0x8aa   :  { %1732 = vmatpush.bf16.msrb.mxu3 %v3897_v27 }
 0x8ae   :  { %1733 = vmatpush.bf16.msrb.mxu3 %v3900_v26 }
 0x8b2   :  { %1734 = vmatpush.bf16.msrb.mxu3 %v3903_v35 }
 0x8d8   :  { %v1175_v9 = vpop.f32.mrf.mxu3 }
 0x8d9   :  { %v3907_v32 = vadd.f32 %v3620_v49, %v1175_v9  ;;  %v3917_v49 = vld [vmem:[%s4338_s11] ss:$0 sm:$0xff] }
 0x8da   :  { %4414 = vst [vmem:[#allocation35_spill] sm:$0xff] %v3917_v49 }
 0x8e0   :  { %v1177_v11 = vpop.f32.mrf.mxu3 }
 0x8e4   :  { %v1271_v13 = vpop.f32.mrf.mxu1 }
 0x8e5   :  { %v3910_v24 = vadd.f32 %v3625_v53, %v1271_v13 }
 0x8e7   :  { %v1275_v14 = vadd.f32 %v3910_v24, %v3907_v32 }
 0x8e8   :  { %v1332_v59 = vpop.f32.mrf.mxu3 }
 0x8e9   :  { %v2483_v15 = vmul.f32 -1.442695, %v1275_v14  ;;  %v3920_v53 = vadd.f32 %v3917_v49, %v1332_v59 }
 0x8eb   :  { %2638 = vpow2.f32 %v2483_v15 }
 0x8ec   :  { %v1273_v30 = vpop.f32.mrf.mxu1 }
 0x8f0   :  { %v1334_v36 = vpop.f32.mrf.mxu3 }
 0x8f1   :  { %v2639_v42 = vpop.eup %2638 }
 0x8f2   :  { %v1279_v43 = vadd.f32 1.0, %v2639_v42 }
 0x8f4   :  { %2640 = vrcp.f32 %v1279_v43  ;;  %v1394_v2 = vpop.f32.mrf.mxu1  ;;  %v1291_v7 = vand.u32 2147483648, %v1279_v43  ;;  %v1289_v38 = vand.u32 2147483647, %v1279_v43  ;;  %vm1285_vm5 = vweird.f32 %v1279_v43 }
 0x8f5   :  { %v3928_v18 = vadd.f32 %v3925_v33, %v1394_v2 }
 0x8f6   :  { %v1292_v13 = vor.u32 1.1754944e-38, %v1291_v7  ;;  %vm1290_vm7 = vcmp.eq.f32.partialorder %v1289_v38, 8.507059e+37 }
 0x8f7   :  { %v1398_v20 = vadd.f32 %v3928_v18, %v3920_v53 }
 0x8f8   :  { %v1489_v56 = vpop.f32.mrf.mxu3 }
 0x8f9   :  { %v2485_v44 = vmul.f32 -1.442695, %v1398_v20  ;;  %v1490_v45 = vadd.f32 %v3783_v29, %v1489_v56 }
 0x8fa   :  { %v2641_v47 = vpop.eup %2640 }
 0x8fb   :  { %2642 = vpow2.f32 %v2485_v44  ;;  %v1521_v50 = vadd.f32 %v1490_v45, %v3934_v28  ;;  %v1281_v51 = vmul.f32 %v2641_v47, %v1279_v43  ;;  %vm1286_vm4 = vweird.f32 %v2641_v47 }
 0x8fc   :  { %v1396_v52 = vpop.f32.mrf.mxu1  ;;  %vm1287_vm6 = vmor %vm1285_vm5, %vm1286_vm4 }
 0x8fd   :  { %v2487_v58 = vmul.f32 -1.442695, %v1521_v50  ;;  %v1282_v6 = vsub.f32 1.0, %v1281_v51 }
 0x8ff   :  { %2644 = vpow2.f32 %v2487_v58  ;;  %v1283_v16 = vmul.f32 %v2641_v47, %v1282_v6 }
 0x900   :  { %v1491_v10 = vpop.f32.mrf.mxu3 }
 0x901   :  { %v2643_v61 = vpop.eup %2642  ;;  %v1284_v9 = vadd.f32 %v2641_v47, %v1283_v16 }
 0x902   :  { %v1402_v11 = vadd.f32 1.0, %v2643_v61 }
 0x903   :  { %v1288_v14 = vsel %vm1287_vm6, %v2641_v47, %v1284_v9 }
 0x904   :  { %2646 = vrcp.f32 %v1402_v11  ;;  %v1293_v59 = vsel %vm1290_vm7, %v1292_v13, %v1288_v14  ;;  %v1412_v56 = vand.u32 2147483647, %v1402_v11  ;;  %v1414_v34 = vand.u32 2147483648, %v1402_v11 }
 0x905   :  { %v2645_v15 = vpop.eup %2644  ;;  %1295 = vrot.lane.b32.xlu1 %v1293_v59, %s3165_s29  ;;  %vm1408_vm9 = vweird.f32 %v1402_v11 }
 0x906   :  { %v1525_v30 = vadd.f32 1.0, %v2645_v15  ;;  %vm1413_vm11 = vcmp.eq.f32.partialorder %v1412_v56, 8.507059e+37  ;;  %v1415_v51 = vor.u32 1.1754944e-38, %v1414_v34 }
 0x908   :  { %2648 = vrcp.f32 %v1525_v30  ;;  %v1537_v52 = vand.u32 2147483648, %v1525_v30  ;;  %v1535_v7 = vand.u32 2147483647, %v1525_v30  ;;  %vm1531_vm13 = vweird.f32 %v1525_v30 }
 0x90a   :  { %v2647_v36 = vpop.eup %2646  ;;  %v1538_v10 = vor.u32 1.1754944e-38, %v1537_v52  ;;  %vm1536_vm15 = vcmp.eq.f32.partialorder %v1535_v7, 8.507059e+37 }
 0x90b   :  { %v1404_v42 = vmul.f32 %v2647_v36, %v1402_v11  ;;  %vm1409_vm8 = vweird.f32 %v2647_v36 }
 0x90c   :  { %vm1410_vm10 = vmor %vm1408_vm9, %vm1409_vm8 }
 0x90d   :  { %v1405_v2 = vsub.f32 1.0, %v1404_v42 }
 0x90e   :  { %v2649_v20 = vpop.eup %2648 }
 0x90f   :  { %v1406_v44 = vmul.f32 %v2647_v36, %v1405_v2  ;;  %v1527_v43 = vmul.f32 %v2649_v20, %v1525_v30  ;;  %vm1532_vm12 = vweird.f32 %v2649_v20 }
 0x910   :  { %vm1533_vm14 = vmor %vm1531_vm13, %vm1532_vm12 }
 0x911   :  { %v1407_v50 = vadd.f32 %v2647_v36, %v1406_v44  ;;  %v1528_v47 = vsub.f32 1.0, %v1527_v43 }
 0x913   :  { %v1411_v58 = vsel %vm1410_vm10, %v2647_v36, %v1407_v50  ;;  %v1529_v6 = vmul.f32 %v2649_v20, %v1528_v47 }
 0x914   :  { %v1416_v16 = vsel %vm1413_vm11, %v1415_v51, %v1411_v58 }
 0x915   :  { %1418 = vrot.lane.b32.xlu0 %v1416_v16, %s3165_s29  ;;  %v1530_v38 = vadd.f32 %v2649_v20, %v1529_v6 }
 0x917   :  { %v1534_v61 = vsel %vm1533_vm14, %v2649_v20, %v1530_v38 }
 0x918   :  { %v1539_v9 = vsel %vm1536_vm15, %v1538_v10, %v1534_v61  ;;  %v3968_v61 = vld [vmem:[#allocation17 + $0x38] sm:$0xff] }
 0x919   :  { %1541 = vrot.lane.b32.xlu2 %v1539_v9, %s3165_s29 }
 0x91d   :  { %1423 = vrot.lane.b32.xlu0 %v1416_v16, %s3175_s5 }
 0x921   :  { %1300 = vrot.lane.b32.xlu2 %v1293_v59, %s3175_s5 }
 0x973   :  { %v1542_v11 = vpop.permute.xlu2 %1541 }
 0x974   :  { %v1543_v13 = vmul.f32 %v1542_v11, %v1490_v45  ;;  %v3973_v11 = vld [vmem:[#allocation17 + $0x30] sm:$0xff] }
 0x976   :  { %v1544_v14 = vadd.f32 %v1543_v13, %v3934_v28 }
 0x977   :  { %v1296_v15 = vpop.permute.xlu1 %1295 }
 0x978   :  { %2650 = vtanh.f32 %v1544_v14  ;;  %v1297_v36 = vmul.f32 %v1296_v15, %v3907_v32  ;;  %v3979_v14 = vld [vmem:[#allocation17 + $0x28] sm:$0xff] }
 0x97a   :  { %v1298_v30 = vadd.f32 %v1297_v36, %v3910_v24 }
 0x97b   :  { %v1301_v24 = vpop.permute.xlu2 %1300 }
 0x97c   :  { %2652 = vtanh.f32 %v1298_v30  ;;  %v1304_v56 = vsub.f32 1.0, %v1301_v24  ;;  %v1306_v44 = vmul.f32 %v1301_v24, %v3802_v17  ;;  %v3989_v30 = vld [vmem:[#allocation17 + $0x20] sm:$0xff]  ;;  %v4010_v24 = vld [vmem:[#allocation16 + $0x18] sm:$0xff] }
 0x97e   :  { %v2651_v42 = vpop.eup %2650 }
 0x97f   :  { %1548 = vrot.lane.b32.xlu2 %v2651_v42, %s3165_s29 }
 0x982   :  { %v2653_v2 = vpop.eup %2652 }
 0x983   :  { %1302 = vrot.lane.b32.xlu0 %v2653_v2, %s3165_s29  ;;  %v3992_v2 = vld [vmem:[#allocation16 + $0x30] sm:$0xff] }
 0x987   :  { %v1419_v20 = vpop.permute.xlu0 %1418 }
 0x988   :  { %v1420_v59 = vmul.f32 %v1419_v20, %v3920_v53  ;;  %v3995_v20 = vld [vmem:[#allocation17 + $0x18] sm:$0xff] }
 0x98a   :  { %v1421_v45 = vadd.f32 %v1420_v59, %v3928_v18  ;;  %v3998_v59 = vld [vmem:[#allocation16 + $0x28] sm:$0xff] }
 0x98c   :  { %2654 = vtanh.f32 %v1421_v45  ;;  %v4001_v45 = vld [vmem:[#allocation17 + $0x10] sm:$0xff] }
 0x98f   :  { %v1424_v32 = vpop.permute.xlu0 %1423 }
 0x990   :  { %v1427_v18 = vsub.f32 1.0, %v1424_v32  ;;  %v1429_v51 = vmul.f32 %v1424_v32, %v3816_v46  ;;  %v4007_v32 = vld [vmem:[#allocation17 + $0x8] sm:$0xff] }
 0x992   :  { %v2655_v28 = vpop.eup %2654 }
 0x993   :  { %1425 = vrot.lane.b32.xlu1 %v2655_v28, %s3165_s29  ;;  %v4004_v28 = vld [vmem:[#allocation16 + $0x20] sm:$0xff] }
 0x99b   :  { %1546 = vrot.lane.b32.xlu1 %v1539_v9, %s3175_s5 }
 0x9d9   :  { %v1549_v10 = vpop.permute.xlu2 %1548 }
 0x9f5   :  { %v1303_v34 = vpop.permute.xlu0 %1302 }
 0x9f6   :  { %v1305_v43 = vmul.f32 %v1304_v56, %v1303_v34  ;;  %v4013_v56 = vld [vmem:[#allocation17] sm:$0xff]  ;;  %v4017_v34 = vld [vmem:[#allocation16 + $0x10] sm:$0xff] }
 0x9f8   :  { %v3953_v50 = vadd.f32 %v1306_v44, %v1305_v43  ;;  %v4021_v44 = vld [vmem:[#allocation16 + $0x8] sm:$0xff]  ;;  %v4025_v43 = vld [vmem:[#allocation16] sm:$0xff] }
 0x9fa   :  { %v1336_v53 = vpack.c.bf16 %v3953_v50, %v3953_v50 }
 0x9fc   :  { %1345 = vmatmul.bf16.vlgmr.msra.gmra.mxu0 %v1336_v53 }
 0x9fd   :  { %1651 = vmatpush.bf16.msra.mxu0 %v3806_v54 }
 0xa01   :  { %1652 = vmatpush.bf16.msra.mxu0 %v3809_v31 }
 0xa05   :  { %1653 = vmatpush.bf16.msra.mxu0 %v3812_v41  ;;  %v1426_v47 = vpop.permute.xlu1 %1425 }
 0xa06   :  { %v1428_v52 = vmul.f32 %v1427_v18, %v1426_v47 }
 0xa08   :  { %v3961_v58 = vadd.f32 %v1429_v51, %v1428_v52 }
 0xa09   :  { %1654 = vmatpush.bf16.msra.mxu0 %v3818_v48 }
 0xa0a   :  { %v1431_v17 = vmax.f32 %v3961_v58, 0.0  ;;  %v1493_v6 = vpack.c.bf16 %v3961_v58, %v3961_v58 }
 0xa0c   :  { %1502 = vmatmul.bf16.vlgmr.msrb.gmra.mxu0 %v1493_v6  ;;  %v1432_v7 = vpack.c.bf16 %v1431_v17, %v1431_v17  ;;  %v4044_v17 = vld [vmem:[%s4342_s15] ss:$0 sm:$0xff] }
 0xa0d   :  { %1655 = vmatpush.bf16.msra.mxu0 %v3824_v63  ;;  %v1547_v16 = vpop.permute.xlu1 %1546  ;;  %4417 = vst [vmem:[#allocation36_spill] sm:$0xff] %v4044_v17 }
 0xa0e   :  { %v1550_v38 = vsub.f32 1.0, %v1547_v16  ;;  %1441 = vmatmul.bf16.vlgmr.msrb.gmra.mxu2 %v1432_v7  ;;  %v1552_v9 = vmul.f32 %v1547_v16, %v3833_v25  ;;  %v3986_v25 = vld [vmem:[#allocation16 + $0x38] sm:$0xff]  ;;  %v4052_v7 = vld [vmem:[%s4341_s14] ss:$0 sm:$0xff] }
 0xa0f   :  { %1679 = vmatpush.bf16.msrb.mxu2 %v3968_v61  ;;  %4418 = vst [vmem:[#allocation48_spill] sm:$0xff] %v4052_v7 }
 0xa10   :  { %v1551_v46 = vmul.f32 %v1550_v38, %v1549_v10 }
 0xa11   :  { %1656 = vmatpush.bf16.msra.mxu0 %v3828_v1 }
 0xa12   :  { %v3976_v13 = vadd.f32 %v1552_v9, %v1551_v46 }
 0xa13   :  { %1680 = vmatpush.bf16.msrb.mxu2 %v3973_v11 }
 0xa14   :  { %v1554_v15 = vmax.f32 %v3976_v13, 0.0  ;;  %v1650_v36 = vpack.c.bf16 %v3976_v13, %v3976_v13 }
 0xa15   :  { %1657 = vmatpush.bf16.msra.mxu0 %v3835_v3 }
 0xa16   :  { %v1555_v42 = vpack.c.bf16 %v1554_v15, %v1554_v15  ;;  %v4419_v15 = vld [vmem:[#allocation37_spill] sm:$0xff] }
 0xa17   :  { %1681 = vmatpush.bf16.msrb.mxu2 %v3979_v14 }
 0xa19   :  { %1658 = vmatpush.bf16.msra.mxu0 %v3840_v55 }
 0xa1b   :  { %1682 = vmatpush.bf16.msrb.mxu2 %v3989_v30 }
 0xa1c   :  { %1659 = vmatmul.bf16.vlgmr.msra.gmra.mxu0 %v1650_v36  ;;  %v4061_v36 = vadd.f32 %v3774_v0, %v4419_v15 }
 0xa1d   :  { %1775 = vmatpush.bf16.msrb.mxu0 %v3986_v25 }
 0xa1e   :  { %1564 = vmatmul.bf16.vlgmr.msra.gmra.mxu2 %v1555_v42 }
 0xa1f   :  { %1683 = vmatpush.bf16.msrb.mxu2 %v3995_v20 }
 0xa21   :  { %1776 = vmatpush.bf16.msrb.mxu0 %v3992_v2 }
 0xa23   :  { %1684 = vmatpush.bf16.msrb.mxu2 %v4001_v45 }
 0xa25   :  { %1777 = vmatpush.bf16.msrb.mxu0 %v3998_v59 }
 0xa27   :  { %1685 = vmatpush.bf16.msrb.mxu2 %v4007_v32 }
 0xa29   :  { %1778 = vmatpush.bf16.msrb.mxu0 %v4004_v28 }
 0xa2b   :  { %1686 = vmatpush.bf16.msrb.mxu2 %v4013_v56 }
 0xa2d   :  { %1779 = vmatpush.bf16.msrb.mxu0 %v4010_v24 }
 0xa2f   :  { %1836 = vmatpush.bf16.msra.mxu2 %v3855_v60 }
 0xa31   :  { %1780 = vmatpush.bf16.msrb.mxu0 %v4017_v34 }
 0xa33   :  { %1837 = vmatpush.bf16.msra.mxu2 %v3859_v57 }
 0xa35   :  { %1781 = vmatpush.bf16.msrb.mxu0 %v4021_v44 }
 0xa37   :  { %1838 = vmatpush.bf16.msra.mxu2 %v3863_v62 }
 0xa39   :  { %1782 = vmatpush.bf16.msrb.mxu0 %v4025_v43 }
 0xa3b   :  { %1839 = vmatpush.bf16.msra.mxu2 %v3870_v8 }
 0xa3d   :  { %1898 = vmatpush.bf16.msra.mxu0 %v3867_v4 }
 0xa3f   :  { %1840 = vmatpush.bf16.msra.mxu2 %v3876_v22 }
 0xa41   :  { %1899 = vmatpush.bf16.msra.mxu0 %v3873_v21 }
 0xa43   :  { %1841 = vmatpush.bf16.msra.mxu2 %v3882_v12 }
 0xa45   :  { %1900 = vmatpush.bf16.msra.mxu0 %v3879_v37 }
 0xa47   :  { %1842 = vmatpush.bf16.msra.mxu2 %v3888_v23 }
 0xa49   :  { %1901 = vmatpush.bf16.msra.mxu0 %v3885_v19 }
 0xa4b   :  { %1843 = vmatpush.bf16.msra.mxu2 %v3894_v40 }
 0xa4d   :  { %1902 = vmatpush.bf16.msra.mxu0 %v3891_v39 }
 0xa51   :  { %1903 = vmatpush.bf16.msra.mxu0 %v3897_v27 }
 0xa55   :  { %1904 = vmatpush.bf16.msra.mxu0 %v3900_v26 }
 0xa59   :  { %1905 = vmatpush.bf16.msra.mxu0 %v3903_v35 }
 0xa79   :  { %v1346_v53 = vpop.f32.mrf.mxu0 }
 0xa7a   :  { %v4047_v6 = vadd.f32 %v4044_v17, %v1346_v53 }
 0xa81   :  { %v1348_v18 = vpop.f32.mrf.mxu0 }
 0xa89   :  { %v1503_v47 = vpop.f32.mrf.mxu0 }
 0xa91   :  { %v1442_v51 = vpop.f32.mrf.mxu2  ;;  %v1505_v52 = vpop.f32.mrf.mxu0 }
 0xa92   :  { %v4055_v16 = vadd.f32 %v4052_v7, %v1442_v51 }
 0xa94   :  { %v1446_v38 = vadd.f32 %v4055_v16, %v4047_v6 }
 0xa96   :  { %v2486_v10 = vmul.f32 -1.442695, %v1446_v38 }
 0xa98   :  { %2656 = vpow2.f32 %v2486_v10  ;;  %v4069_v10 = vadd.f32 %v3917_v49, %v1503_v47 }
 0xa99   :  { %v1444_v46 = vpop.f32.mrf.mxu2  ;;  %v1660_v9 = vpop.f32.mrf.mxu0 }
 0xa9a   :  { %v4064_v42 = vadd.f32 %v3783_v29, %v1660_v9 }
 0xa9c   :  { %v1692_v53 = vadd.f32 %v4064_v42, %v4061_v36 }
 0xa9e   :  { %v2657_v18 = vpop.eup %2656  ;;  %v2490_v51 = vmul.f32 -1.442695, %v1692_v53 }
 0xa9f   :  { %v1450_v52 = vadd.f32 1.0, %v2657_v18 }
 0xaa0   :  { %2658 = vpow2.f32 %v2490_v51 }
 0xaa1   :  { %2660 = vrcp.f32 %v1450_v52  ;;  %v1565_v5 = vpop.f32.mrf.mxu2  ;;  %v1662_v38 = vpop.f32.mrf.mxu0  ;;  %v1462_v17 = vand.u32 2147483648, %v1450_v52  ;;  %v1460_v47 = vand.u32 2147483647, %v1450_v52  ;;  %vm1456_vm1 = vweird.f32 %v1450_v52 }
 0xaa2   :  { %v4072_v46 = vadd.f32 %v3925_v33, %v1565_v5 }
 0xaa3   :  { %v1463_v26 = vor.u32 1.1754944e-38, %v1462_v17  ;;  %vm1461_vm3 = vcmp.eq.f32.partialorder %v1460_v47, 8.507059e+37 }
 0xaa4   :  { %v1569_v9 = vadd.f32 %v4072_v46, %v4069_v10 }
 0xaa6   :  { %v2659_v15 = vpop.eup %2658  ;;  %v2488_v29 = vmul.f32 -1.442695, %v1569_v9 }
 0xaa7   :  { %v2661_v0 = vpop.eup %2660  ;;  %v1696_v7 = vadd.f32 1.0, %v2659_v15 }
 0xaa8   :  { %2662 = vpow2.f32 %v2488_v29  ;;  %v1452_v53 = vmul.f32 %v2661_v0, %v1450_v52  ;;  %vm1457_vm0 = vweird.f32 %v2661_v0 }
 0xaa9   :  { %2664 = vrcp.f32 %v1696_v7  ;;  %v1567_v18 = vpop.f32.mrf.mxu2  ;;  %vm1458_vm2 = vmor %vm1456_vm1, %vm1457_vm0  ;;  %vm1702_vm5 = vweird.f32 %v1696_v7 }
 0xaaa   :  { %v1453_v51 = vsub.f32 1.0, %v1452_v53  ;;  %v1708_v53 = vand.u32 2147483648, %v1696_v7 }
 0xaac   :  { %v1454_v38 = vmul.f32 %v2661_v0, %v1453_v51  ;;  %v1706_v51 = vand.u32 2147483647, %v1696_v7  ;;  %v1709_v52 = vor.u32 1.1754944e-38, %v1708_v53 }
 0xaae   :  { %v2663_v49 = vpop.eup %2662  ;;  %v1455_v35 = vadd.f32 %v2661_v0, %v1454_v38  ;;  %vm1707_vm7 = vcmp.eq.f32.partialorder %v1706_v51, 8.507059e+37 }
 0xaaf   :  { %v2665_v5 = vpop.eup %2664  ;;  %v1573_v33 = vadd.f32 1.0, %v2663_v49 }
 0xab0   :  { %v1459_v27 = vsel %vm1458_vm2, %v2661_v0, %v1455_v35  ;;  %v1698_v9 = vmul.f32 %v2665_v5, %v1696_v7  ;;  %vm1703_vm4 = vweird.f32 %v2665_v5 }
 0xab1   :  { %2666 = vrcp.f32 %v1573_v33  ;;  %v1464_v29 = vsel %vm1461_vm3, %v1463_v26, %v1459_v27  ;;  %vm1704_vm6 = vmor %vm1702_vm5, %vm1703_vm4  ;;  %v1585_v27 = vand.u32 2147483648, %v1573_v33  ;;  %v1583_v47 = vand.u32 2147483647, %v1573_v33 }
 0xab2   :  { %1466 = vrot.lane.b32.xlu1 %v1464_v29, %s3165_s29  ;;  %v1699_v15 = vsub.f32 1.0, %v1698_v9  ;;  %vm1579_vm9 = vweird.f32 %v1573_v33 }
 0xab3   :  { %vm1584_vm11 = vcmp.eq.f32.partialorder %v1583_v47, 8.507059e+37 }
 0xab4   :  { %v1700_v18 = vmul.f32 %v2665_v5, %v1699_v15  ;;  %v1586_v15 = vor.u32 1.1754944e-38, %v1585_v27 }
 0xab6   :  { %v1701_v40 = vadd.f32 %v2665_v5, %v1700_v18 }
 0xab7   :  { %v2667_v38 = vpop.eup %2666 }
 0xab8   :  { %v1705_v49 = vsel %vm1704_vm6, %v2665_v5, %v1701_v40  ;;  %v1575_v17 = vmul.f32 %v2667_v38, %v1573_v33  ;;  %vm1580_vm8 = vweird.f32 %v2667_v38 }
 0xab9   :  { %v1710_v0 = vsel %vm1707_vm7, %v1709_v52, %v1705_v49  ;;  %vm1581_vm10 = vmor %vm1579_vm9, %vm1580_vm8 }
 0xaba   :  { %1712 = vrot.lane.b32.xlu2 %v1710_v0, %s3165_s29  ;;  %v1576_v35 = vsub.f32 1.0, %v1575_v17 }
 0xabc   :  { %v1577_v26 = vmul.f32 %v2667_v38, %v1576_v35 }
 0xabe   :  { %v1578_v9 = vadd.f32 %v2667_v38, %v1577_v26 }
 0xac0   :  { %v1582_v18 = vsel %vm1581_vm10, %v2667_v38, %v1578_v9 }
 0xac1   :  { %v1587_v7 = vsel %vm1584_vm11, %v1586_v15, %v1582_v18 }
 0xac2   :  { %1471 = vrot.lane.b32.xlu2 %v1464_v29, %s3175_s5  ;;  %1589 = vrot.lane.b32.xlu0 %v1587_v7, %s3165_s29 }
 0xaca   :  { %1594 = vrot.lane.b32.xlu0 %v1587_v7, %s3175_s5 }
 0xb14   :  { %v1713_v40 = vpop.permute.xlu2 %1712 }
 0xb15   :  { %v1714_v5 = vmul.f32 %v1713_v40, %v4064_v42 }
 0xb17   :  { %v1715_v53 = vadd.f32 %v1714_v5, %v4061_v36 }
 0xb19   :  { %2668 = vtanh.f32 %v1715_v53 }
 0xb1c   :  { %v1472_v27 = vpop.permute.xlu2 %1471 }
 0xb1f   :  { %v2669_v51 = vpop.eup %2668 }
 0xb20   :  { %1719 = vrot.lane.b32.xlu2 %v2669_v51, %s3165_s29 }
 0xb24   :  { %v1467_v33 = vpop.permute.xlu1 %1466 }
 0xb25   :  { %v1468_v38 = vmul.f32 %v1467_v33, %v4047_v6  ;;  %v1475_v6 = vsub.f32 1.0, %v1472_v27 }
 0xb27   :  { %v1469_v52 = vadd.f32 %v1468_v38, %v4055_v16  ;;  %v1477_v16 = vmul.f32 %v1472_v27, %v3953_v50 }
 0xb29   :  { %2670 = vtanh.f32 %v1469_v52 }
 0xb2f   :  { %v2671_v29 = vpop.eup %2670 }
 0xb30   :  { %1473 = vrot.lane.b32.xlu0 %v2671_v29, %s3165_s29 }
 0xb34   :  { %v1590_v49 = vpop.permute.xlu0 %1589 }
 0xb35   :  { %v1591_v17 = vmul.f32 %v1590_v49, %v4069_v10 }
 0xb37   :  { %v1592_v42 = vadd.f32 %v1591_v17, %v4072_v46 }
 0xb39   :  { %2672 = vtanh.f32 %v1592_v42 }
 0xb3c   :  { %v1595_v35 = vpop.permute.xlu0 %1594 }
 0xb3d   :  { %v1598_v46 = vsub.f32 1.0, %v1595_v35  ;;  %v1600_v15 = vmul.f32 %v1595_v35, %v3961_v58 }
 0xb3f   :  { %v2673_v36 = vpop.eup %2672 }
 0xb40   :  { %1596 = vrot.lane.b32.xlu1 %v2673_v36, %s3165_s29 }
 0xb48   :  { %1717 = vrot.lane.b32.xlu1 %v1710_v0, %s3175_s5 }
 0xb7a   :  { %v1720_v33 = vpop.permute.xlu2 %1719 }
 0xba2   :  { %v1474_v26 = vpop.permute.xlu0 %1473 }
 0xba3   :  { %v1476_v47 = vmul.f32 %v1475_v6, %v1474_v26  ;;  %v4426_v6 = vld [vmem:[#allocation38_spill] sm:$0xff]  ;;  %v4427_v26 = vld [vmem:[#allocation40_spill] sm:$0xff] }
 0xba5   :  { %v4092_v9 = vadd.f32 %v1477_v16, %v1476_v47  ;;  %v4158_v16 = vadd.f32 %v4427_v26, %v4426_v6  ;;  %v4428_v47 = vld [vmem:[#allocation41_spill] sm:$0xff] }
 0xba7   :  { %v1507_v10 = vpack.c.bf16 %v4092_v9, %v4092_v9 }
 0xba9   :  { %1516 = vmatmul.bf16.vlgmr.msra.gmra.mxu1 %v1507_v10 }
 0xbaa   :  { %1822 = vmatpush.bf16.msra.mxu1 %v3806_v54 }
 0xbae   :  { %1823 = vmatpush.bf16.msra.mxu1 %v3809_v31 }
 0xbb2   :  { %1824 = vmatpush.bf16.msra.mxu1 %v3812_v41  ;;  %v1597_v0 = vpop.permute.xlu1 %1596 }
 0xbb3   :  { %v1599_v18 = vmul.f32 %v1598_v46, %v1597_v0 }
 0xbb5   :  { %v4100_v7 = vadd.f32 %v1600_v15, %v1599_v18 }
 0xbb6   :  { %1825 = vmatpush.bf16.msra.mxu1 %v3818_v48 }
 0xbb7   :  { %v1602_v50 = vmax.f32 %v4100_v7, 0.0  ;;  %v1664_v40 = vpack.c.bf16 %v4100_v7, %v4100_v7 }
 0xbb9   :  { %1673 = vmatmul.bf16.vlgmr.msrb.gmra.mxu1 %v1664_v40  ;;  %v1603_v5 = vpack.c.bf16 %v1602_v50, %v1602_v50 }
 0xbba   :  { %1826 = vmatpush.bf16.msra.mxu1 %v3824_v63  ;;  %v1718_v53 = vpop.permute.xlu1 %1717 }
 0xbbb   :  { %v1721_v51 = vsub.f32 1.0, %v1718_v53  ;;  %1612 = vmatmul.bf16.vlgmr.msra.gmra.mxu3 %v1603_v5  ;;  %v1723_v38 = vmul.f32 %v1718_v53, %v3976_v13  ;;  %v4429_v5 = vld [vmem:[#allocation35_spill] sm:$0xff] }
 0xbbc   :  { %1850 = vmatpush.bf16.msra.mxu3 %v3968_v61 }
 0xbbd   :  { %v1722_v58 = vmul.f32 %v1721_v51, %v1720_v33  ;;  %v4430_v51 = vld [vmem:[#allocation47_spill] sm:$0xff] }
 0xbbe   :  { %1827 = vmatpush.bf16.msra.mxu1 %v3828_v1 }
 0xbbf   :  { %v4111_v52 = vadd.f32 %v1723_v38, %v1722_v58 }
 0xbc0   :  { %1851 = vmatpush.bf16.msra.mxu3 %v3973_v11 }
 0xbc1   :  { %v1725_v29 = vmax.f32 %v4111_v52, 0.0  ;;  %v1821_v49 = vpack.c.bf16 %v4111_v52, %v4111_v52 }
 0xbc2   :  { %1828 = vmatpush.bf16.msra.mxu1 %v3835_v3 }
 0xbc3   :  { %v1726_v13 = vpack.c.bf16 %v1725_v29, %v1725_v29 }
 0xbc4   :  { %1852 = vmatpush.bf16.msra.mxu3 %v3979_v14 }
 0xbc6   :  { %1829 = vmatpush.bf16.msra.mxu1 %v3840_v55 }
 0xbc8   :  { %1853 = vmatpush.bf16.msra.mxu3 %v3989_v30 }
 0xbc9   :  { %1830 = vmatmul.bf16.vlgmr.msra.gmra.mxu1 %v1821_v49 }
 0xbca   :  { %1946 = vmatpush.bf16.msrb.mxu1 %v3986_v25 }
 0xbcb   :  { %1735 = vmatmul.bf16.vlgmr.msrb.gmra.mxu3 %v1726_v13 }
 0xbcc   :  { %1854 = vmatpush.bf16.msra.mxu3 %v3995_v20 }
 0xbce   :  { %1947 = vmatpush.bf16.msrb.mxu1 %v3992_v2 }
 0xbd0   :  { %1855 = vmatpush.bf16.msra.mxu3 %v4001_v45 }
 0xbd2   :  { %1948 = vmatpush.bf16.msrb.mxu1 %v3998_v59 }
 0xbd4   :  { %1856 = vmatpush.bf16.msra.mxu3 %v4007_v32 }
 0xbd6   :  { %1949 = vmatpush.bf16.msrb.mxu1 %v4004_v28 }
 0xbd8   :  { %1857 = vmatpush.bf16.msra.mxu3 %v4013_v56 }
 0xbda   :  { %1950 = vmatpush.bf16.msrb.mxu1 %v4010_v24 }
 0xbdc   :  { %2007 = vmatpush.bf16.msrb.mxu3 %v3855_v60  ;;  %v4420_v60 = vld [vmem:[#allocation42_spill] sm:$0xff] }
 0xbde   :  { %1951 = vmatpush.bf16.msrb.mxu1 %v4017_v34 }
 0xbe0   :  { %2008 = vmatpush.bf16.msrb.mxu3 %v3859_v57  ;;  %v4421_v57 = vld [vmem:[#allocation43_spill] sm:$0xff] }
 0xbe2   :  { %1952 = vmatpush.bf16.msrb.mxu1 %v4021_v44 }
 0xbe4   :  { %2009 = vmatpush.bf16.msrb.mxu3 %v3863_v62  ;;  %v4422_v62 = vld [vmem:[#allocation44_spill] sm:$0xff] }
 0xbe6   :  { %1953 = vmatpush.bf16.msrb.mxu1 %v4025_v43 }
 0xbe8   :  { %2010 = vmatpush.bf16.msrb.mxu3 %v3870_v8 }
 0xbea   :  { %2069 = vmatpush.bf16.msra.mxu1 %v3867_v4  ;;  %v4423_v4 = vld [vmem:[#allocation45_spill] sm:$0xff] }
 0xbec   :  { %2011 = vmatpush.bf16.msrb.mxu3 %v3876_v22 }
 0xbee   :  { %2070 = vmatpush.bf16.msra.mxu1 %v3873_v21 }
 0xbf0   :  { %2012 = vmatpush.bf16.msrb.mxu3 %v3882_v12  ;;  %v4424_v12 = vld [vmem:[#allocation36_spill] sm:$0xff] }
 0xbf2   :  { %2071 = vmatpush.bf16.msra.mxu1 %v3879_v37 }
 0xbf4   :  { %2013 = vmatpush.bf16.msrb.mxu3 %v3888_v23 }
 0xbf6   :  { %2072 = vmatpush.bf16.msra.mxu1 %v3885_v19  ;;  %v4425_v19 = vld [vmem:[#allocation48_spill] sm:$0xff] }
 0xbf8   :  { %2014 = vmatpush.bf16.msrb.mxu3 %v4420_v60 }
 0xbfa   :  { %2073 = vmatpush.bf16.msra.mxu1 %v3891_v39 }
 0xbfe   :  { %2074 = vmatpush.bf16.msra.mxu1 %v4421_v57 }
 0xc02   :  { %2075 = vmatpush.bf16.msra.mxu1 %v4422_v62 }
 0xc06   :  { %2076 = vmatpush.bf16.msra.mxu1 %v4423_v4 }
 0xc26   :  { %v1517_v8 = vpop.f32.mrf.mxu1 }
 0xc27   :  { %v4149_v42 = vadd.f32 %v4424_v12, %v1517_v8 }
 0xc2e   :  { %v1519_v21 = vpop.f32.mrf.mxu1 }
 0xc36   :  { %v1674_v22 = vpop.f32.mrf.mxu1 }
 0xc37   :  { %v4166_v53 = vadd.f32 %v4429_v5, %v1674_v22 }
 0xc3e   :  { %v1613_v37 = vpop.f32.mrf.mxu3  ;;  %v1676_v17 = vpop.f32.mrf.mxu1 }
 0xc3f   :  { %v4152_v23 = vadd.f32 %v4425_v19, %v1613_v37 }
 0xc41   :  { %v1617_v39 = vadd.f32 %v4152_v23, %v4149_v42 }
 0xc43   :  { %v2489_v36 = vmul.f32 -1.442695, %v1617_v39 }
 0xc45   :  { %2674 = vpow2.f32 %v2489_v36 }
 0xc46   :  { %v1615_v35 = vpop.f32.mrf.mxu3  ;;  %v1831_v27 = vpop.f32.mrf.mxu1 }
 0xc47   :  { %v4161_v10 = vadd.f32 %v4428_v47, %v1831_v27 }
 0xc49   :  { %v1863_v46 = vadd.f32 %v4161_v10, %v4158_v16 }
 0xc4b   :  { %v2675_v0 = vpop.eup %2674  ;;  %v2493_v15 = vmul.f32 -1.442695, %v1863_v46 }
 0xc4c   :  { %v1621_v18 = vadd.f32 1.0, %v2675_v0 }
 0xc4d   :  { %2676 = vpow2.f32 %v2493_v15 }
 0xc4e   :  { %2678 = vrcp.f32 %v1621_v18  ;;  %v1736_v50 = vpop.f32.mrf.mxu3  ;;  %v1833_v40 = vpop.f32.mrf.mxu1  ;;  %v1633_v4 = vand.u32 2147483648, %v1621_v18  ;;  %v1631_v21 = vand.u32 2147483647, %v1621_v18  ;;  %vm1627_vm13 = vweird.f32 %v1621_v18 }
 0xc4f   :  { %v4169_v33 = vadd.f32 %v4430_v51, %v1736_v50 }
 0xc50   :  { %v1634_v36 = vor.u32 1.1754944e-38, %v1633_v4  ;;  %vm1632_vm15 = vcmp.eq.f32.partialorder %v1631_v21, 8.507059e+37 }
 0xc51   :  { %v1740_v58 = vadd.f32 %v4169_v33, %v4166_v53 }
 0xc53   :  { %v2677_v38 = vpop.eup %2676  ;;  %v2491_v29 = vmul.f32 -1.442695, %v1740_v58 }
 0xc54   :  { %v2679_v49 = vpop.eup %2678  ;;  %v1867_v13 = vadd.f32 1.0, %v2677_v38 }
 0xc55   :  { %2680 = vpow2.f32 %v2491_v29  ;;  %v1623_v60 = vmul.f32 %v2679_v49, %v1621_v18  ;;  %vm1628_vm12 = vweird.f32 %v2679_v49 }
 0xc56   :  { %2682 = vrcp.f32 %v1867_v13  ;;  %v1738_v57 = vpop.f32.mrf.mxu3  ;;  %vm1629_vm14 = vmor %vm1627_vm13, %vm1628_vm12  ;;  %v1879_v47 = vand.u32 2147483648, %v1867_v13  ;;  %v1877_v0 = vand.u32 2147483647, %v1867_v13  ;;  %vm1873_vm1 = vweird.f32 %v1867_v13 }
 0xc57   :  { %v1624_v62 = vsub.f32 1.0, %v1623_v60 }
 0xc58   :  { %v1880_v18 = vor.u32 1.1754944e-38, %v1879_v47  ;;  %vm1878_vm3 = vcmp.eq.f32.partialorder %v1877_v0, 8.507059e+37 }
 0xc59   :  { %v1625_v8 = vmul.f32 %v2679_v49, %v1624_v62 }
 0xc5b   :  { %v2681_v22 = vpop.eup %2680  ;;  %v1626_v37 = vadd.f32 %v2679_v49, %v1625_v8 }
 0xc5c   :  { %v2683_v17 = vpop.eup %2682  ;;  %v1744_v39 = vadd.f32 1.0, %v2681_v22 }
 0xc5d   :  { %v1630_v35 = vsel %vm1629_vm14, %v2679_v49, %v1626_v37  ;;  %v1869_v27 = vmul.f32 %v2683_v17, %v1867_v13  ;;  %vm1874_vm0 = vweird.f32 %v2683_v17 }
 0xc5e   :  { %2684 = vrcp.f32 %v1744_v39  ;;  %v1635_v6 = vsel %vm1632_vm15, %v1634_v36, %v1630_v35  ;;  %vm1875_vm2 = vmor %vm1873_vm1, %vm1874_vm0  ;;  %v1756_v49 = vand.u32 2147483648, %v1744_v39  ;;  %v1754_v57 = vand.u32 2147483647, %v1744_v39 }
 0xc5f   :  { %1637 = vrot.lane.b32.xlu0 %v1635_v6, %s3165_s29  ;;  %v1870_v26 = vsub.f32 1.0, %v1869_v27  ;;  %vm1750_vm5 = vweird.f32 %v1744_v39 }
 0xc60   :  { %v1757_v13 = vor.u32 1.1754944e-38, %v1756_v49  ;;  %vm1755_vm7 = vcmp.eq.f32.partialorder %v1754_v57, 8.507059e+37 }
 0xc61   :  { %v1871_v46 = vmul.f32 %v2683_v17, %v1870_v26 }
 0xc63   :  { %v1872_v15 = vadd.f32 %v2683_v17, %v1871_v46 }
 0xc64   :  { %v2685_v50 = vpop.eup %2684 }
 0xc65   :  { %v1876_v40 = vsel %vm1875_vm2, %v2683_v17, %v1872_v15  ;;  %v1746_v58 = vmul.f32 %v2685_v50, %v1744_v39  ;;  %vm1751_vm4 = vweird.f32 %v2685_v50 }
 0xc66   :  { %v1881_v38 = vsel %vm1878_vm3, %v1880_v18, %v1876_v40  ;;  %vm1752_vm6 = vmor %vm1750_vm5, %vm1751_vm4 }
 0xc67   :  { %1642 = vrot.lane.b32.xlu0 %v1635_v6, %s3175_s5  ;;  %1883 = vrot.lane.b32.xlu2 %v1881_v38, %s3165_s29  ;;  %v1747_v29 = vsub.f32 1.0, %v1746_v58 }
 0xc69   :  { %v1748_v60 = vmul.f32 %v2685_v50, %v1747_v29 }
 0xc6b   :  { %v1749_v62 = vadd.f32 %v2685_v50, %v1748_v60 }
 0xc6d   :  { %v1753_v4 = vsel %vm1752_vm6, %v2685_v50, %v1749_v62 }
 0xc6e   :  { %v1758_v8 = vsel %vm1755_vm7, %v1757_v13, %v1753_v4 }
 0xc6f   :  { %1765 = vrot.lane.b32.xlu2 %v1758_v8, %s3175_s5  ;;  %1760 = vrot.lane.b32.xlu1 %v1758_v8, %s3165_s29 }
 0xcc1   :  { %v1884_v21 = vpop.permute.xlu2 %1883 }
 0xcc2   :  { %v1885_v22 = vmul.f32 %v1884_v21, %v4161_v10 }
 0xcc4   :  { %v1886_v37 = vadd.f32 %v1885_v22, %v4158_v16 }
 0xcc6   :  { %2686 = vtanh.f32 %v1886_v37 }
 0xccc   :  { %v2687_v17 = vpop.eup %2686 }
 0xccd   :  { %1890 = vrot.lane.b32.xlu2 %v2687_v17, %s3165_s29 }
 0xcd1   :  { %v1638_v36 = vpop.permute.xlu0 %1637 }
 0xcd2   :  { %v1639_v39 = vmul.f32 %v1638_v36, %v4149_v42 }
 0xcd4   :  { %v1640_v35 = vadd.f32 %v1639_v39, %v4152_v23 }
 0xcd6   :  { %2688 = vtanh.f32 %v1640_v35 }
 0xcd9   :  { %v1643_v47 = vpop.permute.xlu0 %1642 }
 0xcda   :  { %v1646_v46 = vsub.f32 1.0, %v1643_v47  ;;  %v1648_v23 = vmul.f32 %v1643_v47, %v4092_v9 }
 0xcdc   :  { %v2689_v27 = vpop.eup %2688 }
 0xcdd   :  { %1644 = vrot.lane.b32.xlu1 %v2689_v27, %s3165_s29 }
 0xce1   :  { %v1761_v6 = vpop.permute.xlu1 %1760 }
 0xce2   :  { %v1762_v26 = vmul.f32 %v1761_v6, %v4166_v53  ;;  %v1766_v53 = vpop.permute.xlu2 %1765 }
 0xce3   :  { %v1771_v40 = vmul.f32 %v1766_v53, %v4100_v7 }
 0xce4   :  { %v1763_v10 = vadd.f32 %v1762_v26, %v4169_v33  ;;  %v1769_v33 = vsub.f32 1.0, %v1766_v53 }
 0xce5   :  { %1888 = vrot.lane.b32.xlu1 %v1881_v38, %s3175_s5 }
 0xce6   :  { %2690 = vtanh.f32 %v1763_v10 }
 0xcec   :  { %v2691_v16 = vpop.eup %2690 }
 0xced   :  { %1767 = vrot.lane.b32.xlu0 %v2691_v16, %s3165_s29 }
 0xd4f   :  { %v1645_v42 = vpop.permute.xlu1 %1644 }
 0xd50   :  { %v1647_v0 = vmul.f32 %v1646_v46, %v1645_v42 }
 0xd52   :  { %v4189_v15 = vadd.f32 %v1648_v23, %v1647_v0 }
 0xd54   :  { %v1678_v50 = vpack.c.bf16 %v4189_v15, %v4189_v15 }
 0xd56   :  { %1687 = vmatmul.bf16.vlgmr.msrb.gmra.mxu2 %v1678_v50 }
 0xd57   :  { %1993 = vmatpush.bf16.msrb.mxu2 %v3806_v54  ;;  %v1889_v38 = vpop.permute.xlu1 %1888 }
 0xd58   :  { %v1892_v49 = vsub.f32 1.0, %v1889_v38  ;;  %v1894_v60 = vmul.f32 %v1889_v38, %v4111_v52  ;;  %v4431_v52 = vld [vmem:[#allocation39_spill] sm:$0xff] }
 0xd5b   :  { %1994 = vmatpush.bf16.msrb.mxu2 %v3809_v31 }
 0xd5f   :  { %v1768_v18 = vpop.permute.xlu0 %1767  ;;  %1995 = vmatpush.bf16.msrb.mxu2 %v3812_v41  ;;  %v1891_v41 = vpop.permute.xlu2 %1890 }
 0xd60   :  { %v1770_v58 = vmul.f32 %v1769_v33, %v1768_v18  ;;  %v1893_v7 = vmul.f32 %v1892_v49, %v1891_v41 }
 0xd62   :  { %v4197_v9 = vadd.f32 %v1771_v40, %v1770_v58 }
 0xd63   :  { %1996 = vmatpush.bf16.msrb.mxu2 %v3818_v48  ;;  %v4208_v48 = vadd.f32 %v1894_v60, %v1893_v7 }
 0xd64   :  { %v1773_v29 = vmax.f32 %v4197_v9, 0.0  ;;  %v1835_v54 = vpack.c.bf16 %v4197_v9, %v4197_v9 }
 0xd65   :  { %v1896_v57 = vmax.f32 %v4208_v48, 0.0 }
 0xd66   :  { %1844 = vmatmul.bf16.vlgmr.msra.gmra.mxu2 %v1835_v54  ;;  %v1774_v31 = vpack.c.bf16 %v1773_v29, %v1773_v29 }
 0xd67   :  { %1997 = vmatpush.bf16.msrb.mxu2 %v3824_v63  ;;  %v1992_v63 = vpack.c.bf16 %v4208_v48, %v4208_v48 }
 0xd68   :  { %1783 = vmatmul.bf16.vlgmr.msrb.gmra.mxu0 %v1774_v31 }
 0xd69   :  { %2021 = vmatpush.bf16.msrb.mxu0 %v3968_v61 }
 0xd6b   :  { %1998 = vmatpush.bf16.msrb.mxu2 %v3828_v1  ;;  %v1897_v1 = vpack.c.bf16 %v1896_v57, %v1896_v57 }
 0xd6d   :  { %2022 = vmatpush.bf16.msrb.mxu0 %v3973_v11 }
 0xd6f   :  { %1999 = vmatpush.bf16.msrb.mxu2 %v3835_v3 }
 0xd71   :  { %2023 = vmatpush.bf16.msrb.mxu0 %v3979_v14 }
 0xd73   :  { %2000 = vmatpush.bf16.msrb.mxu2 %v3840_v55 }
 0xd75   :  { %2024 = vmatpush.bf16.msrb.mxu0 %v3989_v30 }
 0xd76   :  { %2001 = vmatmul.bf16.vlgmr.msrb.gmra.mxu2 %v1992_v63 }
 0xd77   :  { %2117 = vmatpush.bf16.msra.mxu2 %v3986_v25 }
 0xd78   :  { %1906 = vmatmul.bf16.vlgmr.msra.gmra.mxu0 %v1897_v1 }
 0xd79   :  { %2025 = vmatpush.bf16.msrb.mxu0 %v3995_v20 }
 0xd7b   :  { %2118 = vmatpush.bf16.msra.mxu2 %v3992_v2 }
 0xd7d   :  { %2026 = vmatpush.bf16.msrb.mxu0 %v4001_v45 }
 0xd7f   :  { %2119 = vmatpush.bf16.msra.mxu2 %v3998_v59 }
 0xd81   :  { %2027 = vmatpush.bf16.msrb.mxu0 %v4007_v32 }
 0xd83   :  { %2120 = vmatpush.bf16.msra.mxu2 %v4004_v28 }
 0xd85   :  { %2028 = vmatpush.bf16.msrb.mxu0 %v4013_v56 }
 0xd87   :  { %2121 = vmatpush.bf16.msra.mxu2 %v4010_v24 }
 0xd8b   :  { %2122 = vmatpush.bf16.msra.mxu2 %v4017_v34 }
 0xd8f   :  { %2123 = vmatpush.bf16.msra.mxu2 %v4021_v44 }
 0xd93   :  { %2124 = vmatpush.bf16.msra.mxu2 %v4025_v43  ;;  %v2778_v43 = vld [vmem:[%s4333_s6] ss:$0 sm:$0xff]  ;;  %s4434_s6 = sld [smem:[#allocation56_spill]] }
 0xd94   :  { %v4249_v62 = vadd.f32 %v2778_v43, %v4431_v52 }
 0xdd9   :  { %v1688_v3 = vpop.f32.mrf.mxu2 }
 0xdda   :  { %v4230_v11 = vadd.f32 %v4424_v12, %v1688_v3 }
 0xde1   :  { %v1690_v55 = vpop.f32.mrf.mxu2 }
 0xde5   :  { %v1784_v61 = vpop.f32.mrf.mxu0 }
 0xde6   :  { %v4233_v14 = vadd.f32 %v4425_v19, %v1784_v61 }
 0xde8   :  { %v1788_v25 = vadd.f32 %v4233_v14, %v4230_v11 }
 0xde9   :  { %v1845_v30 = vpop.f32.mrf.mxu2 }
 0xdea   :  { %v2492_v2 = vmul.f32 -1.442695, %v1788_v25  ;;  %v4238_v24 = vadd.f32 %v4429_v5, %v1845_v30  ;;  %v2779_v5 = vld [vmem:[%s4334_s7] ss:$0 sm:$0xff]  ;;  %s2206_s7 = sshll.u32 %s4434_s6, 4  ;;  %s2207_s7 = int_to_ptr.hbm [resolvable:$true] %s2206_s7 }
 0xdec   :  { %2692 = vpow2.f32 %v2492_v2 }
 0xded   :  { %v1786_v20 = vpop.f32.mrf.mxu0 }
 0xdf1   :  { %v1847_v59 = vpop.f32.mrf.mxu2 }
 0xdf2   :  { %v2693_v45 = vpop.eup %2692 }
 0xdf3   :  { %v1792_v28 = vadd.f32 1.0, %v2693_v45 }
 0xdf5   :  { %2694 = vrcp.f32 %v1792_v28  ;;  %v1907_v32 = vpop.f32.mrf.mxu0  ;;  %v1804_v36 = vand.u32 2147483648, %v1792_v28  ;;  %v1802_v35 = vand.u32 2147483647, %v1792_v28  ;;  %vm1798_vm9 = vweird.f32 %v1792_v28 }
 0xdf6   :  { %v4241_v56 = vadd.f32 %v4430_v51, %v1907_v32 }
 0xdf7   :  { %v1805_v16 = vor.u32 1.1754944e-38, %v1804_v36  ;;  %vm1803_vm11 = vcmp.eq.f32.partialorder %v1802_v35, 8.507059e+37 }
 0xdf8   :  { %v1911_v34 = vadd.f32 %v4241_v56, %v4238_v24 }
 0xdf9   :  { %v2002_v44 = vpop.f32.mrf.mxu2 }
 0xdfa   :  { %v2494_v13 = vmul.f32 -1.442695, %v1911_v34  ;;  %v2003_v4 = vadd.f32 %v2779_v5, %v2002_v44 }
 0xdfb   :  { %v2695_v8 = vpop.eup %2694 }
 0xdfc   :  { %2696 = vpow2.f32 %v2494_v13  ;;  %v2034_v51 = vadd.f32 %v2003_v4, %v4249_v62  ;;  %v1794_v21 = vmul.f32 %v2695_v8, %v1792_v28  ;;  %vm1799_vm8 = vweird.f32 %v2695_v8 }
 0xdfd   :  { %v1909_v22 = vpop.f32.mrf.mxu0  ;;  %vm1800_vm10 = vmor %vm1798_vm9, %vm1799_vm8 }
 0xdfe   :  { %v2496_v37 = vmul.f32 -1.442695, %v2034_v51  ;;  %v1795_v17 = vsub.f32 1.0, %v1794_v21 }
 0xe00   :  { %2698 = vpow2.f32 %v2496_v37  ;;  %v1796_v39 = vmul.f32 %v2695_v8, %v1795_v17 }
 0xe01   :  { %v2004_v27 = vpop.f32.mrf.mxu2 }
 0xe02   :  { %v2697_v6 = vpop.eup %2696  ;;  %v1797_v26 = vadd.f32 %v2695_v8, %v1796_v39 }
 0xe03   :  { %v1915_v10 = vadd.f32 1.0, %v2697_v6 }
 0xe04   :  { %v1801_v47 = vsel %vm1800_vm10, %v2695_v8, %v1797_v26 }
 0xe05   :  { %2700 = vrcp.f32 %v1915_v10  ;;  %v1806_v46 = vsel %vm1803_vm11, %v1805_v16, %v1801_v47  ;;  %v1925_v18 = vand.u32 2147483647, %v1915_v10  ;;  %v1927_v40 = vand.u32 2147483648, %v1915_v10 }
 0xe06   :  { %v2699_v42 = vpop.eup %2698  ;;  %1808 = vrot.lane.b32.xlu0 %v1806_v46, %s3165_s29  ;;  %vm1921_vm13 = vweird.f32 %v1915_v10 }
 0xe07   :  { %v2038_v23 = vadd.f32 1.0, %v2699_v42  ;;  %vm1926_vm15 = vcmp.eq.f32.partialorder %v1925_v18, 8.507059e+37  ;;  %v1928_v49 = vor.u32 1.1754944e-38, %v1927_v40 }
 0xe09   :  { %2702 = vrcp.f32 %v2038_v23  ;;  %v2050_v31 = vand.u32 2147483648, %v2038_v23  ;;  %v2048_v60 = vand.u32 2147483647, %v2038_v23  ;;  %vm2044_vm1 = vweird.f32 %v2038_v23 }
 0xe0b   :  { %v2701_v0 = vpop.eup %2700  ;;  %v2051_v1 = vor.u32 1.1754944e-38, %v2050_v31  ;;  %vm2049_vm3 = vcmp.eq.f32.partialorder %v2048_v60, 8.507059e+37 }
 0xe0c   :  { %v1917_v50 = vmul.f32 %v2701_v0, %v1915_v10  ;;  %vm1922_vm12 = vweird.f32 %v2701_v0 }
 0xe0d   :  { %vm1923_vm14 = vmor %vm1921_vm13, %vm1922_vm12 }
 0xe0e   :  { %1813 = vrot.lane.b32.xlu0 %v1806_v46, %s3175_s5  ;;  %v1918_v53 = vsub.f32 1.0, %v1917_v50 }
 0xe0f   :  { %v2703_v33 = vpop.eup %2702 }
 0xe10   :  { %v1919_v58 = vmul.f32 %v2701_v0, %v1918_v53  ;;  %v2040_v38 = vmul.f32 %v2703_v33, %v2038_v23  ;;  %vm2045_vm0 = vweird.f32 %v2703_v33 }
 0xe11   :  { %vm2046_vm2 = vmor %vm2044_vm1, %vm2045_vm0 }
 0xe12   :  { %v1920_v29 = vadd.f32 %v2701_v0, %v1919_v58  ;;  %v2041_v54 = vsub.f32 1.0, %v2040_v38  ;;  %v2780_v38 = vld [vmem:[%s4338_s11] ss:$0 sm:$0xff] }
 0xe14   :  { %v1924_v41 = vsel %vm1923_vm14, %v2701_v0, %v1920_v29  ;;  %v2042_v7 = vmul.f32 %v2703_v33, %v2041_v54 }
 0xe15   :  { %v1929_v57 = vsel %vm1926_vm15, %v1928_v49, %v1924_v41 }
 0xe16   :  { %1931 = vrot.lane.b32.xlu1 %v1929_v57, %s3165_s29  ;;  %v2043_v63 = vadd.f32 %v2703_v33, %v2042_v7 }
 0xe18   :  { %v2047_v3 = vsel %vm2046_vm2, %v2703_v33, %v2043_v63 }
 0xe19   :  { %v2052_v55 = vsel %vm2049_vm3, %v2051_v1, %v2047_v3 }
 0xe1a   :  { %2054 = vrot.lane.b32.xlu2 %v2052_v55, %s3165_s29 }
 0xe22   :  { %1936 = vrot.lane.b32.xlu2 %v1929_v57, %s3175_s5 }
 0xe74   :  { %v2055_v61 = vpop.permute.xlu2 %2054 }
 0xe75   :  { %v2056_v25 = vmul.f32 %v2055_v61, %v2003_v4 }
 0xe77   :  { %v2057_v30 = vadd.f32 %v2056_v25, %v4249_v62 }
 0xe78   :  { %v1809_v2 = vpop.permute.xlu0 %1808 }
 0xe79   :  { %2704 = vtanh.f32 %v2057_v30  ;;  %v1810_v20 = vmul.f32 %v1809_v2, %v4230_v11 }
 0xe7b   :  { %v1811_v59 = vadd.f32 %v1810_v20, %v4233_v14 }
 0xe7c   :  { %v1937_v5 = vpop.permute.xlu2 %1936 }
 0xe7d   :  { %2706 = vtanh.f32 %v1811_v59  ;;  %v1940_v17 = vsub.f32 1.0, %v1937_v5 }
 0xe7f   :  { %v2705_v45 = vpop.eup %2704 }
 0xe80   :  { %2061 = vrot.lane.b32.xlu2 %v2705_v45, %s3165_s29  ;;  %v1814_v11 = vpop.permute.xlu0 %1813 }
 0xe81   :  { %v1817_v14 = vsub.f32 1.0, %v1814_v11  ;;  %v1819_v62 = vmul.f32 %v1814_v11, %v4189_v15  ;;  %v1942_v15 = vmul.f32 %v1937_v5, %v4197_v9 }
 0xe83   :  { %v2707_v28 = vpop.eup %2706 }
 0xe84   :  { %1815 = vrot.lane.b32.xlu1 %v2707_v28, %s3165_s29 }
 0xe88   :  { %v1932_v32 = vpop.permute.xlu1 %1931 }
 0xe89   :  { %v1933_v34 = vmul.f32 %v1932_v32, %v4238_v24 }
 0xe8b   :  { %v1934_v44 = vadd.f32 %v1933_v34, %v4241_v56 }
 0xe8c   :  { %2059 = vrot.lane.b32.xlu1 %v2052_v55, %s3175_s5 }
 0xe8d   :  { %2708 = vtanh.f32 %v1934_v44 }
 0xe93   :  { %v2709_v43 = vpop.eup %2708 }
 0xe94   :  { %1938 = vrot.lane.b32.xlu0 %v2709_v43, %s3165_s29 }
 0xeda   :  { %v2062_v51 = vpop.permute.xlu2 %2061 }
 0xef6   :  { %v1816_v52 = vpop.permute.xlu1 %1815 }
 0xef7   :  { %v1818_v13 = vmul.f32 %v1817_v14, %v1816_v52 }
 0xef9   :  { %v4270_v4 = vadd.f32 %v1819_v62, %v1818_v13 }
 0xefb   :  { %v1849_v24 = vpack.c.bf16 %v4270_v4, %v4270_v4 }
 0xefd   :  { %1858 = vmatmul.bf16.vlgmr.msra.gmra.mxu3 %v1849_v24 }
 0xefe   :  { %v2060_v56 = vpop.permute.xlu1 %2059 }
 0xeff   :  { %v2063_v8 = vsub.f32 1.0, %v2060_v56  ;;  %v2065_v22 = vmul.f32 %v2060_v56, %v4208_v48 }
 0xf01   :  { %v2064_v21 = vmul.f32 %v2063_v8, %v2062_v51 }
 0xf03   :  { %v2066_v37 = vadd.f32 %v2065_v22, %v2064_v21  ;;  %v2583_v21 = vld [vmem:[%s4344_s17] ss:$0 sm:$0xff]  ;;  %v4432_v22 = vld [vmem:[#allocation46_spill] sm:$0xff] }
 0xf05   :  { %2163 = vst [vmem:[#allocation21] sm:$0xff] %v2066_v37  ;;  %v2067_v10 = vmax.f32 %v2066_v37, 0.0  ;;  %v953_v37 = vadd.f32 %v2583_v21, %v4432_v22 }
 0xf06   :  { %v1939_v36 = vpop.permute.xlu0 %1938 }
 0xf07   :  { %v1941_v39 = vmul.f32 %v1940_v17, %v1939_v36  ;;  %v2068_v16 = vpack.c.bf16 %v2067_v10, %v2067_v10 }
 0xf09   :  { %v4276_v35 = vadd.f32 %v1942_v15, %v1941_v39 }
 0xf0b   :  { %v1944_v27 = vmax.f32 %v4276_v35, 0.0  ;;  %v2006_v6 = vpack.c.bf16 %v4276_v35, %v4276_v35 }
 0xf0d   :  { %2015 = vmatmul.bf16.vlgmr.msrb.gmra.mxu3 %v2006_v6  ;;  %v1945_v26 = vpack.c.bf16 %v1944_v27, %v1944_v27 }
 0xf0f   :  { %1954 = vmatmul.bf16.vlgmr.msrb.gmra.mxu1 %v1945_v26 }
 0xf1f   :  { %2077 = vmatmul.bf16.vlgmr.msra.gmra.mxu1 %v2068_v16 }
 0xf80   :  { %v1859_v48 = vpop.f32.mrf.mxu3 }
 0xf81   :  { %v1860_v42 = vadd.f32 %v4424_v12, %v1859_v48  ;;  %v2781_v12 = vld [vmem:[%s4337_s10] ss:$0 sm:$0xff] }
 0xf88   :  { %v1861_v47 = vpop.f32.mrf.mxu3 }
 0xf8c   :  { %v1955_v46 = vpop.f32.mrf.mxu1 }
 0xf8d   :  { %v1956_v9 = vadd.f32 %v4425_v19, %v1955_v46 }
 0xf8f   :  { %v1959_v23 = vadd.f32 %v1956_v9, %v1860_v42 }
 0xf90   :  { %v2016_v0 = vpop.f32.mrf.mxu3 }
 0xf91   :  { %v2495_v50 = vmul.f32 -1.442695, %v1959_v23  ;;  %v2017_v29 = vadd.f32 %v2780_v38, %v2016_v0  ;;  %v2783_v38 = vld [vmem:[%s4341_s14] ss:$0 sm:$0xff]  ;;  %s3176_s14 = smov [#allocation21]  }
 0xf93   :  { %2710 = vpow2.f32 %v2495_v50 }
 0xf94   :  { %v1957_v53 = vpop.f32.mrf.mxu1 }
 0xf98   :  { %v2018_v33 = vpop.f32.mrf.mxu3 }
 0xf99   :  { %v2711_v18 = vpop.eup %2710 }
 0xf9a   :  { %v1963_v40 = vadd.f32 1.0, %v2711_v18 }
 0xf9c   :  { %2712 = vrcp.f32 %v1963_v40  ;;  %v2078_v58 = vpop.f32.mrf.mxu1  ;;  %v1975_v57 = vand.u32 2147483648, %v1963_v40  ;;  %v1973_v1 = vand.u32 2147483647, %v1963_v40  ;;  %vm1969_vm5 = vweird.f32 %v1963_v40 }
 0xf9d   :  { %v2079_v19 = vadd.f32 %v2781_v12, %v2078_v58  ;;  %v2782_v58 = vld [vmem:[%s4342_s15] ss:$0 sm:$0xff]  ;;  %s2182_s15 = sshll.u32 %s3176_s14, 4  ;;  %s2183_s15 = int_to_ptr.vmem [resolvable:$true] %s2182_s15 }
 0xf9e   :  { %v1976_v25 = vor.u32 1.1754944e-38, %v1975_v57  ;;  %vm1974_vm7 = vcmp.eq.f32.partialorder %v1973_v1, 8.507059e+37  ;;  %2187 = dma.vmem_to_hbm [thread:$0]  %s2183_s15, 128, %s2185_s20, [#allocation22]  }
 0xf9f   :  { %v2082_v54 = vadd.f32 %v2079_v19, %v2017_v29 }
 0xfa1   :  { %v2497_v49 = vmul.f32 -1.442695, %v2082_v54 }
 0xfa2   :  { %v2713_v31 = vpop.eup %2712 }
 0xfa3   :  { %2714 = vpow2.f32 %v2497_v49  ;;  %v1965_v41 = vmul.f32 %v2713_v31, %v1963_v40  ;;  %vm1970_vm4 = vweird.f32 %v2713_v31 }
 0xfa4   :  { %v2080_v7 = vpop.f32.mrf.mxu1  ;;  %vm1971_vm6 = vmor %vm1969_vm5, %vm1970_vm4 }
 0xfa5   :  { %v1966_v60 = vsub.f32 1.0, %v1965_v41 }
 0xfa7   :  { %v1967_v63 = vmul.f32 %v2713_v31, %v1966_v60 }
 0xfa9   :  { %v2715_v3 = vpop.eup %2714  ;;  %v1968_v55 = vadd.f32 %v2713_v31, %v1967_v63 }
 0xfaa   :  { %v2086_v61 = vadd.f32 1.0, %v2715_v3 }
 0xfab   :  { %v1972_v30 = vsel %vm1971_vm6, %v2713_v31, %v1968_v55 }
 0xfac   :  { %2716 = vrcp.f32 %v2086_v61  ;;  %v1977_v2 = vsel %vm1974_vm7, %v1976_v25, %v1972_v30  ;;  %v2098_v28 = vand.u32 2147483648, %v2086_v61  ;;  %v2096_v34 = vand.u32 2147483647, %v2086_v61 }
 0xfad   :  { %1979 = vrot.lane.b32.xlu1 %v1977_v2, %s3165_s29  ;;  %vm2092_vm9 = vweird.f32 %v2086_v61 }
 0xfae   :  { %v2099_v43 = vor.u32 1.1754944e-38, %v2098_v28  ;;  %vm2097_vm11 = vcmp.eq.f32.partialorder %v2096_v34, 8.507059e+37 }
 0xfb2   :  { %v2717_v20 = vpop.eup %2716 }
 0xfb3   :  { %v2088_v59 = vmul.f32 %v2717_v20, %v2086_v61  ;;  %vm2093_vm8 = vweird.f32 %v2717_v20 }
 0xfb4   :  { %vm2094_vm10 = vmor %vm2092_vm9, %vm2093_vm8 }
 0xfb5   :  { %1984 = vrot.lane.b32.xlu1 %v1977_v2, %s3175_s5  ;;  %v2089_v45 = vsub.f32 1.0, %v2088_v59 }
 0xfb7   :  { %v2090_v32 = vmul.f32 %v2717_v20, %v2089_v45 }
 0xfb9   :  { %v2091_v44 = vadd.f32 %v2717_v20, %v2090_v32 }
 0xfbb   :  { %v2095_v11 = vsel %vm2094_vm10, %v2717_v20, %v2091_v44 }
 0xfbc   :  { %v2100_v14 = vsel %vm2097_vm11, %v2099_v43, %v2095_v11 }
 0xfbd   :  { %2107 = vrot.lane.b32.xlu2 %v2100_v14, %s3175_s5  ;;  %2102 = vrot.lane.b32.xlu0 %v2100_v14, %s3165_s29 }
0x1017   :  { %v2108_v17 = vpop.permute.xlu2 %2107 }
0x1018   :  { %v2111_v16 = vsub.f32 1.0, %v2108_v17  ;;  %v2113_v47 = vmul.f32 %v2108_v17, %v4276_v35 }
0x101f   :  { %v1980_v52 = vpop.permute.xlu1 %1979 }
0x1020   :  { %v1981_v62 = vmul.f32 %v1980_v52, %v1860_v42 }
0x1022   :  { %v1982_v13 = vadd.f32 %v1981_v62, %v1956_v9 }
0x1024   :  { %2718 = vtanh.f32 %v1982_v13 }
0x1027   :  { %v1985_v36 = vpop.permute.xlu1 %1984 }
0x1028   :  { %v1988_v15 = vsub.f32 1.0, %v1985_v36  ;;  %v1990_v27 = vmul.f32 %v1985_v36, %v4270_v4 }
0x102a   :  { %v2719_v5 = vpop.eup %2718 }
0x102b   :  { %1986 = vrot.lane.b32.xlu2 %v2719_v5, %s3165_s29 }
0x102f   :  { %v2103_v24 = vpop.permute.xlu0 %2102 }
0x1030   :  { %v2104_v56 = vmul.f32 %v2103_v24, %v2017_v29 }
0x1032   :  { %v2105_v8 = vadd.f32 %v2104_v56, %v2079_v19 }
0x1034   :  { %2720 = vtanh.f32 %v2105_v8 }
0x103a   :  { %v2721_v51 = vpop.eup %2720 }
0x103b   :  { %2109 = vrot.lane.b32.xlu0 %v2721_v51, %s3165_s29 }
0x1065   :  { %956 = vmax.xlane.f32.xlu0 %v953_v37 }
0x1085   :  { %v1987_v39 = vpop.permute.xlu2 %1986 }
0x1086   :  { %v1989_v6 = vmul.f32 %v1988_v15, %v1987_v39 }
0x1088   :  { %v4300_v26 = vadd.f32 %v1990_v27, %v1989_v6 }
0x108a   :  { %v2020_v10 = vpack.c.bf16 %v4300_v26, %v4300_v26 }
0x108c   :  { %2029 = vmatmul.bf16.vlgmr.msrb.gmra.mxu0 %v2020_v10 }
0x10ad   :  { %v2110_v48 = vpop.permute.xlu0 %2109 }
0x10ae   :  { %v2112_v46 = vmul.f32 %v2111_v16, %v2110_v48 }
0x10b0   :  { %v2114_v42 = vadd.f32 %v2113_v47, %v2112_v46 }
0x10b2   :  { %v2115_v9 = vmax.f32 %v2114_v42, 0.0  ;;  %2164 = vst [vmem:[#allocation23] sm:$0xff] %v2114_v42 }
0x10b3   :  { %2198 = dma.vmem_to_hbm [thread:$0]  %s2194_s0, 128, %s2196_s19, [#allocation22]  }
0x10b4   :  { %v2116_v23 = vpack.c.bf16 %v2115_v9, %v2115_v9 }
0x10b6   :  { %2125 = vmatmul.bf16.vlgmr.msra.gmra.mxu2 %v2116_v23 }
0x10d8   :  { %v957_v0 = vpop.xlane.xlu0 %956 }
0x10d9   :  { %v958_v50 = vsub.f32 %v953_v37, %v957_v0 }
0x10db   :  { %v959_v4 = vmul.f32 1.442695, %v958_v50 }
0x10dd   :  { %2722 = vpow2.f32 %v959_v4 }
0x10e3   :  { %v2723_v53 = vpop.eup %2722 }
0x10e4   :  { %961 = vadd.xlane.f32.xlu2 %v2723_v53 }
0x1109   :  { %v2030_v33 = vpop.f32.mrf.mxu0 }
0x110a   :  { %v2031_v35 = vadd.f32 %v2782_v58, %v2030_v33 }
0x1111   :  { %v2032_v18 = vpop.f32.mrf.mxu0 }
0x1139   :  { %v2126_v40 = vpop.f32.mrf.mxu2 }
0x113a   :  { %v2127_v29 = vadd.f32 %v2783_v38, %v2126_v40 }
0x113c   :  { %v2130_v12 = vadd.f32 %v2127_v29, %v2031_v35 }
0x113e   :  { %v2498_v19 = vmul.f32 -1.442695, %v2130_v12 }
0x1140   :  { %2724 = vpow2.f32 %v2498_v19 }
0x1141   :  { %v2128_v54 = vpop.f32.mrf.mxu2 }
0x1146   :  { %v2725_v49 = vpop.eup %2724 }
0x1147   :  { %v2134_v31 = vadd.f32 1.0, %v2725_v49 }
0x1149   :  { %2726 = vrcp.f32 %v2134_v31  ;;  %v2146_v57 = vand.u32 2147483648, %v2134_v31  ;;  %v2144_v1 = vand.u32 2147483647, %v2134_v31  ;;  %vm2140_vm13 = vweird.f32 %v2134_v31 }
0x114b   :  { %v2147_v61 = vor.u32 1.1754944e-38, %v2146_v57  ;;  %vm2145_vm15 = vcmp.eq.f32.partialorder %v2144_v1, 8.507059e+37 }
0x114f   :  { %v2727_v41 = vpop.eup %2726 }
0x1150   :  { %v2136_v7 = vmul.f32 %v2727_v41, %v2134_v31  ;;  %vm2141_vm12 = vweird.f32 %v2727_v41 }
0x1151   :  { %vm2142_vm14 = vmor %vm2140_vm13, %vm2141_vm12 }
0x1152   :  { %v2137_v60 = vsub.f32 1.0, %v2136_v7 }
0x1154   :  { %v2138_v63 = vmul.f32 %v2727_v41, %v2137_v60 }
0x1156   :  { %v2139_v3 = vadd.f32 %v2727_v41, %v2138_v63 }
0x1157   :  { %v962_v55 = vpop.xlane.xlu2 %961 }
0x1158   :  { %2728 = vlog2.f32 %v962_v55  ;;  %v2143_v25 = vsel %vm2142_vm14, %v2727_v41, %v2139_v3 }
0x1159   :  { %v2148_v30 = vsel %vm2145_vm15, %v2147_v61, %v2143_v25 }
0x115a   :  { %2150 = vrot.lane.b32.xlu1 %v2148_v30, %s3165_s29 }
0x115e   :  { %v2729_v2 = vpop.eup %2728 }
0x115f   :  { %v964_v20 = vmul.f32 0.6931472, %v2729_v2 }
0x1161   :  { %v965_v59 = vsub.f32 %v958_v50, %v964_v20 }
0x1162   :  { %2155 = vrot.lane.b32.xlu1 %v2148_v30, %s3175_s5  ;;  %s2171_s5 = sshll.u32 %s3177_s30, 4  ;;  %s2172_s5 = int_to_ptr.vmem [resolvable:$true] %s2171_s5 }
0x1163   :  { %966 = vst [vmem:[#allocation20] sm:$0xff] %v965_v59 }
0x1164   :  { %2176 = dma.vmem_to_hbm [thread:$0]  %s2172_s5, 128, %s2174_s12, [#allocation4]  }
0x11cc   :  { %v2151_v45 = vpop.permute.xlu1 %2150 }
0x11cd   :  { %v2152_v28 = vmul.f32 %v2151_v45, %v2031_v35 }
0x11cf   :  { %v2153_v32 = vadd.f32 %v2152_v28, %v2127_v29 }
0x11d1   :  { %2730 = vtanh.f32 %v2153_v32 }
0x11d4   :  { %v2156_v44 = vpop.permute.xlu1 %2155 }
0x11d5   :  { %v2159_v43 = vsub.f32 1.0, %v2156_v44  ;;  %v2161_v14 = vmul.f32 %v2156_v44, %v4300_v26 }
0x11d7   :  { %v2731_v34 = vpop.eup %2730 }
0x11d8   :  { %2157 = vrot.lane.b32.xlu1 %v2731_v34, %s3165_s29 }
0x124a   :  { %v2158_v11 = vpop.permute.xlu1 %2157 }
0x124b   :  { %v2160_v52 = vmul.f32 %v2159_v43, %v2158_v11 }
0x124d   :  { %v2162_v62 = vadd.f32 %v2161_v14, %v2160_v52 }
0x124f   :  { %2165 = vst [vmem:[#allocation24] sm:$0xff] %v2162_v62 }
0x1250   :  { %2209 = dma.vmem_to_hbm [thread:$0]  %s2205_s1, 128, %s2207_s7, [#allocation25]  }
0x1251   :  { %3156 = dma.done.wait [#allocation4], 128  }
0x1252   :  { %3157 = vsyncadd [#allocation4], 4294967168 }
0x1253   :  { %3158 = dma.done.wait [#allocation22], 256  }
0x1254   :  { %3159 = vsyncadd [#allocation22], 4294967040 }
0x1255   :  { %3160 = dma.done.wait [#allocation25], 128  }
0x1256   :  { %3161 = vsyncadd [#allocation25], 4294967168 }
0x1257   :  { %2226 = vsyncpa [#allocation3], 1 }
0x1258   :  { %2227 = vsyncpa [#allocation6], 1 }
0x1259   :  { %2228 = vsyncpa [#allocation9], 1 }
0x125a   :  { %2229 = vsyncpa [#allocation12], 1 }
0x125b   :  { %2230 = vsyncpa [#allocation15], 1 }
0x125c   :  { %2231 = vsyncpa [#allocation18], 1 }
0x125d   :  { %2232 = vsyncpa [#allocation4], 1 }
0x125e   :  { %2233 = vsyncpa [#allocation22], 1 }
0x125f   :  { %2234 = vsyncpa [#allocation25], 1 }

</bundles_post_ra>
